<compile_context>
chip_gen: v7x
topology: tpu7x:2x2x1
jax: 0.10.0
libtpu: 0.0.40
codegen_flags: <defaults>
</compile_context>

<pallas_src>
import math
import functools

import jax
import jax.numpy as jnp
from jax.experimental import pallas as pl
from jax.experimental.pallas import tpu as pltpu

ADAPTIVE_TH = 0.4
N_HEAD = 8
FFN_DIM = 512


# --------------------------------------------------------------------------
# Fused forward kernel factory
# --------------------------------------------------------------------------
def _make_fused_kernel(bsz, n, d, n_weights):
    bn = bsz * n
    heads = N_HEAD
    dh = d // heads
    scale = 1.0 / math.sqrt(dh)
    n_data = 9  # node, pos, budget, h0, c0, end_mask, blockmask, seg_sum, pool

    def dot(a, b):
        return jnp.dot(a, b, preferred_element_type=jnp.float32)

    def kernel(idx_ref, *refs):
        (node_ref, pos_ref, budget_ref, h0_ref, c0_ref,
         endmask_ref, blockmask_ref, segsum_ref, pool_ref) = refs[:n_data]
        w = refs[n_data:n_data + n_weights]
        val_ref, h_out_ref, c_out_ref = refs[n_data + n_weights:
                                             n_data + n_weights + 3]
        emb_scr = refs[n_data + n_weights + 3]

        end_w, end_b, init_w, init_b, pos_w, pos_b = w[0:6]
        enc_layers = (w[6:18], w[18:30])
        bw_emb, bw_budget, bw_bias = w[30:33]
        lstm_wih, lstm_whh, lstm_b = w[33:36]
        dec_w1, dec_b1, dec_w2, dec_b2 = w[36:40]
        val_wT, val_b = w[40:42]

        blockmask = blockmask_ref[...]        # (H*N, D)  head block-diag mask
        seg_sum = segsum_ref[...]             # (H*N, H*N) per-head segment sum
        end_mask = endmask_ref[...]           # (B*N, 1)  rows < agent_num

        # ---- node + positional embedding (decomposed cat via row blend) ----
        x_node = node_ref[...]
        e_end = dot(x_node, end_w[...]) + end_b[...]
        e_init = dot(x_node, init_w[...]) + init_b[...]
        emb = e_init + end_mask * (e_end - e_init)
        emb = emb + dot(pos_ref[...], pos_w[...]) + pos_b[...]

        # ---- single-pass LayerNorm -----------------------------------------
        def layernorm(v, g_ref, b_ref):
            mu = jnp.mean(v, axis=-1, keepdims=True)
            var = jnp.mean(v * v, axis=-1, keepdims=True) - mu * mu
            return (v - mu) * jax.lax.rsqrt(var + 1e-5) * g_ref[...] + b_ref[...]

        # ---- pre-norm transformer layer with lane-dense packed MHA ----------
        def encoder_layer(x, lw):
            (ln1_g, ln1_b, wq, wk, wv, wo,
             ln2_g, ln2_b, w1, b1, w2, b2) = lw
            hpre = layernorm(x, ln1_g, ln1_b)
            q = dot(hpre, wq[...])
            k = dot(hpre, wk[...])
            v = dot(hpre, wv[...])
            att_rows = []
            for bi in range(bsz):
                q_b = q[bi * n:(bi + 1) * n]
                k_b = k[bi * n:(bi + 1) * n]
                v_b = v[bi * n:(bi + 1) * n]
                # per-head K / V blocks stacked along sublanes; blockmask makes
                # row block h carry only head h's feature columns.
                k_big = jnp.concatenate([k_b] * heads, axis=0) * blockmask
                v_big = jnp.concatenate([v_b] * heads, axis=0) * blockmask
                # all 8 heads' (N,N) scores packed lane-dense: (N, H*N)
                scores = jax.lax.dot_general(
                    q_b, k_big, (((1,), (1,)), ((), ())),
                    preferred_element_type=jnp.float32) * scale
                m = jnp.max(scores, axis=-1, keepdims=True)   # same shift per
                p = jnp.exp(scores - m)                       # segment -> ok
                denom = dot(p, seg_sum)                       # per-head sums
                p = p * pl.reciprocal(denom, approx=True)
                att_rows.append(dot(p, v_big))                # (N, D)
            att = att_rows[0] if bsz == 1 else jnp.concatenate(att_rows, axis=0)
            h1 = x + dot(att, wo[...])
            h2 = layernorm(h1, ln2_g, ln2_b)
            ff = jnp.maximum(dot(h2, w1[...]) + b1[...], 0.0)
            ff = dot(ff, w2[...]) + b2[...]
            return h1 + ff

        for lw in enc_layers:
            emb = encoder_layer(emb, lw)

        # ---- budget embedding (decomposed concat; TH folded into bias) ------
        emb = (dot(emb, bw_emb[...])
               + budget_ref[...] * bw_budget[...]
               + bw_bias[...])
        emb_scr[...] = emb

        # ---- current-node gather (dynamic VMEM slice) + LSTM cell -----------
        rows = []
        for bi in range(bsz):
            r = idx_ref[bi] + bi * n
            rows.append(emb_scr[pl.ds(r, 1), :])
        cur_x = rows[0] if bsz == 1 else jnp.concatenate(rows, axis=0)  # (B, D)

        gates = (dot(cur_x, lstm_wih[...])
                 + dot(h0_ref[...], lstm_whh[...])
                 + lstm_b[...])                                # (B, 4D)
        i_g = jax.nn.sigmoid(gates[:, 0:d])
        f_g = jax.nn.sigmoid(gates[:, d:2 * d])
        g_g = jnp.tanh(gates[:, 2 * d:3 * d])
        o_g = jax.nn.sigmoid(gates[:, 3 * d:4 * d])
        c_new = f_g * c0_ref[...] + i_g * g_g
        h_new = o_g * jnp.tanh(c_new)
        h_out_ref[...] = h_new
        c_out_ref[...] = c_new

        # ---- graph decoder (mean pool via matmul) + value head --------------
        gpool = dot(pool_ref[...], emb)                        # (B, D)
        hdec = jnp.maximum(dot(gpool, dec_w1[...]) + dec_b1[...], 0.0)
        gf = dot(hdec, dec_w2[...]) + dec_b2[...]
        val_ref[...] = (jnp.sum(gf * val_wT[...], axis=-1, keepdims=True)
                        + val_b[...])

    return kernel


# --------------------------------------------------------------------------
# Parameter init (deterministic, PyTorch-style uniform fan-in bounds)
# --------------------------------------------------------------------------
def init_params(key, input_dim, d):
    keys = iter(jax.random.split(key, 64))

    def dense(din, dout):
        bound = 1.0 / math.sqrt(din)
        w = jax.random.uniform(next(keys), (din, dout), jnp.float32, -bound, bound)
        b = jax.random.uniform(next(keys), (1, dout), jnp.float32, -bound, bound)
        return w, b

    p = {}
    p["init_w"], p["init_b"] = dense(input_dim, d)
    p["end_w"], p["end_b"] = dense(input_dim, d)
    p["pos_w"], p["pos_b"] = dense(32, d)
    p["budget_w"], p["budget_b"] = dense(d + 2, d)

    enc_layers = []
    for _ in range(2):
        lp = {}
        lp["ln1_g"] = jnp.ones((1, d), jnp.float32)
        lp["ln1_b"] = jnp.zeros((1, d), jnp.float32)
        lp["wq"], _ = dense(d, d)
        lp["wk"], _ = dense(d, d)
        lp["wv"], _ = dense(d, d)
        lp["wo"], _ = dense(d, d)
        lp["ln2_g"] = jnp.ones((1, d), jnp.float32)
        lp["ln2_b"] = jnp.zeros((1, d), jnp.float32)
        lp["w1"], lp["b1"] = dense(d, FFN_DIM)
        lp["w2"], lp["b2"] = dense(FFN_DIM, d)
        enc_layers.append(lp)
    p["enc"] = enc_layers

    # LSTM (single layer): weights pre-transposed as (D, 4D); biases merged.
    wih, bih = dense(d, 4 * d)
    whh, bhh = dense(d, 4 * d)
    p["lstm_wih"], p["lstm_whh"], p["lstm_b"] = wih, whh, bih + bhh

    p["dec_w1"], p["dec_b1"] = dense(d, d)
    p["dec_w2"], p["dec_b2"] = dense(d, d)
    p["val_w"], p["val_b"] = dense(d, 1)        # val_w (D,1), val_b (1,1)
    return p


# --------------------------------------------------------------------------
# Forward pass (mirrors CriticAttentionNet.forward) — one fused pallas_call
# --------------------------------------------------------------------------
def critic_attention_forward(params, agent_num, node_inputs, edge_inputs,
                             budget_inputs, current_index, lstm_h, lstm_c,
                             pos_encoding, mask=None):
    del edge_inputs, mask  # unused by the reference forward pass
    bsz, n, in_dim = node_inputs.shape
    d = params["init_w"].shape[1]
    bn = bsz * n
    dh = d // N_HEAD
    hn = N_HEAD * n

    # ---- flatten batch into the sublane axis ------------------------------
    node2 = node_inputs.reshape(bn, in_dim).astype(jnp.float32)
    pos2 = pos_encoding.reshape(bn, pos_encoding.shape[-1]).astype(jnp.float32)
    budget2 = budget_inputs.reshape(bn, 1).astype(jnp.float32)
    h0 = lstm_h[:, 0, :].astype(jnp.float32)
    c0 = lstm_c[:, 0, :].astype(jnp.float32)
    cur_idx = current_index.reshape(bsz).astype(jnp.int32)

    # ---- hoisted constant masks (constant-folded under jit) ---------------
    row = jnp.arange(bn, dtype=jnp.int32)
    end_mask = ((row % n) < agent_num).astype(jnp.float32).reshape(bn, 1)
    rh = jnp.arange(hn, dtype=jnp.int32)
    blockmask = ((rh[:, None] // n)
                 == (jnp.arange(d, dtype=jnp.int32)[None, :] // dh)
                 ).astype(jnp.float32)                      # (H*N, D)
    seg_sum = ((rh[:, None] // n) == (rh[None, :] // n)).astype(jnp.float32)
    pool = ((jnp.arange(bsz, dtype=jnp.int32)[:, None]
             == (row[None, :] // n)).astype(jnp.float32)) / n   # (B, B*N)

    # ---- flat weight list (order must match kernel unpacking) -------------
    weights = [params["end_w"], params["end_b"],
               params["init_w"], params["init_b"],
               params["pos_w"], params["pos_b"]]
    for lp in params["enc"]:
        weights += [lp["ln1_g"], lp["ln1_b"], lp["wq"], lp["wk"], lp["wv"],
                    lp["wo"], lp["ln2_g"], lp["ln2_b"], lp["w1"], lp["b1"],
                    lp["w2"], lp["b2"]]
    bw = params["budget_w"]
    weights += [bw[:d], bw[d:d + 1],
                params["budget_b"] + ADAPTIVE_TH * bw[d + 1:d + 2]]
    weights += [params["lstm_wih"], params["lstm_whh"], params["lstm_b"]]
    weights += [params["dec_w1"], params["dec_b1"],
                params["dec_w2"], params["dec_b2"]]
    weights += [params["val_w"].reshape(1, d), params["val_b"]]

    data_inputs = [node2, pos2, budget2, h0, c0,
                   end_mask, blockmask, seg_sum, pool]
    all_inputs = data_inputs + weights

    kernel = _make_fused_kernel(bsz, n, d, len(weights))

    def _spec(a):
        nd = a.ndim
        return pl.BlockSpec(a.shape, lambda i, s, _nd=nd: (0,) * _nd)

    value, h_new, c_new = pl.pallas_call(
        kernel,
        out_shape=(
            jax.ShapeDtypeStruct((bsz, 1), jnp.float32),
            jax.ShapeDtypeStruct((bsz, d), jnp.float32),
            jax.ShapeDtypeStruct((bsz, d), jnp.float32),
        ),
        grid_spec=pltpu.PrefetchScalarGridSpec(
            num_scalar_prefetch=1,
            grid=(1,),
            in_specs=[_spec(a) for a in all_inputs],
            out_specs=[
                pl.BlockSpec((bsz, 1), lambda i, s: (0, 0)),
                pl.BlockSpec((bsz, d), lambda i, s: (0, 0)),
                pl.BlockSpec((bsz, d), lambda i, s: (0, 0)),
            ],
            scratch_shapes=[pltpu.VMEM((bn, d), jnp.float32)],
        ),
        compiler_params=pltpu.CompilerParams(
            dimension_semantics=("arbitrary",),
            vmem_limit_bytes=32 * 1024 * 1024,
        ),
    )(cur_idx, *all_inputs)

    return (value.reshape(bsz, 1, 1),
            h_new[:, None, :],
            c_new[:, None, :])


# --------------------------------------------------------------------------
if __name__ == "__main__":
    key = jax.random.PRNGKey(0)
    B, N, INPUT_DIM, D, AGENT_NUM = 2, 16, 4, 32, 2

    k_param, k1, k2, k3, k4, k5, k6 = jax.random.split(key, 7)
    params = init_params(k_param, INPUT_DIM, D)

    node_inputs = jax.random.normal(k1, (B, N, INPUT_DIM), jnp.float32)
    edge_inputs = jax.random.randint(k2, (B, N, 8), 0, N)      # unused by forward
    budget_inputs = jax.random.uniform(k3, (B, N, 1), jnp.float32)
    current_index = jax.random.randint(k4, (B, 1, 1), 0, N)
    lstm_h = jax.random.normal(k5, (B, 1, D), jnp.float32)
    lstm_c = jax.random.normal(k6, (B, 1, D), jnp.float32)
    pos_encoding = jax.random.normal(jax.random.PRNGKey(42), (B, N, 32), jnp.float32)

    fwd = jax.jit(functools.partial(critic_attention_forward, params, AGENT_NUM))
    value, h_out, c_out = fwd(node_inputs, edge_inputs, budget_inputs,
                              current_index, lstm_h, lstm_c, pos_encoding)
    jax.block_until_ready((value, h_out, c_out))

    assert value.shape == (B, 1, 1)
    assert h_out.shape == (B, 1, D) and c_out.shape == (B, 1, D)
    assert bool(jnp.all(jnp.isfinite(value)))
    assert bool(jnp.all(jnp.isfinite(h_out))) and bool(jnp.all(jnp.isfinite(c_out)))
    print("KERNEL_OK")
</pallas_src>

<mosaic_0001>
module attributes {stable_mosaic.version = 11 : i64} {
  func.func @kernel(%arg0: i32, %arg1: memref<2xi32, #tpu.memory_space<smem>>, %arg2: memref<32x4xf32, #tpu.memory_space<vmem>>, %arg3: memref<32x32xf32, #tpu.memory_space<vmem>>, %arg4: memref<32x1xf32, #tpu.memory_space<vmem>>, %arg5: memref<2x32xf32, #tpu.memory_space<vmem>>, %arg6: memref<2x32xf32, #tpu.memory_space<vmem>>, %arg7: memref<32x1xf32, #tpu.memory_space<vmem>>, %arg8: memref<128x32xf32, #tpu.memory_space<vmem>>, %arg9: memref<128x128xf32, #tpu.memory_space<vmem>>, %arg10: memref<2x32xf32, #tpu.memory_space<vmem>>, %arg11: memref<4x32xf32, #tpu.memory_space<vmem>>, %arg12: memref<1x32xf32, #tpu.memory_space<vmem>>, %arg13: memref<4x32xf32, #tpu.memory_space<vmem>>, %arg14: memref<1x32xf32, #tpu.memory_space<vmem>>, %arg15: memref<32x32xf32, #tpu.memory_space<vmem>>, %arg16: memref<1x32xf32, #tpu.memory_space<vmem>>, %arg17: memref<1x32xf32, #tpu.memory_space<vmem>>, %arg18: memref<1x32xf32, #tpu.memory_space<vmem>>, %arg19: memref<32x32xf32, #tpu.memory_space<vmem>>, %arg20: memref<32x32xf32, #tpu.memory_space<vmem>>, %arg21: memref<32x32xf32, #tpu.memory_space<vmem>>, %arg22: memref<32x32xf32, #tpu.memory_space<vmem>>, %arg23: memref<1x32xf32, #tpu.memory_space<vmem>>, %arg24: memref<1x32xf32, #tpu.memory_space<vmem>>, %arg25: memref<32x512xf32, #tpu.memory_space<vmem>>, %arg26: memref<1x512xf32, #tpu.memory_space<vmem>>, %arg27: memref<512x32xf32, #tpu.memory_space<vmem>>, %arg28: memref<1x32xf32, #tpu.memory_space<vmem>>, %arg29: memref<1x32xf32, #tpu.memory_space<vmem>>, %arg30: memref<1x32xf32, #tpu.memory_space<vmem>>, %arg31: memref<32x32xf32, #tpu.memory_space<vmem>>, %arg32: memref<32x32xf32, #tpu.memory_space<vmem>>, %arg33: memref<32x32xf32, #tpu.memory_space<vmem>>, %arg34: memref<32x32xf32, #tpu.memory_space<vmem>>, %arg35: memref<1x32xf32, #tpu.memory_space<vmem>>, %arg36: memref<1x32xf32, #tpu.memory_space<vmem>>, %arg37: memref<32x512xf32, #tpu.memory_space<vmem>>, %arg38: memref<1x512xf32, #tpu.memory_space<vmem>>, %arg39: memref<512x32xf32, #tpu.memory_space<vmem>>, %arg40: memref<1x32xf32, #tpu.memory_space<vmem>>, %arg41: memref<32x32xf32, #tpu.memory_space<vmem>>, %arg42: memref<1x32xf32, #tpu.memory_space<vmem>>, %arg43: memref<1x32xf32, #tpu.memory_space<vmem>>, %arg44: memref<32x128xf32, #tpu.memory_space<vmem>>, %arg45: memref<32x128xf32, #tpu.memory_space<vmem>>, %arg46: memref<1x128xf32, #tpu.memory_space<vmem>>, %arg47: memref<32x32xf32, #tpu.memory_space<vmem>>, %arg48: memref<1x32xf32, #tpu.memory_space<vmem>>, %arg49: memref<32x32xf32, #tpu.memory_space<vmem>>, %arg50: memref<1x32xf32, #tpu.memory_space<vmem>>, %arg51: memref<1x32xf32, #tpu.memory_space<vmem>>, %arg52: memref<1x1xf32, #tpu.memory_space<vmem>>, %arg53: memref<2x1xf32, #tpu.memory_space<vmem>>, %arg54: memref<2x32xf32, #tpu.memory_space<vmem>>, %arg55: memref<2x32xf32, #tpu.memory_space<vmem>>, %arg56: memref<32x32xf32, #tpu.memory_space<vmem>>) attributes {dimension_semantics = [#tpu.dimension_semantics<arbitrary>], iteration_bounds = array<i64: 1>, scalar_prefetch = 1 : i64, scratch_operands = 1 : i64, tpu.core_type = #tpu.core_type<tc>, window_params = [{pipeline_mode = #tpu.pipeline_mode<synchronous>, transform_indices = @transform_0, window_bounds = array<i64: 32, 4>}, {pipeline_mode = #tpu.pipeline_mode<synchronous>, transform_indices = @transform_1, window_bounds = array<i64: 32, 32>}, {pipeline_mode = #tpu.pipeline_mode<synchronous>, transform_indices = @transform_2, window_bounds = array<i64: 32, 1>}, {pipeline_mode = #tpu.pipeline_mode<synchronous>, transform_indices = @transform_3, window_bounds = array<i64: 2, 32>}, {pipeline_mode = #tpu.pipeline_mode<synchronous>, transform_indices = @transform_4, window_bounds = array<i64: 2, 32>}, {pipeline_mode = #tpu.pipeline_mode<synchronous>, transform_indices = @transform_5, window_bounds = array<i64: 32, 1>}, {pipeline_mode = #tpu.pipeline_mode<synchronous>, transform_indices = @transform_6, window_bounds = array<i64: 128, 32>}, {pipeline_mode = #tpu.pipeline_mode<synchronous>, transform_indices = @transform_7, window_bounds = array<i64: 128, 128>}, {pipeline_mode = #tpu.pipeline_mode<synchronous>, transform_indices = @transform_8, window_bounds = array<i64: 2, 32>}, {pipeline_mode = #tpu.pipeline_mode<synchronous>, transform_indices = @transform_9, window_bounds = array<i64: 4, 32>}, {pipeline_mode = #tpu.pipeline_mode<synchronous>, transform_indices = @transform_10, window_bounds = array<i64: 1, 32>}, {pipeline_mode = #tpu.pipeline_mode<synchronous>, transform_indices = @transform_11, window_bounds = array<i64: 4, 32>}, {pipeline_mode = #tpu.pipeline_mode<synchronous>, transform_indices = @transform_12, window_bounds = array<i64: 1, 32>}, {pipeline_mode = #tpu.pipeline_mode<synchronous>, transform_indices = @transform_13, window_bounds = array<i64: 32, 32>}, {pipeline_mode = #tpu.pipeline_mode<synchronous>, transform_indices = @transform_14, window_bounds = array<i64: 1, 32>}, {pipeline_mode = #tpu.pipeline_mode<synchronous>, transform_indices = @transform_15, window_bounds = array<i64: 1, 32>}, {pipeline_mode = #tpu.pipeline_mode<synchronous>, transform_indices = @transform_16, window_bounds = array<i64: 1, 32>}, {pipeline_mode = #tpu.pipeline_mode<synchronous>, transform_indices = @transform_17, window_bounds = array<i64: 32, 32>}, {pipeline_mode = #tpu.pipeline_mode<synchronous>, transform_indices = @transform_18, window_bounds = array<i64: 32, 32>}, {pipeline_mode = #tpu.pipeline_mode<synchronous>, transform_indices = @transform_19, window_bounds = array<i64: 32, 32>}, {pipeline_mode = #tpu.pipeline_mode<synchronous>, transform_indices = @transform_20, window_bounds = array<i64: 32, 32>}, {pipeline_mode = #tpu.pipeline_mode<synchronous>, transform_indices = @transform_21, window_bounds = array<i64: 1, 32>}, {pipeline_mode = #tpu.pipeline_mode<synchronous>, transform_indices = @transform_22, window_bounds = array<i64: 1, 32>}, {pipeline_mode = #tpu.pipeline_mode<synchronous>, transform_indices = @transform_23, window_bounds = array<i64: 32, 512>}, {pipeline_mode = #tpu.pipeline_mode<synchronous>, transform_indices = @transform_24, window_bounds = array<i64: 1, 512>}, {pipeline_mode = #tpu.pipeline_mode<synchronous>, transform_indices = @transform_25, window_bounds = array<i64: 512, 32>}, {pipeline_mode = #tpu.pipeline_mode<synchronous>, transform_indices = @transform_26, window_bounds = array<i64: 1, 32>}, {pipeline_mode = #tpu.pipeline_mode<synchronous>, transform_indices = @transform_27, window_bounds = array<i64: 1, 32>}, {pipeline_mode = #tpu.pipeline_mode<synchronous>, transform_indices = @transform_28, window_bounds = array<i64: 1, 32>}, {pipeline_mode = #tpu.pipeline_mode<synchronous>, transform_indices = @transform_29, window_bounds = array<i64: 32, 32>}, {pipeline_mode = #tpu.pipeline_mode<synchronous>, transform_indices = @transform_30, window_bounds = array<i64: 32, 32>}, {pipeline_mode = #tpu.pipeline_mode<synchronous>, transform_indices = @transform_31, window_bounds = array<i64: 32, 32>}, {pipeline_mode = #tpu.pipeline_mode<synchronous>, transform_indices = @transform_32, window_bounds = array<i64: 32, 32>}, {pipeline_mode = #tpu.pipeline_mode<synchronous>, transform_indices = @transform_33, window_bounds = array<i64: 1, 32>}, {pipeline_mode = #tpu.pipeline_mode<synchronous>, transform_indices = @transform_34, window_bounds = array<i64: 1, 32>}, {pipeline_mode = #tpu.pipeline_mode<synchronous>, transform_indices = @transform_35, window_bounds = array<i64: 32, 512>}, {pipeline_mode = #tpu.pipeline_mode<synchronous>, transform_indices = @transform_36, window_bounds = array<i64: 1, 512>}, {pipeline_mode = #tpu.pipeline_mode<synchronous>, transform_indices = @transform_37, window_bounds = array<i64: 512, 32>}, {pipeline_mode = #tpu.pipeline_mode<synchronous>, transform_indices = @transform_38, window_bounds = array<i64: 1, 32>}, {pipeline_mode = #tpu.pipeline_mode<synchronous>, transform_indices = @transform_39, window_bounds = array<i64: 32, 32>}, {pipeline_mode = #tpu.pipeline_mode<synchronous>, transform_indices = @transform_40, window_bounds = array<i64: 1, 32>}, {pipeline_mode = #tpu.pipeline_mode<synchronous>, transform_indices = @transform_41, window_bounds = array<i64: 1, 32>}, {pipeline_mode = #tpu.pipeline_mode<synchronous>, transform_indices = @transform_42, window_bounds = array<i64: 32, 128>}, {pipeline_mode = #tpu.pipeline_mode<synchronous>, transform_indices = @transform_43, window_bounds = array<i64: 32, 128>}, {pipeline_mode = #tpu.pipeline_mode<synchronous>, transform_indices = @transform_44, window_bounds = array<i64: 1, 128>}, {pipeline_mode = #tpu.pipeline_mode<synchronous>, transform_indices = @transform_45, window_bounds = array<i64: 32, 32>}, {pipeline_mode = #tpu.pipeline_mode<synchronous>, transform_indices = @transform_46, window_bounds = array<i64: 1, 32>}, {pipeline_mode = #tpu.pipeline_mode<synchronous>, transform_indices = @transform_47, window_bounds = array<i64: 32, 32>}, {pipeline_mode = #tpu.pipeline_mode<synchronous>, transform_indices = @transform_48, window_bounds = array<i64: 1, 32>}, {pipeline_mode = #tpu.pipeline_mode<synchronous>, transform_indices = @transform_49, window_bounds = array<i64: 1, 32>}, {pipeline_mode = #tpu.pipeline_mode<synchronous>, transform_indices = @transform_50, window_bounds = array<i64: 1, 1>}, {pipeline_mode = #tpu.pipeline_mode<synchronous>, transform_indices = @transform_51, window_bounds = array<i64: 2, 1>}, {pipeline_mode = #tpu.pipeline_mode<synchronous>, transform_indices = @transform_52, window_bounds = array<i64: 2, 32>}, {pipeline_mode = #tpu.pipeline_mode<synchronous>, transform_indices = @transform_53, window_bounds = array<i64: 2, 32>}]} {
    %c0 = arith.constant 0 : index
    %c0_0 = arith.constant 0 : index
    %0 = vector.load %arg8[%c0, %c0_0] : memref<128x32xf32, #tpu.memory_space<vmem>>, vector<128x32xf32>
    %c0_1 = arith.constant 0 : index
    %c0_2 = arith.constant 0 : index
    %1 = vector.load %arg9[%c0_1, %c0_2] : memref<128x128xf32, #tpu.memory_space<vmem>>, vector<128x128xf32>
    %c0_3 = arith.constant 0 : index
    %c0_4 = arith.constant 0 : index
    %2 = vector.load %arg7[%c0_3, %c0_4] : memref<32x1xf32, #tpu.memory_space<vmem>>, vector<32x1xf32>
    %c0_5 = arith.constant 0 : index
    %c0_6 = arith.constant 0 : index
    %3 = vector.load %arg2[%c0_5, %c0_6] : memref<32x4xf32, #tpu.memory_space<vmem>>, vector<32x4xf32>
    %c0_7 = arith.constant 0 : index
    %c0_8 = arith.constant 0 : index
    %4 = vector.load %arg11[%c0_7, %c0_8] : memref<4x32xf32, #tpu.memory_space<vmem>>, vector<4x32xf32>
    %cst = arith.constant dense<0.000000e+00> : vector<32x32xf32>
    %5 = tpu.matmul %3, %4, %cst {dimension_numbers = #tpu.dot_dimension_numbers<[1], [0], [0], [1], [0, 0, 1, 1], [], []>} : vector<32x4xf32>, vector<4x32xf32>, vector<32x32xf32> -> vector<32x32xf32>
    %c0_9 = arith.constant 0 : index
    %c0_10 = arith.constant 0 : index
    %6 = vector.load %arg12[%c0_9, %c0_10] : memref<1x32xf32, #tpu.memory_space<vmem>>, vector<1x32xf32>
    %7 = vector.broadcast %6 : vector<1x32xf32> to vector<32x32xf32>
    %8 = arith.addf %5, %7 : vector<32x32xf32>
    %c0_11 = arith.constant 0 : index
    %c0_12 = arith.constant 0 : index
    %9 = vector.load %arg13[%c0_11, %c0_12] : memref<4x32xf32, #tpu.memory_space<vmem>>, vector<4x32xf32>
    %cst_13 = arith.constant dense<0.000000e+00> : vector<32x32xf32>
    %10 = tpu.matmul %3, %9, %cst_13 {dimension_numbers = #tpu.dot_dimension_numbers<[1], [0], [0], [1], [0, 0, 1, 1], [], []>} : vector<32x4xf32>, vector<4x32xf32>, vector<32x32xf32> -> vector<32x32xf32>
    %c0_14 = arith.constant 0 : index
    %c0_15 = arith.constant 0 : index
    %11 = vector.load %arg14[%c0_14, %c0_15] : memref<1x32xf32, #tpu.memory_space<vmem>>, vector<1x32xf32>
    %12 = vector.broadcast %11 : vector<1x32xf32> to vector<32x32xf32>
    %13 = arith.addf %10, %12 : vector<32x32xf32>
    %14 = arith.subf %8, %13 : vector<32x32xf32>
    %15 = vector.broadcast %2 : vector<32x1xf32> to vector<32x32xf32>
    %16 = arith.mulf %15, %14 : vector<32x32xf32>
    %17 = arith.addf %13, %16 : vector<32x32xf32>
    %c0_16 = arith.constant 0 : index
    %c0_17 = arith.constant 0 : index
    %18 = vector.load %arg3[%c0_16, %c0_17] : memref<32x32xf32, #tpu.memory_space<vmem>>, vector<32x32xf32>
    %c0_18 = arith.constant 0 : index
    %c0_19 = arith.constant 0 : index
    %19 = vector.load %arg15[%c0_18, %c0_19] : memref<32x32xf32, #tpu.memory_space<vmem>>, vector<32x32xf32>
    %cst_20 = arith.constant dense<0.000000e+00> : vector<32x32xf32>
    %20 = tpu.matmul %18, %19, %cst_20 {dimension_numbers = #tpu.dot_dimension_numbers<[1], [0], [0], [1], [0, 0, 1, 1], [], []>} : vector<32x32xf32>, vector<32x32xf32>, vector<32x32xf32> -> vector<32x32xf32>
    %21 = arith.addf %17, %20 : vector<32x32xf32>
    %c0_21 = arith.constant 0 : index
    %c0_22 = arith.constant 0 : index
    %22 = vector.load %arg16[%c0_21, %c0_22] : memref<1x32xf32, #tpu.memory_space<vmem>>, vector<1x32xf32>
    %23 = vector.broadcast %22 : vector<1x32xf32> to vector<32x32xf32>
    %24 = arith.addf %21, %23 : vector<32x32xf32>
    %cst_23 = arith.constant dense<0.000000e+00> : vector<32xf32>
    %25 = vector.multi_reduction <add>, %24, %cst_23 [1] : vector<32x32xf32> to vector<32xf32>
    %26 = vector.shape_cast %25 : vector<32xf32> to vector<32x1xf32>
    %cst_24 = arith.constant 3.200000e+01 : f32
    %27 = vector.broadcast %cst_24 : f32 to vector<32x1xf32>
    %28 = arith.divf %26, %27 : vector<32x1xf32>
    %29 = arith.mulf %24, %24 : vector<32x32xf32>
    %cst_25 = arith.constant dense<0.000000e+00> : vector<32xf32>
    %30 = vector.multi_reduction <add>, %29, %cst_25 [1] : vector<32x32xf32> to vector<32xf32>
    %31 = vector.shape_cast %30 : vector<32xf32> to vector<32x1xf32>
    %cst_26 = arith.constant 3.200000e+01 : f32
    %32 = vector.broadcast %cst_26 : f32 to vector<32x1xf32>
    %33 = arith.divf %31, %32 : vector<32x1xf32>
    %34 = arith.mulf %28, %28 : vector<32x1xf32>
    %35 = arith.subf %33, %34 : vector<32x1xf32>
    %36 = vector.broadcast %28 : vector<32x1xf32> to vector<32x32xf32>
    %37 = arith.subf %24, %36 : vector<32x32xf32>
    %cst_27 = arith.constant 9.99999974E-6 : f32
    %38 = vector.broadcast %cst_27 : f32 to vector<32x1xf32>
    %39 = arith.addf %35, %38 : vector<32x1xf32>
    %40 = math.rsqrt %39 : vector<32x1xf32>
    %41 = vector.broadcast %40 : vector<32x1xf32> to vector<32x32xf32>
    %42 = arith.mulf %37, %41 : vector<32x32xf32>
    %c0_28 = arith.constant 0 : index
    %c0_29 = arith.constant 0 : index
    %43 = vector.load %arg17[%c0_28, %c0_29] : memref<1x32xf32, #tpu.memory_space<vmem>>, vector<1x32xf32>
    %44 = vector.broadcast %43 : vector<1x32xf32> to vector<32x32xf32>
    %45 = arith.mulf %42, %44 : vector<32x32xf32>
    %c0_30 = arith.constant 0 : index
    %c0_31 = arith.constant 0 : index
    %46 = vector.load %arg18[%c0_30, %c0_31] : memref<1x32xf32, #tpu.memory_space<vmem>>, vector<1x32xf32>
    %47 = vector.broadcast %46 : vector<1x32xf32> to vector<32x32xf32>
    %48 = arith.addf %45, %47 : vector<32x32xf32>
    %c0_32 = arith.constant 0 : index
    %c0_33 = arith.constant 0 : index
    %49 = vector.load %arg19[%c0_32, %c0_33] : memref<32x32xf32, #tpu.memory_space<vmem>>, vector<32x32xf32>
    %cst_34 = arith.constant dense<0.000000e+00> : vector<32x32xf32>
    %50 = tpu.matmul %48, %49, %cst_34 {dimension_numbers = #tpu.dot_dimension_numbers<[1], [0], [0], [1], [0, 0, 1, 1], [], []>} : vector<32x32xf32>, vector<32x32xf32>, vector<32x32xf32> -> vector<32x32xf32>
    %c0_35 = arith.constant 0 : index
    %c0_36 = arith.constant 0 : index
    %51 = vector.load %arg20[%c0_35, %c0_36] : memref<32x32xf32, #tpu.memory_space<vmem>>, vector<32x32xf32>
    %cst_37 = arith.constant dense<0.000000e+00> : vector<32x32xf32>
    %52 = tpu.matmul %48, %51, %cst_37 {dimension_numbers = #tpu.dot_dimension_numbers<[1], [0], [0], [1], [0, 0, 1, 1], [], []>} : vector<32x32xf32>, vector<32x32xf32>, vector<32x32xf32> -> vector<32x32xf32>
    %c0_38 = arith.constant 0 : index
    %c0_39 = arith.constant 0 : index
    %53 = vector.load %arg21[%c0_38, %c0_39] : memref<32x32xf32, #tpu.memory_space<vmem>>, vector<32x32xf32>
    %cst_40 = arith.constant dense<0.000000e+00> : vector<32x32xf32>
    %54 = tpu.matmul %48, %53, %cst_40 {dimension_numbers = #tpu.dot_dimension_numbers<[1], [0], [0], [1], [0, 0, 1, 1], [], []>} : vector<32x32xf32>, vector<32x32xf32>, vector<32x32xf32> -> vector<32x32xf32>
    %55 = vector.extract_strided_slice %50 {offsets = [0, 0], sizes = [16, 32], strides = [1, 1]} : vector<32x32xf32> to vector<16x32xf32>
    %56 = vector.extract_strided_slice %52 {offsets = [0, 0], sizes = [16, 32], strides = [1, 1]} : vector<32x32xf32> to vector<16x32xf32>
    %57 = vector.extract_strided_slice %54 {offsets = [0, 0], sizes = [16, 32], strides = [1, 1]} : vector<32x32xf32> to vector<16x32xf32>
    %58 = tpu.concatenate %56, %56, %56, %56, %56, %56, %56, %56 in 0 : vector<16x32xf32>, vector<16x32xf32>, vector<16x32xf32>, vector<16x32xf32>, vector<16x32xf32>, vector<16x32xf32>, vector<16x32xf32>, vector<16x32xf32> -> vector<128x32xf32>
    %59 = arith.mulf %58, %0 : vector<128x32xf32>
    %60 = tpu.concatenate %57, %57, %57, %57, %57, %57, %57, %57 in 0 : vector<16x32xf32>, vector<16x32xf32>, vector<16x32xf32>, vector<16x32xf32>, vector<16x32xf32>, vector<16x32xf32>, vector<16x32xf32>, vector<16x32xf32> -> vector<128x32xf32>
    %61 = arith.mulf %60, %0 : vector<128x32xf32>
    %cst_41 = arith.constant dense<0.000000e+00> : vector<16x128xf32>
    %62 = tpu.matmul %55, %59, %cst_41 {dimension_numbers = #tpu.dot_dimension_numbers<[1], [1], [0], [0], [0, 0, 1, 0], [], []>} : vector<16x32xf32>, vector<128x32xf32>, vector<16x128xf32> -> vector<16x128xf32>
    %cst_42 = arith.constant 5.000000e-01 : f32
    %63 = vector.broadcast %cst_42 : f32 to vector<16x128xf32>
    %64 = arith.mulf %62, %63 : vector<16x128xf32>
    %cst_43 = arith.constant dense<0xFF800000> : vector<16xf32>
    %65 = vector.multi_reduction <maximumf>, %64, %cst_43 [1] : vector<16x128xf32> to vector<16xf32>
    %66 = vector.shape_cast %65 : vector<16xf32> to vector<16x1xf32>
    %67 = vector.broadcast %66 : vector<16x1xf32> to vector<16x128xf32>
    %68 = arith.subf %64, %67 : vector<16x128xf32>
    %69 = math.exp %68 : vector<16x128xf32>
    %cst_44 = arith.constant dense<0.000000e+00> : vector<16x128xf32>
    %70 = tpu.matmul %69, %1, %cst_44 {dimension_numbers = #tpu.dot_dimension_numbers<[1], [0], [0], [1], [0, 0, 1, 1], [], []>} : vector<16x128xf32>, vector<128x128xf32>, vector<16x128xf32> -> vector<16x128xf32>
    %71 = tpu.reciprocal %70 {approx = true} : vector<16x128xf32> -> vector<16x128xf32>
    %72 = arith.mulf %69, %71 : vector<16x128xf32>
    %cst_45 = arith.constant dense<0.000000e+00> : vector<16x32xf32>
    %73 = tpu.matmul %72, %61, %cst_45 {dimension_numbers = #tpu.dot_dimension_numbers<[1], [0], [0], [1], [0, 0, 1, 1], [], []>} : vector<16x128xf32>, vector<128x32xf32>, vector<16x32xf32> -> vector<16x32xf32>
    %74 = vector.extract_strided_slice %50 {offsets = [16, 0], sizes = [16, 32], strides = [1, 1]} : vector<32x32xf32> to vector<16x32xf32>
    %75 = vector.extract_strided_slice %52 {offsets = [16, 0], sizes = [16, 32], strides = [1, 1]} : vector<32x32xf32> to vector<16x32xf32>
    %76 = vector.extract_strided_slice %54 {offsets = [16, 0], sizes = [16, 32], strides = [1, 1]} : vector<32x32xf32> to vector<16x32xf32>
    %77 = tpu.concatenate %75, %75, %75, %75, %75, %75, %75, %75 in 0 : vector<16x32xf32>, vector<16x32xf32>, vector<16x32xf32>, vector<16x32xf32>, vector<16x32xf32>, vector<16x32xf32>, vector<16x32xf32>, vector<16x32xf32> -> vector<128x32xf32>
    %78 = arith.mulf %77, %0 : vector<128x32xf32>
    %79 = tpu.concatenate %76, %76, %76, %76, %76, %76, %76, %76 in 0 : vector<16x32xf32>, vector<16x32xf32>, vector<16x32xf32>, vector<16x32xf32>, vector<16x32xf32>, vector<16x32xf32>, vector<16x32xf32>, vector<16x32xf32> -> vector<128x32xf32>
    %80 = arith.mulf %79, %0 : vector<128x32xf32>
    %cst_46 = arith.constant dense<0.000000e+00> : vector<16x128xf32>
    %81 = tpu.matmul %74, %78, %cst_46 {dimension_numbers = #tpu.dot_dimension_numbers<[1], [1], [0], [0], [0, 0, 1, 0], [], []>} : vector<16x32xf32>, vector<128x32xf32>, vector<16x128xf32> -> vector<16x128xf32>
    %cst_47 = arith.constant 5.000000e-01 : f32
    %82 = vector.broadcast %cst_47 : f32 to vector<16x128xf32>
    %83 = arith.mulf %81, %82 : vector<16x128xf32>
    %cst_48 = arith.constant dense<0xFF800000> : vector<16xf32>
    %84 = vector.multi_reduction <maximumf>, %83, %cst_48 [1] : vector<16x128xf32> to vector<16xf32>
    %85 = vector.shape_cast %84 : vector<16xf32> to vector<16x1xf32>
    %86 = vector.broadcast %85 : vector<16x1xf32> to vector<16x128xf32>
    %87 = arith.subf %83, %86 : vector<16x128xf32>
    %88 = math.exp %87 : vector<16x128xf32>
    %cst_49 = arith.constant dense<0.000000e+00> : vector<16x128xf32>
    %89 = tpu.matmul %88, %1, %cst_49 {dimension_numbers = #tpu.dot_dimension_numbers<[1], [0], [0], [1], [0, 0, 1, 1], [], []>} : vector<16x128xf32>, vector<128x128xf32>, vector<16x128xf32> -> vector<16x128xf32>
    %90 = tpu.reciprocal %89 {approx = true} : vector<16x128xf32> -> vector<16x128xf32>
    %91 = arith.mulf %88, %90 : vector<16x128xf32>
    %cst_50 = arith.constant dense<0.000000e+00> : vector<16x32xf32>
    %92 = tpu.matmul %91, %80, %cst_50 {dimension_numbers = #tpu.dot_dimension_numbers<[1], [0], [0], [1], [0, 0, 1, 1], [], []>} : vector<16x128xf32>, vector<128x32xf32>, vector<16x32xf32> -> vector<16x32xf32>
    %93 = tpu.concatenate %73, %92 in 0 : vector<16x32xf32>, vector<16x32xf32> -> vector<32x32xf32>
    %c0_51 = arith.constant 0 : index
    %c0_52 = arith.constant 0 : index
    %94 = vector.load %arg22[%c0_51, %c0_52] : memref<32x32xf32, #tpu.memory_space<vmem>>, vector<32x32xf32>
    %cst_53 = arith.constant dense<0.000000e+00> : vector<32x32xf32>
    %95 = tpu.matmul %93, %94, %cst_53 {dimension_numbers = #tpu.dot_dimension_numbers<[1], [0], [0], [1], [0, 0, 1, 1], [], []>} : vector<32x32xf32>, vector<32x32xf32>, vector<32x32xf32> -> vector<32x32xf32>
    %96 = arith.addf %24, %95 : vector<32x32xf32>
    %cst_54 = arith.constant dense<0.000000e+00> : vector<32xf32>
    %97 = vector.multi_reduction <add>, %96, %cst_54 [1] : vector<32x32xf32> to vector<32xf32>
    %98 = vector.shape_cast %97 : vector<32xf32> to vector<32x1xf32>
    %cst_55 = arith.constant 3.200000e+01 : f32
    %99 = vector.broadcast %cst_55 : f32 to vector<32x1xf32>
    %100 = arith.divf %98, %99 : vector<32x1xf32>
    %101 = arith.mulf %96, %96 : vector<32x32xf32>
    %cst_56 = arith.constant dense<0.000000e+00> : vector<32xf32>
    %102 = vector.multi_reduction <add>, %101, %cst_56 [1] : vector<32x32xf32> to vector<32xf32>
    %103 = vector.shape_cast %102 : vector<32xf32> to vector<32x1xf32>
    %cst_57 = arith.constant 3.200000e+01 : f32
    %104 = vector.broadcast %cst_57 : f32 to vector<32x1xf32>
    %105 = arith.divf %103, %104 : vector<32x1xf32>
    %106 = arith.mulf %100, %100 : vector<32x1xf32>
    %107 = arith.subf %105, %106 : vector<32x1xf32>
    %108 = vector.broadcast %100 : vector<32x1xf32> to vector<32x32xf32>
    %109 = arith.subf %96, %108 : vector<32x32xf32>
    %cst_58 = arith.constant 9.99999974E-6 : f32
    %110 = vector.broadcast %cst_58 : f32 to vector<32x1xf32>
    %111 = arith.addf %107, %110 : vector<32x1xf32>
    %112 = math.rsqrt %111 : vector<32x1xf32>
    %113 = vector.broadcast %112 : vector<32x1xf32> to vector<32x32xf32>
    %114 = arith.mulf %109, %113 : vector<32x32xf32>
    %c0_59 = arith.constant 0 : index
    %c0_60 = arith.constant 0 : index
    %115 = vector.load %arg23[%c0_59, %c0_60] : memref<1x32xf32, #tpu.memory_space<vmem>>, vector<1x32xf32>
    %116 = vector.broadcast %115 : vector<1x32xf32> to vector<32x32xf32>
    %117 = arith.mulf %114, %116 : vector<32x32xf32>
    %c0_61 = arith.constant 0 : index
    %c0_62 = arith.constant 0 : index
    %118 = vector.load %arg24[%c0_61, %c0_62] : memref<1x32xf32, #tpu.memory_space<vmem>>, vector<1x32xf32>
    %119 = vector.broadcast %118 : vector<1x32xf32> to vector<32x32xf32>
    %120 = arith.addf %117, %119 : vector<32x32xf32>
    %c0_63 = arith.constant 0 : index
    %c0_64 = arith.constant 0 : index
    %121 = vector.load %arg25[%c0_63, %c0_64] : memref<32x512xf32, #tpu.memory_space<vmem>>, vector<32x512xf32>
    %cst_65 = arith.constant dense<0.000000e+00> : vector<32x512xf32>
    %122 = tpu.matmul %120, %121, %cst_65 {dimension_numbers = #tpu.dot_dimension_numbers<[1], [0], [0], [1], [0, 0, 1, 1], [], []>} : vector<32x32xf32>, vector<32x512xf32>, vector<32x512xf32> -> vector<32x512xf32>
    %c0_66 = arith.constant 0 : index
    %c0_67 = arith.constant 0 : index
    %123 = vector.load %arg26[%c0_66, %c0_67] : memref<1x512xf32, #tpu.memory_space<vmem>>, vector<1x512xf32>
    %124 = vector.broadcast %123 : vector<1x512xf32> to vector<32x512xf32>
    %125 = arith.addf %122, %124 : vector<32x512xf32>
    %cst_68 = arith.constant 0.000000e+00 : f32
    %126 = vector.broadcast %cst_68 : f32 to vector<32x512xf32>
    %127 = arith.maximumf %125, %126 : vector<32x512xf32>
    %c0_69 = arith.constant 0 : index
    %c0_70 = arith.constant 0 : index
    %128 = vector.load %arg27[%c0_69, %c0_70] : memref<512x32xf32, #tpu.memory_space<vmem>>, vector<512x32xf32>
    %cst_71 = arith.constant dense<0.000000e+00> : vector<32x32xf32>
    %129 = tpu.matmul %127, %128, %cst_71 {dimension_numbers = #tpu.dot_dimension_numbers<[1], [0], [0], [1], [0, 0, 1, 1], [], []>} : vector<32x512xf32>, vector<512x32xf32>, vector<32x32xf32> -> vector<32x32xf32>
    %c0_72 = arith.constant 0 : index
    %c0_73 = arith.constant 0 : index
    %130 = vector.load %arg28[%c0_72, %c0_73] : memref<1x32xf32, #tpu.memory_space<vmem>>, vector<1x32xf32>
    %131 = vector.broadcast %130 : vector<1x32xf32> to vector<32x32xf32>
    %132 = arith.addf %129, %131 : vector<32x32xf32>
    %133 = arith.addf %96, %132 : vector<32x32xf32>
    %cst_74 = arith.constant dense<0.000000e+00> : vector<32xf32>
    %134 = vector.multi_reduction <add>, %133, %cst_74 [1] : vector<32x32xf32> to vector<32xf32>
    %135 = vector.shape_cast %134 : vector<32xf32> to vector<32x1xf32>
    %cst_75 = arith.constant 3.200000e+01 : f32
    %136 = vector.broadcast %cst_75 : f32 to vector<32x1xf32>
    %137 = arith.divf %135, %136 : vector<32x1xf32>
    %138 = arith.mulf %133, %133 : vector<32x32xf32>
    %cst_76 = arith.constant dense<0.000000e+00> : vector<32xf32>
    %139 = vector.multi_reduction <add>, %138, %cst_76 [1] : vector<32x32xf32> to vector<32xf32>
    %140 = vector.shape_cast %139 : vector<32xf32> to vector<32x1xf32>
    %cst_77 = arith.constant 3.200000e+01 : f32
    %141 = vector.broadcast %cst_77 : f32 to vector<32x1xf32>
    %142 = arith.divf %140, %141 : vector<32x1xf32>
    %143 = arith.mulf %137, %137 : vector<32x1xf32>
    %144 = arith.subf %142, %143 : vector<32x1xf32>
    %145 = vector.broadcast %137 : vector<32x1xf32> to vector<32x32xf32>
    %146 = arith.subf %133, %145 : vector<32x32xf32>
    %cst_78 = arith.constant 9.99999974E-6 : f32
    %147 = vector.broadcast %cst_78 : f32 to vector<32x1xf32>
    %148 = arith.addf %144, %147 : vector<32x1xf32>
    %149 = math.rsqrt %148 : vector<32x1xf32>
    %150 = vector.broadcast %149 : vector<32x1xf32> to vector<32x32xf32>
    %151 = arith.mulf %146, %150 : vector<32x32xf32>
    %c0_79 = arith.constant 0 : index
    %c0_80 = arith.constant 0 : index
    %152 = vector.load %arg29[%c0_79, %c0_80] : memref<1x32xf32, #tpu.memory_space<vmem>>, vector<1x32xf32>
    %153 = vector.broadcast %152 : vector<1x32xf32> to vector<32x32xf32>
    %154 = arith.mulf %151, %153 : vector<32x32xf32>
    %c0_81 = arith.constant 0 : index
    %c0_82 = arith.constant 0 : index
    %155 = vector.load %arg30[%c0_81, %c0_82] : memref<1x32xf32, #tpu.memory_space<vmem>>, vector<1x32xf32>
    %156 = vector.broadcast %155 : vector<1x32xf32> to vector<32x32xf32>
    %157 = arith.addf %154, %156 : vector<32x32xf32>
    %c0_83 = arith.constant 0 : index
    %c0_84 = arith.constant 0 : index
    %158 = vector.load %arg31[%c0_83, %c0_84] : memref<32x32xf32, #tpu.memory_space<vmem>>, vector<32x32xf32>
    %cst_85 = arith.constant dense<0.000000e+00> : vector<32x32xf32>
    %159 = tpu.matmul %157, %158, %cst_85 {dimension_numbers = #tpu.dot_dimension_numbers<[1], [0], [0], [1], [0, 0, 1, 1], [], []>} : vector<32x32xf32>, vector<32x32xf32>, vector<32x32xf32> -> vector<32x32xf32>
    %c0_86 = arith.constant 0 : index
    %c0_87 = arith.constant 0 : index
    %160 = vector.load %arg32[%c0_86, %c0_87] : memref<32x32xf32, #tpu.memory_space<vmem>>, vector<32x32xf32>
    %cst_88 = arith.constant dense<0.000000e+00> : vector<32x32xf32>
    %161 = tpu.matmul %157, %160, %cst_88 {dimension_numbers = #tpu.dot_dimension_numbers<[1], [0], [0], [1], [0, 0, 1, 1], [], []>} : vector<32x32xf32>, vector<32x32xf32>, vector<32x32xf32> -> vector<32x32xf32>
    %c0_89 = arith.constant 0 : index
    %c0_90 = arith.constant 0 : index
    %162 = vector.load %arg33[%c0_89, %c0_90] : memref<32x32xf32, #tpu.memory_space<vmem>>, vector<32x32xf32>
    %cst_91 = arith.constant dense<0.000000e+00> : vector<32x32xf32>
    %163 = tpu.matmul %157, %162, %cst_91 {dimension_numbers = #tpu.dot_dimension_numbers<[1], [0], [0], [1], [0, 0, 1, 1], [], []>} : vector<32x32xf32>, vector<32x32xf32>, vector<32x32xf32> -> vector<32x32xf32>
    %164 = vector.extract_strided_slice %159 {offsets = [0, 0], sizes = [16, 32], strides = [1, 1]} : vector<32x32xf32> to vector<16x32xf32>
    %165 = vector.extract_strided_slice %161 {offsets = [0, 0], sizes = [16, 32], strides = [1, 1]} : vector<32x32xf32> to vector<16x32xf32>
    %166 = vector.extract_strided_slice %163 {offsets = [0, 0], sizes = [16, 32], strides = [1, 1]} : vector<32x32xf32> to vector<16x32xf32>
    %167 = tpu.concatenate %165, %165, %165, %165, %165, %165, %165, %165 in 0 : vector<16x32xf32>, vector<16x32xf32>, vector<16x32xf32>, vector<16x32xf32>, vector<16x32xf32>, vector<16x32xf32>, vector<16x32xf32>, vector<16x32xf32> -> vector<128x32xf32>
    %168 = arith.mulf %167, %0 : vector<128x32xf32>
    %169 = tpu.concatenate %166, %166, %166, %166, %166, %166, %166, %166 in 0 : vector<16x32xf32>, vector<16x32xf32>, vector<16x32xf32>, vector<16x32xf32>, vector<16x32xf32>, vector<16x32xf32>, vector<16x32xf32>, vector<16x32xf32> -> vector<128x32xf32>
    %170 = arith.mulf %169, %0 : vector<128x32xf32>
    %cst_92 = arith.constant dense<0.000000e+00> : vector<16x128xf32>
    %171 = tpu.matmul %164, %168, %cst_92 {dimension_numbers = #tpu.dot_dimension_numbers<[1], [1], [0], [0], [0, 0, 1, 0], [], []>} : vector<16x32xf32>, vector<128x32xf32>, vector<16x128xf32> -> vector<16x128xf32>
    %cst_93 = arith.constant 5.000000e-01 : f32
    %172 = vector.broadcast %cst_93 : f32 to vector<16x128xf32>
    %173 = arith.mulf %171, %172 : vector<16x128xf32>
    %cst_94 = arith.constant dense<0xFF800000> : vector<16xf32>
    %174 = vector.multi_reduction <maximumf>, %173, %cst_94 [1] : vector<16x128xf32> to vector<16xf32>
    %175 = vector.shape_cast %174 : vector<16xf32> to vector<16x1xf32>
    %176 = vector.broadcast %175 : vector<16x1xf32> to vector<16x128xf32>
    %177 = arith.subf %173, %176 : vector<16x128xf32>
    %178 = math.exp %177 : vector<16x128xf32>
    %cst_95 = arith.constant dense<0.000000e+00> : vector<16x128xf32>
    %179 = tpu.matmul %178, %1, %cst_95 {dimension_numbers = #tpu.dot_dimension_numbers<[1], [0], [0], [1], [0, 0, 1, 1], [], []>} : vector<16x128xf32>, vector<128x128xf32>, vector<16x128xf32> -> vector<16x128xf32>
    %180 = tpu.reciprocal %179 {approx = true} : vector<16x128xf32> -> vector<16x128xf32>
    %181 = arith.mulf %178, %180 : vector<16x128xf32>
    %cst_96 = arith.constant dense<0.000000e+00> : vector<16x32xf32>
    %182 = tpu.matmul %181, %170, %cst_96 {dimension_numbers = #tpu.dot_dimension_numbers<[1], [0], [0], [1], [0, 0, 1, 1], [], []>} : vector<16x128xf32>, vector<128x32xf32>, vector<16x32xf32> -> vector<16x32xf32>
    %183 = vector.extract_strided_slice %159 {offsets = [16, 0], sizes = [16, 32], strides = [1, 1]} : vector<32x32xf32> to vector<16x32xf32>
    %184 = vector.extract_strided_slice %161 {offsets = [16, 0], sizes = [16, 32], strides = [1, 1]} : vector<32x32xf32> to vector<16x32xf32>
    %185 = vector.extract_strided_slice %163 {offsets = [16, 0], sizes = [16, 32], strides = [1, 1]} : vector<32x32xf32> to vector<16x32xf32>
    %186 = tpu.concatenate %184, %184, %184, %184, %184, %184, %184, %184 in 0 : vector<16x32xf32>, vector<16x32xf32>, vector<16x32xf32>, vector<16x32xf32>, vector<16x32xf32>, vector<16x32xf32>, vector<16x32xf32>, vector<16x32xf32> -> vector<128x32xf32>
    %187 = arith.mulf %186, %0 : vector<128x32xf32>
    %188 = tpu.concatenate %185, %185, %185, %185, %185, %185, %185, %185 in 0 : vector<16x32xf32>, vector<16x32xf32>, vector<16x32xf32>, vector<16x32xf32>, vector<16x32xf32>, vector<16x32xf32>, vector<16x32xf32>, vector<16x32xf32> -> vector<128x32xf32>
    %189 = arith.mulf %188, %0 : vector<128x32xf32>
    %cst_97 = arith.constant dense<0.000000e+00> : vector<16x128xf32>
    %190 = tpu.matmul %183, %187, %cst_97 {dimension_numbers = #tpu.dot_dimension_numbers<[1], [1], [0], [0], [0, 0, 1, 0], [], []>} : vector<16x32xf32>, vector<128x32xf32>, vector<16x128xf32> -> vector<16x128xf32>
    %cst_98 = arith.constant 5.000000e-01 : f32
    %191 = vector.broadcast %cst_98 : f32 to vector<16x128xf32>
    %192 = arith.mulf %190, %191 : vector<16x128xf32>
    %cst_99 = arith.constant dense<0xFF800000> : vector<16xf32>
    %193 = vector.multi_reduction <maximumf>, %192, %cst_99 [1] : vector<16x128xf32> to vector<16xf32>
    %194 = vector.shape_cast %193 : vector<16xf32> to vector<16x1xf32>
    %195 = vector.broadcast %194 : vector<16x1xf32> to vector<16x128xf32>
    %196 = arith.subf %192, %195 : vector<16x128xf32>
    %197 = math.exp %196 : vector<16x128xf32>
    %cst_100 = arith.constant dense<0.000000e+00> : vector<16x128xf32>
    %198 = tpu.matmul %197, %1, %cst_100 {dimension_numbers = #tpu.dot_dimension_numbers<[1], [0], [0], [1], [0, 0, 1, 1], [], []>} : vector<16x128xf32>, vector<128x128xf32>, vector<16x128xf32> -> vector<16x128xf32>
    %199 = tpu.reciprocal %198 {approx = true} : vector<16x128xf32> -> vector<16x128xf32>
    %200 = arith.mulf %197, %199 : vector<16x128xf32>
    %cst_101 = arith.constant dense<0.000000e+00> : vector<16x32xf32>
    %201 = tpu.matmul %200, %189, %cst_101 {dimension_numbers = #tpu.dot_dimension_numbers<[1], [0], [0], [1], [0, 0, 1, 1], [], []>} : vector<16x128xf32>, vector<128x32xf32>, vector<16x32xf32> -> vector<16x32xf32>
    %202 = tpu.concatenate %182, %201 in 0 : vector<16x32xf32>, vector<16x32xf32> -> vector<32x32xf32>
    %c0_102 = arith.constant 0 : index
    %c0_103 = arith.constant 0 : index
    %203 = vector.load %arg34[%c0_102, %c0_103] : memref<32x32xf32, #tpu.memory_space<vmem>>, vector<32x32xf32>
    %cst_104 = arith.constant dense<0.000000e+00> : vector<32x32xf32>
    %204 = tpu.matmul %202, %203, %cst_104 {dimension_numbers = #tpu.dot_dimension_numbers<[1], [0], [0], [1], [0, 0, 1, 1], [], []>} : vector<32x32xf32>, vector<32x32xf32>, vector<32x32xf32> -> vector<32x32xf32>
    %205 = arith.addf %133, %204 : vector<32x32xf32>
    %cst_105 = arith.constant dense<0.000000e+00> : vector<32xf32>
    %206 = vector.multi_reduction <add>, %205, %cst_105 [1] : vector<32x32xf32> to vector<32xf32>
    %207 = vector.shape_cast %206 : vector<32xf32> to vector<32x1xf32>
    %cst_106 = arith.constant 3.200000e+01 : f32
    %208 = vector.broadcast %cst_106 : f32 to vector<32x1xf32>
    %209 = arith.divf %207, %208 : vector<32x1xf32>
    %210 = arith.mulf %205, %205 : vector<32x32xf32>
    %cst_107 = arith.constant dense<0.000000e+00> : vector<32xf32>
    %211 = vector.multi_reduction <add>, %210, %cst_107 [1] : vector<32x32xf32> to vector<32xf32>
    %212 = vector.shape_cast %211 : vector<32xf32> to vector<32x1xf32>
    %cst_108 = arith.constant 3.200000e+01 : f32
    %213 = vector.broadcast %cst_108 : f32 to vector<32x1xf32>
    %214 = arith.divf %212, %213 : vector<32x1xf32>
    %215 = arith.mulf %209, %209 : vector<32x1xf32>
    %216 = arith.subf %214, %215 : vector<32x1xf32>
    %217 = vector.broadcast %209 : vector<32x1xf32> to vector<32x32xf32>
    %218 = arith.subf %205, %217 : vector<32x32xf32>
    %cst_109 = arith.constant 9.99999974E-6 : f32
    %219 = vector.broadcast %cst_109 : f32 to vector<32x1xf32>
    %220 = arith.addf %216, %219 : vector<32x1xf32>
    %221 = math.rsqrt %220 : vector<32x1xf32>
    %222 = vector.broadcast %221 : vector<32x1xf32> to vector<32x32xf32>
    %223 = arith.mulf %218, %222 : vector<32x32xf32>
    %c0_110 = arith.constant 0 : index
    %c0_111 = arith.constant 0 : index
    %224 = vector.load %arg35[%c0_110, %c0_111] : memref<1x32xf32, #tpu.memory_space<vmem>>, vector<1x32xf32>
    %225 = vector.broadcast %224 : vector<1x32xf32> to vector<32x32xf32>
    %226 = arith.mulf %223, %225 : vector<32x32xf32>
    %c0_112 = arith.constant 0 : index
    %c0_113 = arith.constant 0 : index
    %227 = vector.load %arg36[%c0_112, %c0_113] : memref<1x32xf32, #tpu.memory_space<vmem>>, vector<1x32xf32>
    %228 = vector.broadcast %227 : vector<1x32xf32> to vector<32x32xf32>
    %229 = arith.addf %226, %228 : vector<32x32xf32>
    %c0_114 = arith.constant 0 : index
    %c0_115 = arith.constant 0 : index
    %230 = vector.load %arg37[%c0_114, %c0_115] : memref<32x512xf32, #tpu.memory_space<vmem>>, vector<32x512xf32>
    %cst_116 = arith.constant dense<0.000000e+00> : vector<32x512xf32>
    %231 = tpu.matmul %229, %230, %cst_116 {dimension_numbers = #tpu.dot_dimension_numbers<[1], [0], [0], [1], [0, 0, 1, 1], [], []>} : vector<32x32xf32>, vector<32x512xf32>, vector<32x512xf32> -> vector<32x512xf32>
    %c0_117 = arith.constant 0 : index
    %c0_118 = arith.constant 0 : index
    %232 = vector.load %arg38[%c0_117, %c0_118] : memref<1x512xf32, #tpu.memory_space<vmem>>, vector<1x512xf32>
    %233 = vector.broadcast %232 : vector<1x512xf32> to vector<32x512xf32>
    %234 = arith.addf %231, %233 : vector<32x512xf32>
    %cst_119 = arith.constant 0.000000e+00 : f32
    %235 = vector.broadcast %cst_119 : f32 to vector<32x512xf32>
    %236 = arith.maximumf %234, %235 : vector<32x512xf32>
    %c0_120 = arith.constant 0 : index
    %c0_121 = arith.constant 0 : index
    %237 = vector.load %arg39[%c0_120, %c0_121] : memref<512x32xf32, #tpu.memory_space<vmem>>, vector<512x32xf32>
    %cst_122 = arith.constant dense<0.000000e+00> : vector<32x32xf32>
    %238 = tpu.matmul %236, %237, %cst_122 {dimension_numbers = #tpu.dot_dimension_numbers<[1], [0], [0], [1], [0, 0, 1, 1], [], []>} : vector<32x512xf32>, vector<512x32xf32>, vector<32x32xf32> -> vector<32x32xf32>
    %c0_123 = arith.constant 0 : index
    %c0_124 = arith.constant 0 : index
    %239 = vector.load %arg40[%c0_123, %c0_124] : memref<1x32xf32, #tpu.memory_space<vmem>>, vector<1x32xf32>
    %240 = vector.broadcast %239 : vector<1x32xf32> to vector<32x32xf32>
    %241 = arith.addf %238, %240 : vector<32x32xf32>
    %242 = arith.addf %205, %241 : vector<32x32xf32>
    %c0_125 = arith.constant 0 : index
    %c0_126 = arith.constant 0 : index
    %243 = vector.load %arg41[%c0_125, %c0_126] : memref<32x32xf32, #tpu.memory_space<vmem>>, vector<32x32xf32>
    %cst_127 = arith.constant dense<0.000000e+00> : vector<32x32xf32>
    %244 = tpu.matmul %242, %243, %cst_127 {dimension_numbers = #tpu.dot_dimension_numbers<[1], [0], [0], [1], [0, 0, 1, 1], [], []>} : vector<32x32xf32>, vector<32x32xf32>, vector<32x32xf32> -> vector<32x32xf32>
    %c0_128 = arith.constant 0 : index
    %c0_129 = arith.constant 0 : index
    %245 = vector.load %arg4[%c0_128, %c0_129] : memref<32x1xf32, #tpu.memory_space<vmem>>, vector<32x1xf32>
    %c0_130 = arith.constant 0 : index
    %c0_131 = arith.constant 0 : index
    %246 = vector.load %arg42[%c0_130, %c0_131] : memref<1x32xf32, #tpu.memory_space<vmem>>, vector<1x32xf32>
    %247 = vector.broadcast %245 : vector<32x1xf32> to vector<32x32xf32>
    %248 = vector.broadcast %246 : vector<1x32xf32> to vector<32x32xf32>
    %249 = arith.mulf %247, %248 : vector<32x32xf32>
    %250 = arith.addf %244, %249 : vector<32x32xf32>
    %c0_132 = arith.constant 0 : index
    %c0_133 = arith.constant 0 : index
    %251 = vector.load %arg43[%c0_132, %c0_133] : memref<1x32xf32, #tpu.memory_space<vmem>>, vector<1x32xf32>
    %252 = vector.broadcast %251 : vector<1x32xf32> to vector<32x32xf32>
    %253 = arith.addf %250, %252 : vector<32x32xf32>
    %c0_134 = arith.constant 0 : index
    %c0_135 = arith.constant 0 : index
    %254 = vector.load %arg56[%c0_134, %c0_135] : memref<32x32xf32, #tpu.memory_space<vmem>>, vector<32x32xf32>
    tpu.vector_store %arg56[%c0_134, %c0_135], %253 {strides = array<i32>} : memref<32x32xf32, #tpu.memory_space<vmem>>, vector<32x32xf32>,
    %c0_136 = arith.constant 0 : index
    %255 = memref.load %arg1[%c0_136] : memref<2xi32, #tpu.memory_space<smem>>
    %c0_i32 = arith.constant 0 : i32
    %256 = arith.addi %255, %c0_i32 : i32
    %257 = arith.index_cast %256 : i32 to index
    %c0_137 = arith.constant 0 : index
    %258 = vector.load %arg56[%257, %c0_137] : memref<32x32xf32, #tpu.memory_space<vmem>>, vector<1x32xf32>
    %c1 = arith.constant 1 : index
    %259 = memref.load %arg1[%c1] : memref<2xi32, #tpu.memory_space<smem>>
    %c16_i32 = arith.constant 16 : i32
    %260 = arith.addi %259, %c16_i32 : i32
    %261 = arith.index_cast %260 : i32 to index
    %c0_138 = arith.constant 0 : index
    %262 = vector.load %arg56[%261, %c0_138] : memref<32x32xf32, #tpu.memory_space<vmem>>, vector<1x32xf32>
    %263 = tpu.concatenate %258, %262 in 0 : vector<1x32xf32>, vector<1x32xf32> -> vector<2x32xf32>
    %c0_139 = arith.constant 0 : index
    %c0_140 = arith.constant 0 : index
    %264 = vector.load %arg44[%c0_139, %c0_140] : memref<32x128xf32, #tpu.memory_space<vmem>>, vector<32x128xf32>
    %cst_141 = arith.constant dense<0.000000e+00> : vector<2x128xf32>
    %265 = tpu.matmul %263, %264, %cst_141 {dimension_numbers = #tpu.dot_dimension_numbers<[1], [0], [0], [1], [0, 0, 1, 1], [], []>} : vector<2x32xf32>, vector<32x128xf32>, vector<2x128xf32> -> vector<2x128xf32>
    %c0_142 = arith.constant 0 : index
    %c0_143 = arith.constant 0 : index
    %266 = vector.load %arg5[%c0_142, %c0_143] : memref<2x32xf32, #tpu.memory_space<vmem>>, vector<2x32xf32>
    %c0_144 = arith.constant 0 : index
    %c0_145 = arith.constant 0 : index
    %267 = vector.load %arg45[%c0_144, %c0_145] : memref<32x128xf32, #tpu.memory_space<vmem>>, vector<32x128xf32>
    %cst_146 = arith.constant dense<0.000000e+00> : vector<2x128xf32>
    %268 = tpu.matmul %266, %267, %cst_146 {dimension_numbers = #tpu.dot_dimension_numbers<[1], [0], [0], [1], [0, 0, 1, 1], [], []>} : vector<2x32xf32>, vector<32x128xf32>, vector<2x128xf32> -> vector<2x128xf32>
    %269 = arith.addf %265, %268 : vector<2x128xf32>
    %c0_147 = arith.constant 0 : index
    %c0_148 = arith.constant 0 : index
    %270 = vector.load %arg46[%c0_147, %c0_148] : memref<1x128xf32, #tpu.memory_space<vmem>>, vector<1x128xf32>
    %271 = vector.broadcast %270 : vector<1x128xf32> to vector<2x128xf32>
    %272 = arith.addf %269, %271 : vector<2x128xf32>
    %273 = vector.extract_strided_slice %272 {offsets = [0, 0], sizes = [2, 32], strides = [1, 1]} : vector<2x128xf32> to vector<2x32xf32>
    %274 = arith.negf %273 : vector<2x32xf32>
    %275 = math.exp %274 : vector<2x32xf32>
    %cst_149 = arith.constant 1.000000e+00 : f32
    %276 = vector.broadcast %cst_149 : f32 to vector<2x32xf32>
    %277 = arith.addf %276, %275 : vector<2x32xf32>
    %278 = arith.divf %276, %277 : vector<2x32xf32>
    %279 = vector.extract_strided_slice %272 {offsets = [0, 32], sizes = [2, 32], strides = [1, 1]} : vector<2x128xf32> to vector<2x32xf32>
    %280 = arith.negf %279 : vector<2x32xf32>
    %281 = math.exp %280 : vector<2x32xf32>
    %cst_150 = arith.constant 1.000000e+00 : f32
    %282 = vector.broadcast %cst_150 : f32 to vector<2x32xf32>
    %283 = arith.addf %282, %281 : vector<2x32xf32>
    %284 = arith.divf %282, %283 : vector<2x32xf32>
    %285 = vector.extract_strided_slice %272 {offsets = [0, 64], sizes = [2, 32], strides = [1, 1]} : vector<2x128xf32> to vector<2x32xf32>
    %286 = math.tanh %285 : vector<2x32xf32>
    %287 = vector.extract_strided_slice %272 {offsets = [0, 96], sizes = [2, 32], strides = [1, 1]} : vector<2x128xf32> to vector<2x32xf32>
    %288 = arith.negf %287 : vector<2x32xf32>
    %289 = math.exp %288 : vector<2x32xf32>
    %cst_151 = arith.constant 1.000000e+00 : f32
    %290 = vector.broadcast %cst_151 : f32 to vector<2x32xf32>
    %291 = arith.addf %290, %289 : vector<2x32xf32>
    %292 = arith.divf %290, %291 : vector<2x32xf32>
    %c0_152 = arith.constant 0 : index
    %c0_153 = arith.constant 0 : index
    %293 = vector.load %arg6[%c0_152, %c0_153] : memref<2x32xf32, #tpu.memory_space<vmem>>, vector<2x32xf32>
    %294 = arith.mulf %284, %293 : vector<2x32xf32>
    %295 = arith.mulf %278, %286 : vector<2x32xf32>
    %296 = arith.addf %294, %295 : vector<2x32xf32>
    %297 = math.tanh %296 : vector<2x32xf32>
    %298 = arith.mulf %292, %297 : vector<2x32xf32>
    %c0_154 = arith.constant 0 : index
    %c0_155 = arith.constant 0 : index
    %299 = vector.load %arg54[%c0_154, %c0_155] : memref<2x32xf32, #tpu.memory_space<vmem>>, vector<2x32xf32>
    tpu.vector_store %arg54[%c0_154, %c0_155], %298 {strides = array<i32>} : memref<2x32xf32, #tpu.memory_space<vmem>>, vector<2x32xf32>,
    %c0_156 = arith.constant 0 : index
    %c0_157 = arith.constant 0 : index
    %300 = vector.load %arg55[%c0_156, %c0_157] : memref<2x32xf32, #tpu.memory_space<vmem>>, vector<2x32xf32>
    tpu.vector_store %arg55[%c0_156, %c0_157], %296 {strides = array<i32>} : memref<2x32xf32, #tpu.memory_space<vmem>>, vector<2x32xf32>,
    %c0_158 = arith.constant 0 : index
    %c0_159 = arith.constant 0 : index
    %301 = vector.load %arg10[%c0_158, %c0_159] : memref<2x32xf32, #tpu.memory_space<vmem>>, vector<2x32xf32>
    %cst_160 = arith.constant dense<0.000000e+00> : vector<2x32xf32>
    %302 = tpu.matmul %301, %253, %cst_160 {dimension_numbers = #tpu.dot_dimension_numbers<[1], [0], [0], [1], [0, 0, 1, 1], [], []>} : vector<2x32xf32>, vector<32x32xf32>, vector<2x32xf32> -> vector<2x32xf32>
    %c0_161 = arith.constant 0 : index
    %c0_162 = arith.constant 0 : index
    %303 = vector.load %arg47[%c0_161, %c0_162] : memref<32x32xf32, #tpu.memory_space<vmem>>, vector<32x32xf32>
    %cst_163 = arith.constant dense<0.000000e+00> : vector<2x32xf32>
    %304 = tpu.matmul %302, %303, %cst_163 {dimension_numbers = #tpu.dot_dimension_numbers<[1], [0], [0], [1], [0, 0, 1, 1], [], []>} : vector<2x32xf32>, vector<32x32xf32>, vector<2x32xf32> -> vector<2x32xf32>
    %c0_164 = arith.constant 0 : index
    %c0_165 = arith.constant 0 : index
    %305 = vector.load %arg48[%c0_164, %c0_165] : memref<1x32xf32, #tpu.memory_space<vmem>>, vector<1x32xf32>
    %306 = vector.broadcast %305 : vector<1x32xf32> to vector<2x32xf32>
    %307 = arith.addf %304, %306 : vector<2x32xf32>
    %cst_166 = arith.constant 0.000000e+00 : f32
    %308 = vector.broadcast %cst_166 : f32 to vector<2x32xf32>
    %309 = arith.maximumf %307, %308 : vector<2x32xf32>
    %c0_167 = arith.constant 0 : index
    %c0_168 = arith.constant 0 : index
    %310 = vector.load %arg49[%c0_167, %c0_168] : memref<32x32xf32, #tpu.memory_space<vmem>>, vector<32x32xf32>
    %cst_169 = arith.constant dense<0.000000e+00> : vector<2x32xf32>
    %311 = tpu.matmul %309, %310, %cst_169 {dimension_numbers = #tpu.dot_dimension_numbers<[1], [0], [0], [1], [0, 0, 1, 1], [], []>} : vector<2x32xf32>, vector<32x32xf32>, vector<2x32xf32> -> vector<2x32xf32>
    %c0_170 = arith.constant 0 : index
    %c0_171 = arith.constant 0 : index
    %312 = vector.load %arg50[%c0_170, %c0_171] : memref<1x32xf32, #tpu.memory_space<vmem>>, vector<1x32xf32>
    %313 = vector.broadcast %312 : vector<1x32xf32> to vector<2x32xf32>
    %314 = arith.addf %311, %313 : vector<2x32xf32>
    %c0_172 = arith.constant 0 : index
    %c0_173 = arith.constant 0 : index
    %315 = vector.load %arg51[%c0_172, %c0_173] : memref<1x32xf32, #tpu.memory_space<vmem>>, vector<1x32xf32>
    %316 = vector.broadcast %315 : vector<1x32xf32> to vector<2x32xf32>
    %317 = arith.mulf %314, %316 : vector<2x32xf32>
    %cst_174 = arith.constant dense<0.000000e+00> : vector<2xf32>
    %318 = vector.multi_reduction <add>, %317, %cst_174 [1] : vector<2x32xf32> to vector<2xf32>
    %319 = vector.shape_cast %318 : vector<2xf32> to vector<2x1xf32>
    %c0_175 = arith.constant 0 : index
    %c0_176 = arith.constant 0 : index
    %320 = vector.load %arg52[%c0_175, %c0_176] : memref<1x1xf32, #tpu.memory_space<vmem>>, vector<1x1xf32>
    %321 = vector.broadcast %320 : vector<1x1xf32> to vector<2x1xf32>
    %322 = arith.addf %319, %321 : vector<2x1xf32>
    %c0_177 = arith.constant 0 : index
    %c0_178 = arith.constant 0 : index
    %323 = vector.load %arg53[%c0_177, %c0_178] : memref<2x1xf32, #tpu.memory_space<vmem>>, vector<2x1xf32>
    tpu.vector_store %arg53[%c0_177, %c0_178], %322 {strides = array<i32>} : memref<2x1xf32, #tpu.memory_space<vmem>>, vector<2x1xf32>,
    return
  }
  func.func @transform_0(%arg0: i32, %arg1: memref<2xi32, #tpu.memory_space<smem>>) -> (i32, i32) {
    %c0_i32 = arith.constant 0 : i32
    %c0_i32_0 = arith.constant 0 : i32
    %c0_i32_1 = arith.constant 0 : i32
    return %c0_i32, %c0_i32_0 : i32, i32
  }
  func.func @transform_1(%arg0: i32, %arg1: memref<2xi32, #tpu.memory_space<smem>>) -> (i32, i32) {
    %c0_i32 = arith.constant 0 : i32
    %c0_i32_0 = arith.constant 0 : i32
    %c0_i32_1 = arith.constant 0 : i32
    return %c0_i32, %c0_i32_0 : i32, i32
  }
  func.func @transform_2(%arg0: i32, %arg1: memref<2xi32, #tpu.memory_space<smem>>) -> (i32, i32) {
    %c0_i32 = arith.constant 0 : i32
    %c0_i32_0 = arith.constant 0 : i32
    %c0_i32_1 = arith.constant 0 : i32
    return %c0_i32, %c0_i32_0 : i32, i32
  }
  func.func @transform_3(%arg0: i32, %arg1: memref<2xi32, #tpu.memory_space<smem>>) -> (i32, i32) {
    %c0_i32 = arith.constant 0 : i32
    %c0_i32_0 = arith.constant 0 : i32
    %c0_i32_1 = arith.constant 0 : i32
    return %c0_i32, %c0_i32_0 : i32, i32
  }
  func.func @transform_4(%arg0: i32, %arg1: memref<2xi32, #tpu.memory_space<smem>>) -> (i32, i32) {
    %c0_i32 = arith.constant 0 : i32
    %c0_i32_0 = arith.constant 0 : i32
    %c0_i32_1 = arith.constant 0 : i32
    return %c0_i32, %c0_i32_0 : i32, i32
  }
  func.func @transform_5(%arg0: i32, %arg1: memref<2xi32, #tpu.memory_space<smem>>) -> (i32, i32) {
    %c0_i32 = arith.constant 0 : i32
    %c0_i32_0 = arith.constant 0 : i32
    %c0_i32_1 = arith.constant 0 : i32
    return %c0_i32, %c0_i32_0 : i32, i32
  }
  func.func @transform_6(%arg0: i32, %arg1: memref<2xi32, #tpu.memory_space<smem>>) -> (i32, i32) {
    %c0_i32 = arith.constant 0 : i32
    %c0_i32_0 = arith.constant 0 : i32
    %c0_i32_1 = arith.constant 0 : i32
    return %c0_i32, %c0_i32_0 : i32, i32
  }
  func.func @transform_7(%arg0: i32, %arg1: memref<2xi32, #tpu.memory_space<smem>>) -> (i32, i32) {
    %c0_i32 = arith.constant 0 : i32
    %c0_i32_0 = arith.constant 0 : i32
    %c0_i32_1 = arith.constant 0 : i32
    return %c0_i32, %c0_i32_0 : i32, i32
  }
  func.func @transform_8(%arg0: i32, %arg1: memref<2xi32, #tpu.memory_space<smem>>) -> (i32, i32) {
    %c0_i32 = arith.constant 0 : i32
    %c0_i32_0 = arith.constant 0 : i32
    %c0_i32_1 = arith.constant 0 : i32
    return %c0_i32, %c0_i32_0 : i32, i32
  }
  func.func @transform_9(%arg0: i32, %arg1: memref<2xi32, #tpu.memory_space<smem>>) -> (i32, i32) {
    %c0_i32 = arith.constant 0 : i32
    %c0_i32_0 = arith.constant 0 : i32
    %c0_i32_1 = arith.constant 0 : i32
    return %c0_i32, %c0_i32_0 : i32, i32
  }
  func.func @transform_10(%arg0: i32, %arg1: memref<2xi32, #tpu.memory_space<smem>>) -> (i32, i32) {
    %c0_i32 = arith.constant 0 : i32
    %c0_i32_0 = arith.constant 0 : i32
    %c0_i32_1 = arith.constant 0 : i32
    return %c0_i32, %c0_i32_0 : i32, i32
  }
  func.func @transform_11(%arg0: i32, %arg1: memref<2xi32, #tpu.memory_space<smem>>) -> (i32, i32) {
    %c0_i32 = arith.constant 0 : i32
    %c0_i32_0 = arith.constant 0 : i32
    %c0_i32_1 = arith.constant 0 : i32
    return %c0_i32, %c0_i32_0 : i32, i32
  }
  func.func @transform_12(%arg0: i32, %arg1: memref<2xi32, #tpu.memory_space<smem>>) -> (i32, i32) {
    %c0_i32 = arith.constant 0 : i32
    %c0_i32_0 = arith.constant 0 : i32
    %c0_i32_1 = arith.constant 0 : i32
    return %c0_i32, %c0_i32_0 : i32, i32
  }
  func.func @transform_13(%arg0: i32, %arg1: memref<2xi32, #tpu.memory_space<smem>>) -> (i32, i32) {
    %c0_i32 = arith.constant 0 : i32
    %c0_i32_0 = arith.constant 0 : i32
    %c0_i32_1 = arith.constant 0 : i32
    return %c0_i32, %c0_i32_0 : i32, i32
  }
  func.func @transform_14(%arg0: i32, %arg1: memref<2xi32, #tpu.memory_space<smem>>) -> (i32, i32) {
    %c0_i32 = arith.constant 0 : i32
    %c0_i32_0 = arith.constant 0 : i32
    %c0_i32_1 = arith.constant 0 : i32
    return %c0_i32, %c0_i32_0 : i32, i32
  }
  func.func @transform_15(%arg0: i32, %arg1: memref<2xi32, #tpu.memory_space<smem>>) -> (i32, i32) {
    %c0_i32 = arith.constant 0 : i32
    %c0_i32_0 = arith.constant 0 : i32
    %c0_i32_1 = arith.constant 0 : i32
    return %c0_i32, %c0_i32_0 : i32, i32
  }
  func.func @transform_16(%arg0: i32, %arg1: memref<2xi32, #tpu.memory_space<smem>>) -> (i32, i32) {
    %c0_i32 = arith.constant 0 : i32
    %c0_i32_0 = arith.constant 0 : i32
    %c0_i32_1 = arith.constant 0 : i32
    return %c0_i32, %c0_i32_0 : i32, i32
  }
  func.func @transform_17(%arg0: i32, %arg1: memref<2xi32, #tpu.memory_space<smem>>) -> (i32, i32) {
    %c0_i32 = arith.constant 0 : i32
    %c0_i32_0 = arith.constant 0 : i32
    %c0_i32_1 = arith.constant 0 : i32
    return %c0_i32, %c0_i32_0 : i32, i32
  }
  func.func @transform_18(%arg0: i32, %arg1: memref<2xi32, #tpu.memory_space<smem>>) -> (i32, i32) {
    %c0_i32 = arith.constant 0 : i32
    %c0_i32_0 = arith.constant 0 : i32
    %c0_i32_1 = arith.constant 0 : i32
    return %c0_i32, %c0_i32_0 : i32, i32
  }
  func.func @transform_19(%arg0: i32, %arg1: memref<2xi32, #tpu.memory_space<smem>>) -> (i32, i32) {
    %c0_i32 = arith.constant 0 : i32
    %c0_i32_0 = arith.constant 0 : i32
    %c0_i32_1 = arith.constant 0 : i32
    return %c0_i32, %c0_i32_0 : i32, i32
  }
  func.func @transform_20(%arg0: i32, %arg1: memref<2xi32, #tpu.memory_space<smem>>) -> (i32, i32) {
    %c0_i32 = arith.constant 0 : i32
    %c0_i32_0 = arith.constant 0 : i32
    %c0_i32_1 = arith.constant 0 : i32
    return %c0_i32, %c0_i32_0 : i32, i32
  }
  func.func @transform_21(%arg0: i32, %arg1: memref<2xi32, #tpu.memory_space<smem>>) -> (i32, i32) {
    %c0_i32 = arith.constant 0 : i32
    %c0_i32_0 = arith.constant 0 : i32
    %c0_i32_1 = arith.constant 0 : i32
    return %c0_i32, %c0_i32_0 : i32, i32
  }
  func.func @transform_22(%arg0: i32, %arg1: memref<2xi32, #tpu.memory_space<smem>>) -> (i32, i32) {
    %c0_i32 = arith.constant 0 : i32
    %c0_i32_0 = arith.constant 0 : i32
    %c0_i32_1 = arith.constant 0 : i32
    return %c0_i32, %c0_i32_0 : i32, i32
  }
  func.func @transform_23(%arg0: i32, %arg1: memref<2xi32, #tpu.memory_space<smem>>) -> (i32, i32) {
    %c0_i32 = arith.constant 0 : i32
    %c0_i32_0 = arith.constant 0 : i32
    %c0_i32_1 = arith.constant 0 : i32
    return %c0_i32, %c0_i32_0 : i32, i32
  }
  func.func @transform_24(%arg0: i32, %arg1: memref<2xi32, #tpu.memory_space<smem>>) -> (i32, i32) {
    %c0_i32 = arith.constant 0 : i32
    %c0_i32_0 = arith.constant 0 : i32
    %c0_i32_1 = arith.constant 0 : i32
    return %c0_i32, %c0_i32_0 : i32, i32
  }
  func.func @transform_25(%arg0: i32, %arg1: memref<2xi32, #tpu.memory_space<smem>>) -> (i32, i32) {
    %c0_i32 = arith.constant 0 : i32
    %c0_i32_0 = arith.constant 0 : i32
    %c0_i32_1 = arith.constant 0 : i32
    return %c0_i32, %c0_i32_0 : i32, i32
  }
  func.func @transform_26(%arg0: i32, %arg1: memref<2xi32, #tpu.memory_space<smem>>) -> (i32, i32) {
    %c0_i32 = arith.constant 0 : i32
    %c0_i32_0 = arith.constant 0 : i32
    %c0_i32_1 = arith.constant 0 : i32
    return %c0_i32, %c0_i32_0 : i32, i32
  }
  func.func @transform_27(%arg0: i32, %arg1: memref<2xi32, #tpu.memory_space<smem>>) -> (i32, i32) {
    %c0_i32 = arith.constant 0 : i32
    %c0_i32_0 = arith.constant 0 : i32
    %c0_i32_1 = arith.constant 0 : i32
    return %c0_i32, %c0_i32_0 : i32, i32
  }
  func.func @transform_28(%arg0: i32, %arg1: memref<2xi32, #tpu.memory_space<smem>>) -> (i32, i32) {
    %c0_i32 = arith.constant 0 : i32
    %c0_i32_0 = arith.constant 0 : i32
    %c0_i32_1 = arith.constant 0 : i32
    return %c0_i32, %c0_i32_0 : i32, i32
  }
  func.func @transform_29(%arg0: i32, %arg1: memref<2xi32, #tpu.memory_space<smem>>) -> (i32, i32) {
    %c0_i32 = arith.constant 0 : i32
    %c0_i32_0 = arith.constant 0 : i32
    %c0_i32_1 = arith.constant 0 : i32
    return %c0_i32, %c0_i32_0 : i32, i32
  }
  func.func @transform_30(%arg0: i32, %arg1: memref<2xi32, #tpu.memory_space<smem>>) -> (i32, i32) {
    %c0_i32 = arith.constant 0 : i32
    %c0_i32_0 = arith.constant 0 : i32
    %c0_i32_1 = arith.constant 0 : i32
    return %c0_i32, %c0_i32_0 : i32, i32
  }
  func.func @transform_31(%arg0: i32, %arg1: memref<2xi32, #tpu.memory_space<smem>>) -> (i32, i32) {
    %c0_i32 = arith.constant 0 : i32
    %c0_i32_0 = arith.constant 0 : i32
    %c0_i32_1 = arith.constant 0 : i32
    return %c0_i32, %c0_i32_0 : i32, i32
  }
  func.func @transform_32(%arg0: i32, %arg1: memref<2xi32, #tpu.memory_space<smem>>) -> (i32, i32) {
    %c0_i32 = arith.constant 0 : i32
    %c0_i32_0 = arith.constant 0 : i32
    %c0_i32_1 = arith.constant 0 : i32
    return %c0_i32, %c0_i32_0 : i32, i32
  }
  func.func @transform_33(%arg0: i32, %arg1: memref<2xi32, #tpu.memory_space<smem>>) -> (i32, i32) {
    %c0_i32 = arith.constant 0 : i32
    %c0_i32_0 = arith.constant 0 : i32
    %c0_i32_1 = arith.constant 0 : i32
    return %c0_i32, %c0_i32_0 : i32, i32
  }
  func.func @transform_34(%arg0: i32, %arg1: memref<2xi32, #tpu.memory_space<smem>>) -> (i32, i32) {
    %c0_i32 = arith.constant 0 : i32
    %c0_i32_0 = arith.constant 0 : i32
    %c0_i32_1 = arith.constant 0 : i32
    return %c0_i32, %c0_i32_0 : i32, i32
  }
  func.func @transform_35(%arg0: i32, %arg1: memref<2xi32, #tpu.memory_space<smem>>) -> (i32, i32) {
    %c0_i32 = arith.constant 0 : i32
    %c0_i32_0 = arith.constant 0 : i32
    %c0_i32_1 = arith.constant 0 : i32
    return %c0_i32, %c0_i32_0 : i32, i32
  }
  func.func @transform_36(%arg0: i32, %arg1: memref<2xi32, #tpu.memory_space<smem>>) -> (i32, i32) {
    %c0_i32 = arith.constant 0 : i32
    %c0_i32_0 = arith.constant 0 : i32
    %c0_i32_1 = arith.constant 0 : i32
    return %c0_i32, %c0_i32_0 : i32, i32
  }
  func.func @transform_37(%arg0: i32, %arg1: memref<2xi32, #tpu.memory_space<smem>>) -> (i32, i32) {
    %c0_i32 = arith.constant 0 : i32
    %c0_i32_0 = arith.constant 0 : i32
    %c0_i32_1 = arith.constant 0 : i32
    return %c0_i32, %c0_i32_0 : i32, i32
  }
  func.func @transform_38(%arg0: i32, %arg1: memref<2xi32, #tpu.memory_space<smem>>) -> (i32, i32) {
    %c0_i32 = arith.constant 0 : i32
    %c0_i32_0 = arith.constant 0 : i32
    %c0_i32_1 = arith.constant 0 : i32
    return %c0_i32, %c0_i32_0 : i32, i32
  }
  func.func @transform_39(%arg0: i32, %arg1: memref<2xi32, #tpu.memory_space<smem>>) -> (i32, i32) {
    %c0_i32 = arith.constant 0 : i32
    %c0_i32_0 = arith.constant 0 : i32
    %c0_i32_1 = arith.constant 0 : i32
    return %c0_i32, %c0_i32_0 : i32, i32
  }
  func.func @transform_40(%arg0: i32, %arg1: memref<2xi32, #tpu.memory_space<smem>>) -> (i32, i32) {
    %c0_i32 = arith.constant 0 : i32
    %c0_i32_0 = arith.constant 0 : i32
    %c0_i32_1 = arith.constant 0 : i32
    return %c0_i32, %c0_i32_0 : i32, i32
  }
  func.func @transform_41(%arg0: i32, %arg1: memref<2xi32, #tpu.memory_space<smem>>) -> (i32, i32) {
    %c0_i32 = arith.constant 0 : i32
    %c0_i32_0 = arith.constant 0 : i32
    %c0_i32_1 = arith.constant 0 : i32
    return %c0_i32, %c0_i32_0 : i32, i32
  }
  func.func @transform_42(%arg0: i32, %arg1: memref<2xi32, #tpu.memory_space<smem>>) -> (i32, i32) {
    %c0_i32 = arith.constant 0 : i32
    %c0_i32_0 = arith.constant 0 : i32
    %c0_i32_1 = arith.constant 0 : i32
    return %c0_i32, %c0_i32_0 : i32, i32
  }
  func.func @transform_43(%arg0: i32, %arg1: memref<2xi32, #tpu.memory_space<smem>>) -> (i32, i32) {
    %c0_i32 = arith.constant 0 : i32
    %c0_i32_0 = arith.constant 0 : i32
    %c0_i32_1 = arith.constant 0 : i32
    return %c0_i32, %c0_i32_0 : i32, i32
  }
  func.func @transform_44(%arg0: i32, %arg1: memref<2xi32, #tpu.memory_space<smem>>) -> (i32, i32) {
    %c0_i32 = arith.constant 0 : i32
    %c0_i32_0 = arith.constant 0 : i32
    %c0_i32_1 = arith.constant 0 : i32
    return %c0_i32, %c0_i32_0 : i32, i32
  }
  func.func @transform_45(%arg0: i32, %arg1: memref<2xi32, #tpu.memory_space<smem>>) -> (i32, i32) {
    %c0_i32 = arith.constant 0 : i32
    %c0_i32_0 = arith.constant 0 : i32
    %c0_i32_1 = arith.constant 0 : i32
    return %c0_i32, %c0_i32_0 : i32, i32
  }
  func.func @transform_46(%arg0: i32, %arg1: memref<2xi32, #tpu.memory_space<smem>>) -> (i32, i32) {
    %c0_i32 = arith.constant 0 : i32
    %c0_i32_0 = arith.constant 0 : i32
    %c0_i32_1 = arith.constant 0 : i32
    return %c0_i32, %c0_i32_0 : i32, i32
  }
  func.func @transform_47(%arg0: i32, %arg1: memref<2xi32, #tpu.memory_space<smem>>) -> (i32, i32) {
    %c0_i32 = arith.constant 0 : i32
    %c0_i32_0 = arith.constant 0 : i32
    %c0_i32_1 = arith.constant 0 : i32
    return %c0_i32, %c0_i32_0 : i32, i32
  }
  func.func @transform_48(%arg0: i32, %arg1: memref<2xi32, #tpu.memory_space<smem>>) -> (i32, i32) {
    %c0_i32 = arith.constant 0 : i32
    %c0_i32_0 = arith.constant 0 : i32
    %c0_i32_1 = arith.constant 0 : i32
    return %c0_i32, %c0_i32_0 : i32, i32
  }
  func.func @transform_49(%arg0: i32, %arg1: memref<2xi32, #tpu.memory_space<smem>>) -> (i32, i32) {
    %c0_i32 = arith.constant 0 : i32
    %c0_i32_0 = arith.constant 0 : i32
    %c0_i32_1 = arith.constant 0 : i32
    return %c0_i32, %c0_i32_0 : i32, i32
  }
  func.func @transform_50(%arg0: i32, %arg1: memref<2xi32, #tpu.memory_space<smem>>) -> (i32, i32) {
    %c0_i32 = arith.constant 0 : i32
    %c0_i32_0 = arith.constant 0 : i32
    %c0_i32_1 = arith.constant 0 : i32
    return %c0_i32, %c0_i32_0 : i32, i32
  }
  func.func @transform_51(%arg0: i32, %arg1: memref<2xi32, #tpu.memory_space<smem>>) -> (i32, i32) {
    %c0_i32 = arith.constant 0 : i32
    %c0_i32_0 = arith.constant 0 : i32
    %c0_i32_1 = arith.constant 0 : i32
    return %c0_i32, %c0_i32_0 : i32, i32
  }
  func.func @transform_52(%arg0: i32, %arg1: memref<2xi32, #tpu.memory_space<smem>>) -> (i32, i32) {
    %c0_i32 = arith.constant 0 : i32
    %c0_i32_0 = arith.constant 0 : i32
    %c0_i32_1 = arith.constant 0 : i32
    return %c0_i32, %c0_i32_0 : i32, i32
  }
  func.func @transform_53(%arg0: i32, %arg1: memref<2xi32, #tpu.memory_space<smem>>) -> (i32, i32) {
    %c0_i32 = arith.constant 0 : i32
    %c0_i32_0 = arith.constant 0 : i32
    %c0_i32_1 = arith.constant 0 : i32
    return %c0_i32, %c0_i32_0 : i32, i32
  }
}

</mosaic_0001>

<bundles_post_ra>
// kernel: critic_attention_forward.1
= control target key start
LH: loop header
LB: loop body
LE: loop exit
PB: predicated region body
PF: predicated region fallthrough
CT: control target
= control target key end

     0   :  { %s8121_s6 = smov 1   ;;  %s8122_s10 = smov 2   ;;  %s9782_s0 = inlined_call_operand.smem [shape: u32[55], index: -1, kind: input, shape index: {}] }
   0x1   :  { %s8227_s5 = sld [smem:[%s9782_s0]]   ;;  %s8123_s14 = smov 3  }
   0x2   :  { %s8232_s9 = sld [smem:[%s9782_s0 + %s8121_s6]]   ;;  %s8124_s18 = smov 4  }
   0x3   :  { %s8237_s13 = sld [smem:[%s9782_s0 + %s8122_s10]]   ;;  %s8125_s22 = smov 5  }
   0x4   :  { %s8242_s17 = sld [smem:[%s9782_s0 + %s8123_s14]]   ;;  %s8126_s26 = smov 6  }
   0x5   :  { %s8247_s21 = sld [smem:[%s9782_s0 + %s8124_s18]]   ;;  %s8127_s30 = smov 7  }
   0x6   :  { %s8252_s25 = sld [smem:[%s9782_s0 + %s8125_s22]]   ;;  %s8128_s4 = smov 8  }
   0x7   :  { %s8257_s29 = sld [smem:[%s9782_s0 + %s8126_s26]]   ;;  %s8129_s10 = smov 9  }
   0x8   :  { %9811 = sst [smem:[#allocation76_spill]] %s8232_s9  ;;  %s8130_s15 = smov 10  }
   0x9   :  { %9812 = sst [smem:[#allocation77_spill]] %s8237_s13  ;;  %s8131_s20 = smov 11  }
   0xa   :  { %9813 = sst [smem:[#allocation78_spill]] %s8242_s17  ;;  %s8132_s26 = smov 12  }
   0xb   :  { %s8262_s3 = sld [smem:[%s9782_s0 + %s8127_s30]]   ;;  %s8133_s1 = smov 13  }
   0xc   :  { %9814 = sst [smem:[#allocation79_spill]] %s8252_s25  ;;  %s8134_s7 = smov 14  }
   0xd   :  { %9815 = sst [smem:[#allocation80_spill]] %s8257_s29  ;;  %s8136_s22 = smov 16  }
   0xe   :  { %s8267_s8 = sld [smem:[%s9782_s0 + %s8128_s4]]   ;;  %s8137_s28 = smov 17  }
   0xf   :  { %s8272_s14 = sld [smem:[%s9782_s0 + %s8129_s10]]  }
  0x10   :  { %s8277_s19 = sld [smem:[%s9782_s0 + %s8130_s15]]   ;;  %s8135_s15 = smov 15  }
  0x11   :  { %9816 = sst [smem:[#allocation81_spill]] %s8262_s3 }
  0x12   :  { %s8282_s24 = sld [smem:[%s9782_s0 + %s8131_s20]]  }
  0x13   :  { %s8287_s30 = sld [smem:[%s9782_s0 + %s8132_s26]]  }
  0x14   :  { %9817 = sst [smem:[#allocation82_spill]] %s8267_s8 }
  0x15   :  { %9818 = sst [smem:[#allocation83_spill]] %s8272_s14 }
  0x16   :  { %s8292_s6 = sld [smem:[%s9782_s0 + %s8133_s1]]  }
  0x17   :  { %s8297_s12 = sld [smem:[%s9782_s0 + %s8134_s7]]   ;;  %s8138_s7 = smov 18  }
  0x18   :  { %9819 = sst [smem:[#allocation84_spill]] %s8282_s24 }
  0x19   :  { %s8302_s20 = sld [smem:[%s9782_s0 + %s8135_s15]]   ;;  %s8139_s15 = smov 19  }
  0x1a   :  { %s8307_s27 = sld [smem:[%s9782_s0 + %s8136_s22]]   ;;  %s8140_s22 = smov 20  }
  0x1b   :  { %s8312_s4 = sld [smem:[%s9782_s0 + %s8137_s28]]   ;;  %s8141_s28 = smov 21  }
  0x1c   :  { %9820 = sst [smem:[#allocation85_spill]] %s8292_s6 }
  0x1d   :  { %s8317_s14 = sld [smem:[%s9782_s0 + %s8138_s7]]   ;;  %s8142_s7 = smov 22  }
  0x1e   :  { %s8322_s17 = sld [smem:[%s9782_s0 + %s8139_s15]]   ;;  %s8143_s15 = smov 23  }
  0x1f   :  { %9821 = sst [smem:[#allocation86_spill]] %s8302_s20 }
  0x20   :  { %9822 = sst [smem:[#allocation87_spill]] %s8307_s27 }
  0x21   :  { %9823 = sst [smem:[#allocation88_spill]] %s8312_s4 }
  0x22   :  { %s8327_s3 = sld [smem:[%s9782_s0 + %s8140_s22]]   ;;  %s8144_s22 = smov 24  }
  0x23   :  { %s8332_s8 = sld [smem:[%s9782_s0 + %s8141_s28]]   ;;  %s8145_s28 = smov 25  }
  0x24   :  { %9824 = sst [smem:[#allocation89_spill]] %s8322_s17 }
  0x25   :  { %s8337_s4 = sld [smem:[%s9782_s0 + %s8142_s7]]   ;;  %s8146_s7 = smov 26  }
  0x26   :  { %s8342_s27 = sld [smem:[%s9782_s0 + %s8143_s15]]   ;;  %s8147_s15 = smov 27  }
  0x27   :  { %s8347_s29 = sld [smem:[%s9782_s0 + %s8144_s22]]   ;;  %s8148_s22 = smov 28  }
  0x28   :  { %s8352_s9 = sld [smem:[%s9782_s0 + %s8145_s28]]   ;;  %s8149_s28 = smov 29  }
  0x29   :  { %9825 = sst [smem:[#allocation90_spill]] %s8332_s8 }
  0x2a   :  { %s8367_s8 = sld [smem:[%s9782_s0 + %s8148_s22]]   ;;  %s8152_s22 = smov 32  }
  0x2b   :  { %9826 = sst [smem:[#allocation91_spill]] %s8337_s4 }
  0x2c   :  { %9827 = sst [smem:[#allocation92_spill]] %s8342_s27 }
  0x2d   :  { %s8357_s4 = sld [smem:[%s9782_s0 + %s8146_s7]]   ;;  %s8150_s7 = smov 30  }
  0x2e   :  { %9828 = sst [smem:[#allocation93_spill]] %s8352_s9 }
  0x2f   :  { %s8362_s27 = sld [smem:[%s9782_s0 + %s8147_s15]]   ;;  %s8151_s15 = smov 31  }
  0x30   :  { %9830 = sst [smem:[#allocation95_spill]] %s8367_s8 }
  0x31   :  { %s8372_s9 = sld [smem:[%s9782_s0 + %s8149_s28]]   ;;  %s8153_s28 = smov 33  }
  0x32   :  { %s8377_s17 = sld [smem:[%s9782_s0 + %s8150_s7]]   ;;  %s8154_s7 = smov 34  }
  0x33   :  { %s8387_s8 = sld [smem:[%s9782_s0 + %s8152_s22]]   ;;  %s8156_s22 = smov 36  }
  0x34   :  { %s8397_s20 = sld [smem:[%s9782_s0 + %s8154_s7]]   ;;  %s8158_s7 = smov 38  }
  0x35   :  { %9829 = sst [smem:[#allocation94_spill]] %s8362_s27 }
  0x36   :  { %s8382_s27 = sld [smem:[%s9782_s0 + %s8151_s15]]   ;;  %s8155_s15 = smov 35  }
  0x37   :  { %9831 = sst [smem:[#allocation96_spill]] %s8372_s9 }
  0x38   :  { %s8392_s9 = sld [smem:[%s9782_s0 + %s8153_s28]]   ;;  %s8157_s28 = smov 37  }
  0x39   :  { %s8407_s6 = sld [smem:[%s9782_s0 + %s8156_s22]]   ;;  %s8160_s22 = smov 40  }
  0x3a   :  { %9834 = sst [smem:[#allocation99_spill]] %s8397_s20 }
  0x3b   :  { %s8417_s20 = sld [smem:[%s9782_s0 + %s8158_s7]]   ;;  %s8162_s7 = smov 42  }
  0x3c   :  { %9832 = sst [smem:[#allocation97_spill]] %s8382_s27 }
  0x3d   :  { %s8402_s27 = sld [smem:[%s9782_s0 + %s8155_s15]]   ;;  %s8159_s15 = smov 39  }
  0x3e   :  { %9833 = sst [smem:[#allocation98_spill]] %s8392_s9 }
  0x3f   :  { %s8412_s9 = sld [smem:[%s9782_s0 + %s8157_s28]]   ;;  %s8161_s28 = smov 41  }
  0x40   :  { %s8427_s24 = sld [smem:[%s9782_s0 + %s8160_s22]]   ;;  %s8164_s22 = smov 44  }
  0x41   :  { %9837 = sst [smem:[#allocation102_spill]] %s8417_s20 }
  0x42   :  { %s8437_s20 = sld [smem:[%s9782_s0 + %s8162_s7]]   ;;  %s8166_s7 = smov 46  }
  0x43   :  { %9835 = sst [smem:[#allocation100_spill]] %s8402_s27 }
  0x44   :  { %s8422_s27 = sld [smem:[%s9782_s0 + %s8159_s15]]   ;;  %s8163_s15 = smov 43  }
  0x45   :  { %9836 = sst [smem:[#allocation101_spill]] %s8412_s9 }
  0x46   :  { %9838 = sst [smem:[#allocation103_spill]] %s8427_s24 }
  0x47   :  { %s8432_s9 = sld [smem:[%s9782_s0 + %s8161_s28]]   ;;  %s8165_s28 = smov 45  }
  0x48   :  { %9839 = sst [smem:[#allocation104_spill]] %s8437_s20  ;;  %s8171_s20 = smov 52  }
  0x49   :  { %s8442_s25 = sld [smem:[%s9782_s0 + %s8163_s15]]   ;;  %s8167_s15 = smov 47  }
  0x4a   :  { %s8447_s24 = sld [smem:[%s9782_s0 + %s8164_s22]]   ;;  %s8168_s22 = smov 48  }
  0x4b   :  { %s8452_s13 = sld [smem:[%s9782_s0 + %s8165_s28]]   ;;  %s8169_s28 = smov 49  }
  0x4c   :  { %s8457_s16 = sld [smem:[%s9782_s0 + %s8166_s7]]   ;;  %s8170_s7 = smov 50  }
  0x4d   :  { %s8462_s23 = sld [smem:[%s9782_s0 + %s8167_s15]]  }
  0x4e   :  { %s8467_s1 = sld [smem:[%s9782_s0 + %s8168_s22]]  }
  0x4f   :  { %9840 = sst [smem:[#allocation105_spill]] %s8442_s25 }
  0x50   :  { %9841 = sst [smem:[#allocation106_spill]] %s8447_s24  ;;  %s8172_s24 = smov 53  }
  0x51   :  { %9842 = sst [smem:[#allocation107_spill]] %s8452_s13  ;;  %s8173_s13 = smov 54  }
  0x52   :  { %9843 = sst [smem:[#allocation108_spill]] %s8457_s16  ;;  %s115_s16 = sshll.u32 %s8227_s5, 4  ;;  %s116_s16 = int_to_ptr.vmem [resolvable:$true] %s115_s16 }
  0x53   :  { %9844 = sst [smem:[#allocation109_spill]] %s8462_s23  ;;  %p7350_p1 = scmp.lt.s32.totalorder %s116_s16, %s116_s16 }
  0x54   :  { %9845 = sst [smem:[#allocation110_spill]] %s8467_s1 }
  0x55   :  { %s8472_s10 = sld [smem:[%s9782_s0 + %s8169_s28]]  }
  0x56   :  { %s8477_s25 = sld [smem:[%s9782_s0 + %s8170_s7]]   ;;  %s7345_s7 = scalar_lea.vmem %s116_s16, 16 }
  0x57   :  { %s8482_s23 = sld [smem:[%s9782_s0 + %s8171_s20]]   ;;  %p7346_p0 = scmp.ne.s32.totalorder %s116_s16, %s7345_s7 }
  0x58   :  { %s8487_s1 = sld [smem:[%s9782_s0 + %s8172_s24]]   ;;  %p7351_p2 = scmp.lt.s32.totalorder %s7345_s7, %s7345_s7 }
  0x5a   :  { %p7352_p3 = por %p7351_p2, %p7350_p1 }
  0x5b   :  { %9846 = sst [smem:[#allocation111_spill]] %s8472_s10 }
  0x5c   :  { %s8492_s10 = sld [smem:[%s9782_s0 + %s8173_s13]]   ;;  %p7353_p4 = pnand %p7352_p3, %p7346_p0 }
  0x5e   :  { %7356 = shalt.err (!%p7353_p4)  }
  0x5f   :  { %s8174_s11 = smov [#allocation4]   ;;  %s8175_s20 = smov 51  }
  0x60   :  { %118 = dma.vmem_to_smem %s116_s16, 16, %s8174_s11, [#allocation3] }
  0x61   :  { %s5131_s24 = sld [smem:[%s9782_s0 + %s8175_s20]]  }
  0x67   :  { %v119_v0 = vstv %s5131_s24 }
  0x68   :  { %120 = vst [vmem:[#allocation5] sm:$0x1] %v119_v0 }
  0x69   :  { %8083 = dma.done.wait [#allocation3], 16 }
  0x6a   :  { %8084 = vsyncadd [#allocation3], 4294967280 }
  0x6b   :  { %122 = sfence }
  0x6c   :  { %123 = vsyncpa [#allocation7], 0 }
  0x6d   :  { %124 = vsyncpa [#allocation10], 0 }
  0x6e   :  { %125 = vsyncpa [#allocation13], 0 }
  0x6f   :  { %126 = vsyncpa [#allocation16], 0 }
  0x70   :  { %127 = vsyncpa [#allocation19], 0 }
  0x71   :  { %128 = vsyncpa [#allocation22], 0 }
  0x72   :  { %129 = vsyncpa [#allocation25], 0 }
  0x73   :  { %130 = vsyncpa [#allocation28], 0 }
  0x74   :  { %131 = vsyncpa [#allocation31], 0 }
  0x75   :  { %132 = vsyncpa [#allocation34], 0 }
  0x76   :  { %133 = vsyncpa [#allocation37], 0 }
  0x77   :  { %134 = vsyncpa [#allocation40], 0 }
  0x78   :  { %135 = vsyncpa [#allocation43], 0 }
  0x79   :  { %136 = vsyncpa [#allocation46], 0 }
  0x7a   :  { %137 = vsyncpa [#allocation49], 0 }
  0x7b   :  { %138 = vsyncpa [#allocation52], 0 }
  0x7c   :  { %139 = vsyncpa [#allocation8], 0 }
  0x7d   :  { %140 = vsyncpa [#allocation56], 0  ;;  %s8176_s0 = smov [#allocation9]   ;;  %s8177_s22 = smov [#allocation12]  }
  0x7e   :  { %s163_s5 = sshll.u32 %s8176_s0, 4  ;;  %s191_s26 = sshll.u32 %s8177_s22, 4  ;;  %s164_s5 = int_to_ptr.vmem [resolvable:$true] %s163_s5  ;;  %s192_s26 = int_to_ptr.vmem [resolvable:$true] %s191_s26 }
  0x7f   :  { %s7357_s13 = scalar_lea.hbm %s8247_s21, 32 }
  0x80   :  { %p7358_p5 = scmp.ne.s32.totalorder %s8247_s21, %s7357_s13  ;;  %p7361_p6 = scmp.lt.u32.totalorder %s7357_s13, %s8247_s21 }
  0x82   :  { %p7363_p7 = pnand %p7361_p6, %p7358_p5 }
  0x84   :  { %7366 = shalt.err (!%p7363_p7)
}
  0x85   :  { %s7367_s28 = scalar_lea.vmem %s164_s5, 32  ;;  %p7372_p9 = scmp.lt.s32.totalorder %s164_s5, %s164_s5 }
  0x86   :  { %p7368_p8 = scmp.ne.s32.totalorder %s164_s5, %s7367_s28  ;;  %p7373_p10 = scmp.lt.s32.totalorder %s7367_s28, %s7367_s28 }
  0x88   :  { %p7374_p11 = por %p7373_p10, %p7372_p9 }
  0x8a   :  { %p7375_p12 = pnand %p7374_p11, %p7368_p8 }
  0x8c   :  { %7378 = shalt.err (!%p7375_p12)
}
  0x8d   :  { %166 = dma.hbm_to_vmem [thread:$0]  %s8247_s21, 32, %s164_s5, [#allocation10]  }
  0x8e   :  { %s7379_s2 = scalar_lea.hbm %s8277_s19, 64 }
  0x8f   :  { %p7380_p13 = scmp.ne.s32.totalorder %s8277_s19, %s7379_s2  ;;  %p7383_p0 = scmp.lt.u32.totalorder %s7379_s2, %s8277_s19 }
  0x91   :  { %p7385_p1 = pnand %p7383_p0, %p7380_p13 }
  0x93   :  { %7388 = shalt.err (!%p7385_p1)
}
  0x94   :  { %s7389_s16 = scalar_lea.vmem %s192_s26, 64  ;;  %p7394_p3 = scmp.lt.s32.totalorder %s192_s26, %s192_s26 }
  0x95   :  { %p7390_p2 = scmp.ne.s32.totalorder %s192_s26, %s7389_s16  ;;  %p7395_p4 = scmp.lt.s32.totalorder %s7389_s16, %s7389_s16 }
  0x97   :  { %p7396_p5 = por %p7395_p4, %p7394_p3 }
  0x99   :  { %p7397_p6 = pnand %p7396_p5, %p7390_p2 }
  0x9b   :  { %7400 = shalt.err (!%p7397_p6)
}
  0x9c   :  { %194 = dma.hbm_to_vmem [thread:$0]  %s8277_s19, 64, %s192_s26, [#allocation13]  }
  0x9d   :  { %s8178_s7 = smov [#allocation15]   ;;  %s7401_s21 = scalar_lea.hbm %s8287_s30, 64 }
  0x9e   :  { %s211_s11 = sshll.u32 %s8178_s7, 4  ;;  %p7402_p7 = scmp.ne.s32.totalorder %s8287_s30, %s7401_s21  ;;  %s212_s11 = int_to_ptr.vmem [resolvable:$true] %s211_s11 }
  0x9f   :  { %p7405_p8 = scmp.lt.u32.totalorder %s7401_s21, %s8287_s30 }
  0xa1   :  { %p7407_p9 = pnand %p7405_p8, %p7402_p7 }
  0xa3   :  { %7410 = shalt.err (!%p7407_p9)
}
  0xa4   :  { %s7411_s20 = scalar_lea.vmem %s212_s11, 64  ;;  %p7416_p11 = scmp.lt.s32.totalorder %s212_s11, %s212_s11 }
  0xa5   :  { %p7412_p10 = scmp.ne.s32.totalorder %s212_s11, %s7411_s20  ;;  %p7417_p12 = scmp.lt.s32.totalorder %s7411_s20, %s7411_s20 }
  0xa7   :  { %p7418_p13 = por %p7417_p12, %p7416_p11 }
  0xa9   :  { %p7419_p0 = pnand %p7418_p13, %p7412_p10 }
  0xab   :  { %7422 = shalt.err (!%p7419_p0)
}
  0xac   :  { %214 = dma.hbm_to_vmem [thread:$0]  %s8287_s30, 64, %s212_s11, [#allocation16]  }
  0xad   :  { %s8179_s19 = smov [#allocation18]   ;;  %s8180_s18 = smov [#allocation21]  }
  0xae   :  { %s230_s15 = sshll.u32 %s8179_s19, 4  ;;  %s256_s24 = sshll.u32 %s8180_s18, 4  ;;  %s231_s15 = int_to_ptr.vmem [resolvable:$true] %s230_s15  ;;  %s257_s24 = int_to_ptr.vmem [resolvable:$true] %s256_s24 }
  0xaf   :  { %s7423_s0 = scalar_lea.hbm %s8297_s12, 512 }
  0xb0   :  { %p7424_p1 = scmp.ne.s32.totalorder %s8297_s12, %s7423_s0  ;;  %p7427_p2 = scmp.lt.u32.totalorder %s7423_s0, %s8297_s12 }
  0xb2   :  { %p7429_p3 = pnand %p7427_p2, %p7424_p1 }
  0xb4   :  { %7432 = shalt.err (!%p7429_p3)
}
  0xb5   :  { %s7433_s5 = scalar_lea.vmem %s231_s15, 512  ;;  %p7438_p5 = scmp.lt.s32.totalorder %s231_s15, %s231_s15 }
  0xb6   :  { %p7434_p4 = scmp.ne.s32.totalorder %s231_s15, %s7433_s5  ;;  %p7439_p6 = scmp.lt.s32.totalorder %s7433_s5, %s7433_s5 }
  0xb8   :  { %p7440_p7 = por %p7439_p6, %p7438_p5 }
  0xba   :  { %p7441_p8 = pnand %p7440_p7, %p7434_p4 }
  0xbc   :  { %7444 = shalt.err (!%p7441_p8)
}
  0xbd   :  { %s8181_s22 = smov 128   ;;  %s8182_s30 = smov 8  }
  0xbe   :  { %236 = dma.hbm_to_vmem [thread:$0]  %s8297_s12, 512, %s231_s15, [#allocation19], %s8181_s22, %s8181_s22, %s8182_s30  }
  0xbf   :  { %s7445_s26 = scalar_lea.hbm %s8317_s14, 512 }
  0xc0   :  { %p7446_p9 = scmp.ne.s32.totalorder %s8317_s14, %s7445_s26  ;;  %p7449_p10 = scmp.lt.u32.totalorder %s7445_s26, %s8317_s14 }
  0xc2   :  { %p7451_p11 = pnand %p7449_p10, %p7446_p9 }
  0xc4   :  { %7454 = shalt.err (!%p7451_p11)
}
  0xc5   :  { %s7455_s13 = scalar_lea.vmem %s257_s24, 512  ;;  %p7460_p13 = scmp.lt.s32.totalorder %s257_s24, %s257_s24 }
  0xc6   :  { %p7456_p12 = scmp.ne.s32.totalorder %s257_s24, %s7455_s13  ;;  %p7461_p0 = scmp.lt.s32.totalorder %s7455_s13, %s7455_s13 }
  0xc8   :  { %p7462_p1 = por %p7461_p0, %p7460_p13 }
  0xca   :  { %p7463_p2 = pnand %p7462_p1, %p7456_p12 }
  0xcc   :  { %7466 = shalt.err (!%p7463_p2)
}
  0xcd   :  { %262 = dma.hbm_to_vmem [thread:$0]  %s8317_s14, 512, %s257_s24, [#allocation22], %s8181_s22, %s8181_s22, %s8182_s30  }
  0xce   :  { %s8183_s12 = smov [#allocation24]   ;;  %s8184_s2 = smov [#allocation27]  }
  0xcf   :  { %s280_s28 = sshll.u32 %s8183_s12, 4  ;;  %s308_s16 = sshll.u32 %s8184_s2, 4  ;;  %s281_s28 = int_to_ptr.vmem [resolvable:$true] %s280_s28  ;;  %s309_s16 = int_to_ptr.vmem [resolvable:$true] %s308_s16 }
  0xd0   :  { %s7467_s7 = scalar_lea.hbm %s8327_s3, 512 }
  0xd1   :  { %p7468_p3 = scmp.ne.s32.totalorder %s8327_s3, %s7467_s7  ;;  %p7471_p4 = scmp.lt.u32.totalorder %s7467_s7, %s8327_s3 }
  0xd3   :  { %p7473_p5 = pnand %p7471_p4, %p7468_p3 }
  0xd5   :  { %7476 = shalt.err (!%p7473_p5)
}
  0xd6   :  { %s7477_s11 = scalar_lea.vmem %s281_s28, 512  ;;  %p7482_p7 = scmp.lt.s32.totalorder %s281_s28, %s281_s28 }
  0xd7   :  { %p7478_p6 = scmp.ne.s32.totalorder %s281_s28, %s7477_s11  ;;  %p7483_p8 = scmp.lt.s32.totalorder %s7477_s11, %s7477_s11 }
  0xd9   :  { %p7484_p9 = por %p7483_p8, %p7482_p7 }
  0xdb   :  { %p7485_p10 = pnand %p7484_p9, %p7478_p6 }
  0xdd   :  { %7488 = shalt.err (!%p7485_p10)
}
  0xde   :  { %286 = dma.hbm_to_vmem [thread:$0]  %s8327_s3, 512, %s281_s28, [#allocation25], %s8181_s22, %s8181_s22, %s8182_s30  }
  0xdf   :  { %s7489_s14 = scalar_lea.hbm %s8347_s29, 2048 }
  0xe0   :  { %p7490_p11 = scmp.ne.s32.totalorder %s8347_s29, %s7489_s14  ;;  %p7493_p12 = scmp.lt.u32.totalorder %s7489_s14, %s8347_s29 }
  0xe2   :  { %p7495_p13 = pnand %p7493_p12, %p7490_p11 }
  0xe4   :  { %7498 = shalt.err (!%p7495_p13)
}
  0xe5   :  { %s7499_s21 = scalar_lea.vmem %s309_s16, 2048  ;;  %p7504_p1 = scmp.lt.s32.totalorder %s309_s16, %s309_s16 }
  0xe6   :  { %p7500_p0 = scmp.ne.s32.totalorder %s309_s16, %s7499_s21  ;;  %p7505_p2 = scmp.lt.s32.totalorder %s7499_s21, %s7499_s21 }
  0xe8   :  { %p7506_p3 = por %p7505_p2, %p7504_p1 }
  0xea   :  { %p7507_p4 = pnand %p7506_p3, %p7500_p0 }
  0xec   :  { %7510 = shalt.err (!%p7507_p4)
}
  0xed   :  { %s8185_s20 = smov 512   ;;  %s8186_s19 = smov 32  }
  0xee   :  { %314 = dma.hbm_to_vmem [thread:$0]  %s8347_s29, 2048, %s309_s16, [#allocation28], %s8185_s20, %s8185_s20, %s8186_s19  }
  0xef   :  { %s8187_s3 = smov [#allocation30]   ;;  %s8188_s18 = smov [#allocation33]  }
  0xf0   :  { %s330_s15 = sshll.u32 %s8187_s3, 4  ;;  %s356_s24 = sshll.u32 %s8188_s18, 4  ;;  %s331_s15 = int_to_ptr.vmem [resolvable:$true] %s330_s15  ;;  %s357_s24 = int_to_ptr.vmem [resolvable:$true] %s356_s24 }
  0xf1   :  { %s7511_s0 = scalar_lea.hbm %s8357_s4, 8192 }
  0xf2   :  { %p7512_p5 = scmp.ne.s32.totalorder %s8357_s4, %s7511_s0  ;;  %p7515_p6 = scmp.lt.u32.totalorder %s7511_s0, %s8357_s4 }
  0xf4   :  { %p7517_p7 = pnand %p7515_p6, %p7512_p5 }
  0xf6   :  { %7520 = shalt.err (!%p7517_p7)
}
  0xf7   :  { %s7521_s5 = scalar_lea.vmem %s331_s15, 8192  ;;  %p7526_p9 = scmp.lt.s32.totalorder %s331_s15, %s331_s15 }
  0xf8   :  { %p7522_p8 = scmp.ne.s32.totalorder %s331_s15, %s7521_s5  ;;  %p7527_p10 = scmp.lt.s32.totalorder %s7521_s5, %s7521_s5 }
  0xfa   :  { %p7528_p11 = por %p7527_p10, %p7526_p9 }
  0xfc   :  { %p7529_p12 = pnand %p7528_p11, %p7522_p8 }
  0xfe   :  { %7532 = shalt.err (!%p7529_p12)
}
  0xff   :  { %336 = dma.hbm_to_vmem [thread:$0]  %s8357_s4, 8192, %s331_s15, [#allocation31], %s8181_s22, %s8181_s22, %s8182_s30  }
 0x100   :  { %s7533_s29 = scalar_lea.hbm %s8377_s17, 512 }
 0x101   :  { %p7534_p13 = scmp.ne.s32.totalorder %s8377_s17, %s7533_s29  ;;  %p7537_p0 = scmp.lt.u32.totalorder %s7533_s29, %s8377_s17 }
 0x103   :  { %p7539_p1 = pnand %p7537_p0, %p7534_p13 }
 0x105   :  { %7542 = shalt.err (!%p7539_p1)
}
 0x106   :  { %s7543_s26 = scalar_lea.vmem %s357_s24, 512  ;;  %p7548_p3 = scmp.lt.s32.totalorder %s357_s24, %s357_s24 }
 0x107   :  { %p7544_p2 = scmp.ne.s32.totalorder %s357_s24, %s7543_s26  ;;  %p7549_p4 = scmp.lt.s32.totalorder %s7543_s26, %s7543_s26 }
 0x109   :  { %p7550_p5 = por %p7549_p4, %p7548_p3 }
 0x10b   :  { %p7551_p6 = pnand %p7550_p5, %p7544_p2 }
 0x10d   :  { %7554 = shalt.err (!%p7551_p6)
}
 0x10e   :  { %362 = dma.hbm_to_vmem [thread:$0]  %s8377_s17, 512, %s357_s24, [#allocation34], %s8181_s22, %s8181_s22, %s8182_s30  }
 0x10f   :  { %s8189_s4 = smov [#allocation36]   ;;  %s8190_s12 = smov [#allocation39]  }
 0x110   :  { %s380_s13 = sshll.u32 %s8189_s4, 4  ;;  %s408_s28 = sshll.u32 %s8190_s12, 4  ;;  %s381_s13 = int_to_ptr.vmem [resolvable:$true] %s380_s13  ;;  %s409_s28 = int_to_ptr.vmem [resolvable:$true] %s408_s28 }
 0x111   :  { %s7555_s2 = scalar_lea.hbm %s8387_s8, 512 }
 0x112   :  { %p7556_p7 = scmp.ne.s32.totalorder %s8387_s8, %s7555_s2  ;;  %p7559_p8 = scmp.lt.u32.totalorder %s7555_s2, %s8387_s8 }
 0x114   :  { %p7561_p9 = pnand %p7559_p8, %p7556_p7 }
 0x116   :  { %7564 = shalt.err (!%p7561_p9)
}
 0x117   :  { %s7565_s16 = scalar_lea.vmem %s381_s13, 512  ;;  %p7570_p11 = scmp.lt.s32.totalorder %s381_s13, %s381_s13 }
 0x118   :  { %p7566_p10 = scmp.ne.s32.totalorder %s381_s13, %s7565_s16  ;;  %p7571_p12 = scmp.lt.s32.totalorder %s7565_s16, %s7565_s16 }
 0x11a   :  { %p7572_p13 = por %p7571_p12, %p7570_p11 }
 0x11c   :  { %p7573_p0 = pnand %p7572_p13, %p7566_p10 }
 0x11e   :  { %7576 = shalt.err (!%p7573_p0)
}
 0x11f   :  { %386 = dma.hbm_to_vmem [thread:$0]  %s8387_s8, 512, %s381_s13, [#allocation37], %s8181_s22, %s8181_s22, %s8182_s30  }
 0x120   :  { %s7577_s17 = scalar_lea.hbm %s8407_s6, 2048 }
 0x121   :  { %p7578_p1 = scmp.ne.s32.totalorder %s8407_s6, %s7577_s17  ;;  %p7581_p2 = scmp.lt.u32.totalorder %s7577_s17, %s8407_s6 }
 0x123   :  { %p7583_p3 = pnand %p7581_p2, %p7578_p1 }
 0x125   :  { %7586 = shalt.err (!%p7583_p3)
}
 0x126   :  { %s7587_s7 = scalar_lea.vmem %s409_s28, 2048  ;;  %p7592_p5 = scmp.lt.s32.totalorder %s409_s28, %s409_s28 }
 0x127   :  { %p7588_p4 = scmp.ne.s32.totalorder %s409_s28, %s7587_s7  ;;  %p7593_p6 = scmp.lt.s32.totalorder %s7587_s7, %s7587_s7 }
 0x129   :  { %p7594_p7 = por %p7593_p6, %p7592_p5 }
 0x12b   :  { %p7595_p8 = pnand %p7594_p7, %p7588_p4 }
 0x12d   :  { %7598 = shalt.err (!%p7595_p8)
}
 0x12e   :  { %414 = dma.hbm_to_vmem [thread:$0]  %s8407_s6, 2048, %s409_s28, [#allocation40], %s8185_s20, %s8185_s20, %s8186_s19  }
 0x12f   :  { %s8191_s8 = smov [#allocation42]   ;;  %s8192_s14 = smov [#allocation45]  }
 0x130   :  { %s433_s11 = sshll.u32 %s8191_s8, 4  ;;  %s455_s21 = sshll.u32 %s8192_s14, 4  ;;  %s434_s11 = int_to_ptr.vmem [resolvable:$true] %s433_s11  ;;  %s456_s21 = int_to_ptr.vmem [resolvable:$true] %s455_s21 }
 0x131   :  { %s7599_s3 = scalar_lea.hbm %s8422_s27, 16 }
 0x132   :  { %p7600_p9 = scmp.ne.s32.totalorder %s8422_s27, %s7599_s3  ;;  %p7603_p10 = scmp.lt.u32.totalorder %s7599_s3, %s8422_s27 }
 0x134   :  { %p7605_p11 = pnand %p7603_p10, %p7600_p9 }
 0x136   :  { %7608 = shalt.err (!%p7605_p11)
}
 0x137   :  { %s7609_s15 = scalar_lea.vmem %s434_s11, 16  ;;  %s7613_s18 = scalar_lea.vmem %s434_s11, 32 }
 0x138   :  { %p7610_p12 = scmp.ne.s32.totalorder %s434_s11, %s7609_s15  ;;  %p7614_p13 = scmp.lt.s32.totalorder %s434_s11, %s434_s11 }
 0x139   :  { %p7615_p0 = scmp.lt.s32.totalorder %s7613_s18, %s7609_s15 }
 0x13b   :  { %p7616_p1 = por %p7615_p0, %p7614_p13 }
 0x13d   :  { %p7617_p2 = pnand %p7616_p1, %p7610_p12 }
 0x13f   :  { %7620 = shalt.err (!%p7617_p2)
}
 0x140   :  { %436 = dma.hbm_to_vmem [thread:$0]  %s8422_s27, 16, %s434_s11, [#allocation43]  }
 0x141   :  { %s7621_s6 = scalar_lea.hbm %s8432_s9, 16 }
 0x142   :  { %p7622_p3 = scmp.ne.s32.totalorder %s8432_s9, %s7621_s6  ;;  %p7625_p4 = scmp.lt.u32.totalorder %s7621_s6, %s8432_s9 }
 0x144   :  { %p7627_p5 = pnand %p7625_p4, %p7622_p3 }
 0x146   :  { %7630 = shalt.err (!%p7627_p5)
}
 0x147   :  { %s7631_s20 = scalar_lea.vmem %s456_s21, 16  ;;  %s7635_s24 = scalar_lea.vmem %s456_s21, 32 }
 0x148   :  { %p7632_p6 = scmp.ne.s32.totalorder %s456_s21, %s7631_s20  ;;  %p7636_p7 = scmp.lt.s32.totalorder %s456_s21, %s456_s21 }
 0x149   :  { %p7637_p8 = scmp.lt.s32.totalorder %s7635_s24, %s7631_s20 }
 0x14b   :  { %p7638_p9 = por %p7637_p8, %p7636_p7 }
 0x14d   :  { %p7639_p10 = pnand %p7638_p9, %p7632_p6 }
 0x14f   :  { %7642 = shalt.err (!%p7639_p10)
}
 0x150   :  { %s9847_s0 = sld [smem:[#allocation105_spill]]  ;;  %s8193_s27 = smov [#allocation48]  }
 0x151   :  { %458 = dma.hbm_to_vmem [thread:$0]  %s8432_s9, 16, %s456_s21, [#allocation46]  }
 0x152   :  { %s474_s5 = sshll.u32 %s8193_s27, 4  ;;  %s8194_s29 = smov [#allocation51]   ;;  %s475_s5 = int_to_ptr.vmem [resolvable:$true] %s474_s5 }
 0x153   :  { %s500_s26 = sshll.u32 %s8194_s29, 4  ;;  %s501_s26 = int_to_ptr.vmem [resolvable:$true] %s500_s26 }
 0x156   :  { %s7643_s4 = scalar_lea.hbm %s9847_s0, 512 }
 0x157   :  { %p7644_p11 = scmp.ne.s32.totalorder %s9847_s0, %s7643_s4  ;;  %p7647_p12 = scmp.lt.u32.totalorder %s7643_s4, %s9847_s0 }
 0x159   :  { %p7649_p13 = pnand %p7647_p12, %p7644_p11 }
 0x15b   :  { %7652 = shalt.err (!%p7649_p13)
}
 0x15c   :  { %s7653_s13 = scalar_lea.vmem %s475_s5, 512  ;;  %p7658_p1 = scmp.lt.s32.totalorder %s475_s5, %s475_s5 }
 0x15d   :  { %p7654_p0 = scmp.ne.s32.totalorder %s475_s5, %s7653_s13  ;;  %p7659_p2 = scmp.lt.s32.totalorder %s7653_s13, %s7653_s13 }
 0x15f   :  { %p7660_p3 = por %p7659_p2, %p7658_p1 }
 0x161   :  { %p7661_p4 = pnand %p7660_p3, %p7654_p0 }
 0x163   :  { %7664 = shalt.err (!%p7661_p4)
}
 0x164   :  { %s9848_s9 = sld [smem:[#allocation108_spill]] }
 0x165   :  { %480 = dma.hbm_to_vmem [thread:$0]  %s9847_s0, 512, %s475_s5, [#allocation49], %s8181_s22, %s8181_s22, %s8182_s30  }
 0x16a   :  { %s7665_s12 = scalar_lea.hbm %s9848_s9, 512 }
 0x16b   :  { %p7666_p5 = scmp.ne.s32.totalorder %s9848_s9, %s7665_s12  ;;  %p7669_p6 = scmp.lt.u32.totalorder %s7665_s12, %s9848_s9 }
 0x16d   :  { %p7671_p7 = pnand %p7669_p6, %p7666_p5 }
 0x16f   :  { %7674 = shalt.err (!%p7671_p7)
}
 0x170   :  { %s7675_s28 = scalar_lea.vmem %s501_s26, 512  ;;  %p7680_p9 = scmp.lt.s32.totalorder %s501_s26, %s501_s26 }
 0x171   :  { %p7676_p8 = scmp.ne.s32.totalorder %s501_s26, %s7675_s28  ;;  %p7681_p10 = scmp.lt.s32.totalorder %s7675_s28, %s7675_s28 }
 0x173   :  { %p7682_p11 = por %p7681_p10, %p7680_p9 }
 0x175   :  { %p7683_p12 = pnand %p7682_p11, %p7676_p8 }
 0x177   :  { %7686 = shalt.err (!%p7683_p12)
}
 0x178   :  { %s9849_s2 = sld [smem:[#allocation77_spill]]  ;;  %s8195_s16 = smov [#allocation6]  }
 0x179   :  { %506 = dma.hbm_to_vmem [thread:$0]  %s9848_s9, 512, %s501_s26, [#allocation52], %s8181_s22, %s8181_s22, %s8182_s30  }
 0x17a   :  { %s148_s17 = sshll.u32 %s8195_s16, 4  ;;  %s8196_s7 = smov [#allocation11]   ;;  %s149_s17 = int_to_ptr.vmem [resolvable:$true] %s148_s17 }
 0x17b   :  { %s173_s8 = sshll.u32 %s8196_s7, 4  ;;  %s174_s8 = int_to_ptr.vmem [resolvable:$true] %s173_s8 }
 0x17e   :  { %s7687_s11 = scalar_lea.hbm %s9849_s2, 512 }
 0x17f   :  { %p7688_p13 = scmp.ne.s32.totalorder %s9849_s2, %s7687_s11  ;;  %p7691_p0 = scmp.lt.u32.totalorder %s7687_s11, %s9849_s2 }
 0x181   :  { %p7693_p1 = pnand %p7691_p0, %p7688_p13 }
 0x183   :  { %7696 = shalt.err (!%p7693_p1)
}
 0x184   :  { %s7697_s14 = scalar_lea.vmem %s149_s17, 512  ;;  %p7702_p3 = scmp.lt.s32.totalorder %s149_s17, %s149_s17 }
 0x185   :  { %p7698_p2 = scmp.ne.s32.totalorder %s149_s17, %s7697_s14  ;;  %p7703_p4 = scmp.lt.s32.totalorder %s7697_s14, %s7697_s14 }
 0x187   :  { %p7704_p5 = por %p7703_p4, %p7702_p3 }
 0x189   :  { %p7705_p6 = pnand %p7704_p5, %p7698_p2 }
 0x18b   :  { %7708 = shalt.err (!%p7705_p6)
}
 0x18c   :  { %s9850_s21 = sld [smem:[#allocation79_spill]] }
 0x18d   :  { %154 = dma.hbm_to_vmem [thread:$0]  %s9849_s2, 512, %s149_s17, [#allocation7], %s8181_s22, %s8181_s22, %s8182_s30  }
 0x192   :  { %s7709_s3 = scalar_lea.hbm %s9850_s21, 32 }
 0x193   :  { %p7710_p7 = scmp.ne.s32.totalorder %s9850_s21, %s7709_s3  ;;  %p7713_p8 = scmp.lt.u32.totalorder %s7709_s3, %s9850_s21 }
 0x195   :  { %p7715_p9 = pnand %p7713_p8, %p7710_p7 }
 0x197   :  { %7718 = shalt.err (!%p7715_p9)
}
 0x198   :  { %s7719_s15 = scalar_lea.vmem %s174_s8, 32  ;;  %p7724_p11 = scmp.lt.s32.totalorder %s174_s8, %s174_s8 }
 0x199   :  { %p7720_p10 = scmp.ne.s32.totalorder %s174_s8, %s7719_s15  ;;  %p7725_p12 = scmp.lt.s32.totalorder %s7719_s15, %s7719_s15 }
 0x19b   :  { %p7726_p13 = por %p7725_p12, %p7724_p11 }
 0x19d   :  { %p7727_p0 = pnand %p7726_p13, %p7720_p10 }
 0x19f   :  { %7730 = shalt.err (!%p7727_p0)
}
 0x1a0   :  { %s9851_s18 = sld [smem:[#allocation84_spill]]  ;;  %s8197_s6 = smov [#allocation14]  }
 0x1a1   :  { %176 = dma.hbm_to_vmem [thread:$0]  %s9850_s21, 32, %s174_s8, [#allocation10]  }
 0x1a2   :  { %s201_s20 = sshll.u32 %s8197_s6, 4  ;;  %s8198_s24 = smov [#allocation17]   ;;  %s202_s20 = int_to_ptr.vmem [resolvable:$true] %s201_s20 }
 0x1a3   :  { %s221_s0 = sshll.u32 %s8198_s24, 4  ;;  %s222_s0 = int_to_ptr.vmem [resolvable:$true] %s221_s0 }
 0x1a6   :  { %s7731_s27 = scalar_lea.hbm %s9851_s18, 16 }
 0x1a7   :  { %p7732_p1 = scmp.ne.s32.totalorder %s9851_s18, %s7731_s27  ;;  %p7735_p2 = scmp.lt.u32.totalorder %s7731_s27, %s9851_s18 }
 0x1a9   :  { %p7737_p3 = pnand %p7735_p2, %p7732_p1 }
 0x1ab   :  { %7740 = shalt.err (!%p7737_p3)
}
 0x1ac   :  { %s7741_s5 = scalar_lea.vmem %s202_s20, 16  ;;  %s7745_s29 = scalar_lea.vmem %s202_s20, 32 }
 0x1ad   :  { %p7742_p4 = scmp.ne.s32.totalorder %s202_s20, %s7741_s5  ;;  %p7746_p5 = scmp.lt.s32.totalorder %s202_s20, %s202_s20 }
 0x1ae   :  { %p7747_p6 = scmp.lt.s32.totalorder %s7745_s29, %s7741_s5 }
 0x1b0   :  { %p7748_p7 = por %p7747_p6, %p7746_p5 }
 0x1b2   :  { %p7749_p8 = pnand %p7748_p7, %p7742_p4 }
 0x1b4   :  { %7752 = shalt.err (!%p7749_p8)
}
 0x1b5   :  { %s9852_s26 = sld [smem:[#allocation85_spill]] }
 0x1b6   :  { %204 = dma.hbm_to_vmem [thread:$0]  %s9851_s18, 16, %s202_s20, [#allocation13]  }
 0x1bb   :  { %s7753_s4 = scalar_lea.hbm %s9852_s26, 16 }
 0x1bc   :  { %p7754_p9 = scmp.ne.s32.totalorder %s9852_s26, %s7753_s4  ;;  %p7757_p10 = scmp.lt.u32.totalorder %s7753_s4, %s9852_s26 }
 0x1be   :  { %p7759_p11 = pnand %p7757_p10, %p7754_p9 }
 0x1c0   :  { %7762 = shalt.err (!%p7759_p11)
}
 0x1c1   :  { %s7763_s13 = scalar_lea.vmem %s222_s0, 16  ;;  %s7767_s9 = scalar_lea.vmem %s222_s0, 32 }
 0x1c2   :  { %p7764_p12 = scmp.ne.s32.totalorder %s222_s0, %s7763_s13  ;;  %p7768_p13 = scmp.lt.s32.totalorder %s222_s0, %s222_s0 }
 0x1c3   :  { %p7769_p0 = scmp.lt.s32.totalorder %s7767_s9, %s7763_s13 }
 0x1c5   :  { %p7770_p1 = por %p7769_p0, %p7768_p13 }
 0x1c7   :  { %p7771_p2 = pnand %p7770_p1, %p7764_p12 }
 0x1c9   :  { %7774 = shalt.err (!%p7771_p2)
}
 0x1ca   :  { %s9853_s12 = sld [smem:[#allocation86_spill]]  ;;  %s8199_s28 = smov [#allocation20]  }
 0x1cb   :  { %224 = dma.hbm_to_vmem [thread:$0]  %s9852_s26, 16, %s222_s0, [#allocation16]  }
 0x1cc   :  { %s243_s2 = sshll.u32 %s8199_s28, 4  ;;  %s8200_s16 = smov [#allocation23]   ;;  %s244_s2 = int_to_ptr.vmem [resolvable:$true] %s243_s2 }
 0x1cd   :  { %s268_s17 = sshll.u32 %s8200_s16, 4  ;;  %s269_s17 = int_to_ptr.vmem [resolvable:$true] %s268_s17 }
 0x1d0   :  { %s7775_s7 = scalar_lea.hbm %s9853_s12, 16 }
 0x1d1   :  { %p7776_p3 = scmp.ne.s32.totalorder %s9853_s12, %s7775_s7  ;;  %p7779_p4 = scmp.lt.u32.totalorder %s7775_s7, %s9853_s12 }
 0x1d3   :  { %p7781_p5 = pnand %p7779_p4, %p7776_p3 }
 0x1d5   :  { %7784 = shalt.err (!%p7781_p5)
}
 0x1d6   :  { %s7785_s8 = scalar_lea.vmem %s244_s2, 16  ;;  %s7789_s11 = scalar_lea.vmem %s244_s2, 32 }
 0x1d7   :  { %p7786_p6 = scmp.ne.s32.totalorder %s244_s2, %s7785_s8  ;;  %p7790_p7 = scmp.lt.s32.totalorder %s244_s2, %s244_s2 }
 0x1d8   :  { %p7791_p8 = scmp.lt.s32.totalorder %s7789_s11, %s7785_s8 }
 0x1da   :  { %p7792_p9 = por %p7791_p8, %p7790_p7 }
 0x1dc   :  { %p7793_p10 = pnand %p7792_p9, %p7786_p6 }
 0x1de   :  { %7796 = shalt.err (!%p7793_p10)
}
 0x1df   :  { %s9854_s14 = sld [smem:[#allocation89_spill]] }
 0x1e0   :  { %246 = dma.hbm_to_vmem [thread:$0]  %s9853_s12, 16, %s244_s2, [#allocation19]  }
 0x1e5   :  { %s7797_s21 = scalar_lea.hbm %s9854_s14, 512 }
 0x1e6   :  { %p7798_p11 = scmp.ne.s32.totalorder %s9854_s14, %s7797_s21  ;;  %p7801_p12 = scmp.lt.u32.totalorder %s7797_s21, %s9854_s14 }
 0x1e8   :  { %p7803_p13 = pnand %p7801_p12, %p7798_p11 }
 0x1ea   :  { %7806 = shalt.err (!%p7803_p13)
}
 0x1eb   :  { %s7807_s3 = scalar_lea.vmem %s269_s17, 512  ;;  %p7812_p1 = scmp.lt.s32.totalorder %s269_s17, %s269_s17 }
 0x1ec   :  { %p7808_p0 = scmp.ne.s32.totalorder %s269_s17, %s7807_s3  ;;  %p7813_p2 = scmp.lt.s32.totalorder %s7807_s3, %s7807_s3 }
 0x1ee   :  { %p7814_p3 = por %p7813_p2, %p7812_p1 }
 0x1f0   :  { %p7815_p4 = pnand %p7814_p3, %p7808_p0 }
 0x1f2   :  { %7818 = shalt.err (!%p7815_p4)
}
 0x1f3   :  { %s9855_s15 = sld [smem:[#allocation90_spill]]  ;;  %s8201_s18 = smov [#allocation26]  }
 0x1f4   :  { %274 = dma.hbm_to_vmem [thread:$0]  %s9854_s14, 512, %s269_s17, [#allocation22], %s8181_s22, %s8181_s22, %s8182_s30  }
 0x1f5   :  { %s292_s6 = sshll.u32 %s8201_s18, 4  ;;  %s8202_s20 = smov [#allocation29]   ;;  %s293_s6 = int_to_ptr.vmem [resolvable:$true] %s292_s6 }
 0x1f6   :  { %s321_s24 = sshll.u32 %s8202_s20, 4  ;;  %s322_s24 = int_to_ptr.vmem [resolvable:$true] %s321_s24 }
 0x1f9   :  { %s7819_s0 = scalar_lea.hbm %s9855_s15, 512 }
 0x1fa   :  { %p7820_p5 = scmp.ne.s32.totalorder %s9855_s15, %s7819_s0  ;;  %p7823_p6 = scmp.lt.u32.totalorder %s7819_s0, %s9855_s15 }
 0x1fc   :  { %p7825_p7 = pnand %p7823_p6, %p7820_p5 }
 0x1fe   :  { %7828 = shalt.err (!%p7825_p7)
}
 0x1ff   :  { %s7829_s27 = scalar_lea.vmem %s293_s6, 512  ;;  %p7834_p9 = scmp.lt.s32.totalorder %s293_s6, %s293_s6 }
 0x200   :  { %p7830_p8 = scmp.ne.s32.totalorder %s293_s6, %s7829_s27  ;;  %p7835_p10 = scmp.lt.s32.totalorder %s7829_s27, %s7829_s27 }
 0x202   :  { %p7836_p11 = por %p7835_p10, %p7834_p9 }
 0x204   :  { %p7837_p12 = pnand %p7836_p11, %p7830_p8 }
 0x206   :  { %7840 = shalt.err (!%p7837_p12)
}
 0x207   :  { %s9856_s5 = sld [smem:[#allocation93_spill]] }
 0x208   :  { %298 = dma.hbm_to_vmem [thread:$0]  %s9855_s15, 512, %s293_s6, [#allocation25], %s8181_s22, %s8181_s22, %s8182_s30  }
 0x20d   :  { %s7841_s29 = scalar_lea.hbm %s9856_s5, 64 }
 0x20e   :  { %p7842_p13 = scmp.ne.s32.totalorder %s9856_s5, %s7841_s29  ;;  %p7845_p0 = scmp.lt.u32.totalorder %s7841_s29, %s9856_s5 }
 0x210   :  { %p7847_p1 = pnand %p7845_p0, %p7842_p13 }
 0x212   :  { %7850 = shalt.err (!%p7847_p1)
}
 0x213   :  { %s7851_s26 = scalar_lea.vmem %s322_s24, 64  ;;  %p7856_p3 = scmp.lt.s32.totalorder %s322_s24, %s322_s24 }
 0x214   :  { %p7852_p2 = scmp.ne.s32.totalorder %s322_s24, %s7851_s26  ;;  %p7857_p4 = scmp.lt.s32.totalorder %s7851_s26, %s7851_s26 }
 0x216   :  { %p7858_p5 = por %p7857_p4, %p7856_p3 }
 0x218   :  { %p7859_p6 = pnand %p7858_p5, %p7852_p2 }
 0x21a   :  { %7862 = shalt.err (!%p7859_p6)
}
 0x21b   :  { %s9857_s4 = sld [smem:[#allocation94_spill]]  ;;  %s8203_s13 = smov [#allocation32]  }
 0x21c   :  { %324 = dma.hbm_to_vmem [thread:$0]  %s9856_s5, 64, %s322_s24, [#allocation28]  }
 0x21d   :  { %s343_s9 = sshll.u32 %s8203_s13, 4  ;;  %s8204_s12 = smov [#allocation35]   ;;  %s344_s9 = int_to_ptr.vmem [resolvable:$true] %s343_s9 }
 0x21e   :  { %s368_s28 = sshll.u32 %s8204_s12, 4  ;;  %s369_s28 = int_to_ptr.vmem [resolvable:$true] %s368_s28 }
 0x221   :  { %s7863_s2 = scalar_lea.hbm %s9857_s4, 16 }
 0x222   :  { %p7864_p7 = scmp.ne.s32.totalorder %s9857_s4, %s7863_s2  ;;  %p7867_p8 = scmp.lt.u32.totalorder %s7863_s2, %s9857_s4 }
 0x224   :  { %p7869_p9 = pnand %p7867_p8, %p7864_p7 }
 0x226   :  { %7872 = shalt.err (!%p7869_p9)
}
 0x227   :  { %s7873_s16 = scalar_lea.vmem %s344_s9, 16  ;;  %s7877_s17 = scalar_lea.vmem %s344_s9, 32 }
 0x228   :  { %p7874_p10 = scmp.ne.s32.totalorder %s344_s9, %s7873_s16  ;;  %p7878_p11 = scmp.lt.s32.totalorder %s344_s9, %s344_s9 }
 0x229   :  { %p7879_p12 = scmp.lt.s32.totalorder %s7877_s17, %s7873_s16 }
 0x22b   :  { %p7880_p13 = por %p7879_p12, %p7878_p11 }
 0x22d   :  { %p7881_p0 = pnand %p7880_p13, %p7874_p10 }
 0x22f   :  { %7884 = shalt.err (!%p7881_p0)
}
 0x230   :  { %s9858_s7 = sld [smem:[#allocation97_spill]] }
 0x231   :  { %346 = dma.hbm_to_vmem [thread:$0]  %s9857_s4, 16, %s344_s9, [#allocation31]  }
 0x236   :  { %s7885_s8 = scalar_lea.hbm %s9858_s7, 512 }
 0x237   :  { %p7886_p1 = scmp.ne.s32.totalorder %s9858_s7, %s7885_s8  ;;  %p7889_p2 = scmp.lt.u32.totalorder %s7885_s8, %s9858_s7 }
 0x239   :  { %p7891_p3 = pnand %p7889_p2, %p7886_p1 }
 0x23b   :  { %7894 = shalt.err (!%p7891_p3)
}
 0x23c   :  { %s7895_s11 = scalar_lea.vmem %s369_s28, 512  ;;  %p7900_p5 = scmp.lt.s32.totalorder %s369_s28, %s369_s28 }
 0x23d   :  { %p7896_p4 = scmp.ne.s32.totalorder %s369_s28, %s7895_s11  ;;  %p7901_p6 = scmp.lt.s32.totalorder %s7895_s11, %s7895_s11 }
 0x23f   :  { %p7902_p7 = por %p7901_p6, %p7900_p5 }
 0x241   :  { %p7903_p8 = pnand %p7902_p7, %p7896_p4 }
 0x243   :  { %7906 = shalt.err (!%p7903_p8)
}
 0x244   :  { %s9859_s14 = sld [smem:[#allocation98_spill]]  ;;  %s8205_s21 = smov [#allocation38]  }
 0x245   :  { %374 = dma.hbm_to_vmem [thread:$0]  %s9858_s7, 512, %s369_s28, [#allocation34], %s8181_s22, %s8181_s22, %s8182_s30  }
 0x246   :  { %s392_s3 = sshll.u32 %s8205_s21, 4  ;;  %s8206_s15 = smov [#allocation41]   ;;  %s393_s3 = int_to_ptr.vmem [resolvable:$true] %s392_s3 }
 0x247   :  { %s421_s18 = sshll.u32 %s8206_s15, 4  ;;  %s422_s18 = int_to_ptr.vmem [resolvable:$true] %s421_s18 }
 0x24a   :  { %s7907_s6 = scalar_lea.hbm %s9859_s14, 512 }
 0x24b   :  { %p7908_p9 = scmp.ne.s32.totalorder %s9859_s14, %s7907_s6  ;;  %p7911_p10 = scmp.lt.u32.totalorder %s7907_s6, %s9859_s14 }
 0x24d   :  { %p7913_p11 = pnand %p7911_p10, %p7908_p9 }
 0x24f   :  { %7916 = shalt.err (!%p7913_p11)
}
 0x250   :  { %s7917_s20 = scalar_lea.vmem %s393_s3, 512  ;;  %p7922_p13 = scmp.lt.s32.totalorder %s393_s3, %s393_s3 }
 0x251   :  { %p7918_p12 = scmp.ne.s32.totalorder %s393_s3, %s7917_s20  ;;  %p7923_p0 = scmp.lt.s32.totalorder %s7917_s20, %s7917_s20 }
 0x253   :  { %p7924_p1 = por %p7923_p0, %p7922_p13 }
 0x255   :  { %p7925_p2 = pnand %p7924_p1, %p7918_p12 }
 0x257   :  { %7928 = shalt.err (!%p7925_p2)
}
 0x258   :  { %s9860_s24 = sld [smem:[#allocation101_spill]] }
 0x259   :  { %398 = dma.hbm_to_vmem [thread:$0]  %s9859_s14, 512, %s393_s3, [#allocation37], %s8181_s22, %s8181_s22, %s8182_s30  }
 0x25e   :  { %s7929_s0 = scalar_lea.hbm %s9860_s24, 64 }
 0x25f   :  { %p7930_p3 = scmp.ne.s32.totalorder %s9860_s24, %s7929_s0  ;;  %p7933_p4 = scmp.lt.u32.totalorder %s7929_s0, %s9860_s24 }
 0x261   :  { %p7935_p5 = pnand %p7933_p4, %p7930_p3 }
 0x263   :  { %7938 = shalt.err (!%p7935_p5)
}
 0x264   :  { %s7939_s27 = scalar_lea.vmem %s422_s18, 64  ;;  %p7944_p7 = scmp.lt.s32.totalorder %s422_s18, %s422_s18 }
 0x265   :  { %p7940_p6 = scmp.ne.s32.totalorder %s422_s18, %s7939_s27  ;;  %p7945_p8 = scmp.lt.s32.totalorder %s7939_s27, %s7939_s27 }
 0x267   :  { %p7946_p9 = por %p7945_p8, %p7944_p7 }
 0x269   :  { %p7947_p10 = pnand %p7946_p9, %p7940_p6 }
 0x26b   :  { %7950 = shalt.err (!%p7947_p10)
}
 0x26c   :  { %s9861_s5 = sld [smem:[#allocation103_spill]]  ;;  %s8207_s29 = smov [#allocation44]  }
 0x26d   :  { %424 = dma.hbm_to_vmem [thread:$0]  %s9860_s24, 64, %s422_s18, [#allocation40]  }
 0x26e   :  { %s442_s26 = sshll.u32 %s8207_s29, 4  ;;  %s8208_s4 = smov [#allocation47]   ;;  %s443_s26 = int_to_ptr.vmem [resolvable:$true] %s442_s26 }
 0x26f   :  { %s465_s13 = sshll.u32 %s8208_s4, 4  ;;  %s466_s13 = int_to_ptr.vmem [resolvable:$true] %s465_s13 }
 0x272   :  { %s7951_s9 = scalar_lea.hbm %s9861_s5, 512 }
 0x273   :  { %p7952_p11 = scmp.ne.s32.totalorder %s9861_s5, %s7951_s9  ;;  %p7955_p12 = scmp.lt.u32.totalorder %s7951_s9, %s9861_s5 }
 0x275   :  { %p7957_p13 = pnand %p7955_p12, %p7952_p11 }
 0x277   :  { %7960 = shalt.err (!%p7957_p13)
}
 0x278   :  { %s7961_s12 = scalar_lea.vmem %s443_s26, 512  ;;  %p7966_p1 = scmp.lt.s32.totalorder %s443_s26, %s443_s26 }
 0x279   :  { %p7962_p0 = scmp.ne.s32.totalorder %s443_s26, %s7961_s12  ;;  %p7967_p2 = scmp.lt.s32.totalorder %s7961_s12, %s7961_s12 }
 0x27b   :  { %p7968_p3 = por %p7967_p2, %p7966_p1 }
 0x27d   :  { %p7969_p4 = pnand %p7968_p3, %p7962_p0 }
 0x27f   :  { %7972 = shalt.err (!%p7969_p4)
}
 0x280   :  { %s9862_s28 = sld [smem:[#allocation104_spill]] }
 0x281   :  { %448 = dma.hbm_to_vmem [thread:$0]  %s9861_s5, 512, %s443_s26, [#allocation43], %s8181_s22, %s8181_s22, %s8182_s30  }
 0x286   :  { %s7973_s2 = scalar_lea.hbm %s9862_s28, 16 }
 0x287   :  { %p7974_p5 = scmp.ne.s32.totalorder %s9862_s28, %s7973_s2  ;;  %p7977_p6 = scmp.lt.u32.totalorder %s7973_s2, %s9862_s28 }
 0x289   :  { %p7979_p7 = pnand %p7977_p6, %p7974_p5 }
 0x28b   :  { %7982 = shalt.err (!%p7979_p7)
}
 0x28c   :  { %s7983_s16 = scalar_lea.vmem %s466_s13, 16  ;;  %s7987_s17 = scalar_lea.vmem %s466_s13, 32 }
 0x28d   :  { %p7984_p8 = scmp.ne.s32.totalorder %s466_s13, %s7983_s16  ;;  %p7988_p9 = scmp.lt.s32.totalorder %s466_s13, %s466_s13 }
 0x28e   :  { %p7989_p10 = scmp.lt.s32.totalorder %s7987_s17, %s7983_s16 }
 0x290   :  { %p7990_p11 = por %p7989_p10, %p7988_p9 }
 0x292   :  { %p7991_p12 = pnand %p7990_p11, %p7984_p8 }
 0x294   :  { %7994 = shalt.err (!%p7991_p12)
}
 0x295   :  { %s9863_s7 = sld [smem:[#allocation106_spill]]  ;;  %s8209_s8 = smov [#allocation50]  }
 0x296   :  { %468 = dma.hbm_to_vmem [thread:$0]  %s9862_s28, 16, %s466_s13, [#allocation46]  }
 0x297   :  { %s486_s11 = sshll.u32 %s8209_s8, 4  ;;  %s8210_s14 = smov [#allocation53]   ;;  %s487_s11 = int_to_ptr.vmem [resolvable:$true] %s486_s11 }
 0x298   :  { %s519_s21 = sshll.u32 %s8210_s14, 4  ;;  %s520_s21 = int_to_ptr.vmem [resolvable:$true] %s519_s21 }
 0x29b   :  { %s7995_s3 = scalar_lea.hbm %s9863_s7, 512 }
 0x29c   :  { %p7996_p13 = scmp.ne.s32.totalorder %s9863_s7, %s7995_s3  ;;  %p7999_p0 = scmp.lt.u32.totalorder %s7995_s3, %s9863_s7 }
 0x29e   :  { %p8001_p1 = pnand %p7999_p0, %p7996_p13 }
 0x2a0   :  { %8004 = shalt.err (!%p8001_p1)
}
 0x2a1   :  { %s8005_s15 = scalar_lea.vmem %s487_s11, 512  ;;  %p8010_p3 = scmp.lt.s32.totalorder %s487_s11, %s487_s11 }
 0x2a2   :  { %p8006_p2 = scmp.ne.s32.totalorder %s487_s11, %s8005_s15  ;;  %p8011_p4 = scmp.lt.s32.totalorder %s8005_s15, %s8005_s15 }
 0x2a4   :  { %p8012_p5 = por %p8011_p4, %p8010_p3 }
 0x2a6   :  { %p8013_p6 = pnand %p8012_p5, %p8006_p2 }
 0x2a8   :  { %8016 = shalt.err (!%p8013_p6)
}
 0x2a9   :  { %492 = dma.hbm_to_vmem [thread:$0]  %s9863_s7, 512, %s487_s11, [#allocation49], %s8181_s22, %s8181_s22, %s8182_s30  }
 0x2aa   :  { %s8017_s18 = scalar_lea.hbm %s8477_s25, 16 }
 0x2ab   :  { %p8018_p7 = scmp.ne.s32.totalorder %s8477_s25, %s8017_s18  ;;  %p8021_p8 = scmp.lt.u32.totalorder %s8017_s18, %s8477_s25 }
 0x2ad   :  { %p8023_p9 = pnand %p8021_p8, %p8018_p7 }
 0x2af   :  { %8026 = shalt.err (!%p8023_p9)
}
 0x2b0   :  { %s8027_s6 = scalar_lea.vmem %s520_s21, 16  ;;  %s8031_s20 = scalar_lea.vmem %s520_s21, 32 }
 0x2b1   :  { %p8028_p10 = scmp.ne.s32.totalorder %s520_s21, %s8027_s6  ;;  %p8032_p11 = scmp.lt.s32.totalorder %s520_s21, %s520_s21 }
 0x2b2   :  { %p8033_p12 = scmp.lt.s32.totalorder %s8031_s20, %s8027_s6 }
 0x2b4   :  { %p8034_p13 = por %p8033_p12, %p8032_p11 }
 0x2b6   :  { %p8035_p0 = pnand %p8034_p13, %p8028_p10 }
 0x2b8   :  { %8038 = shalt.err (!%p8035_p0)
}
 0x2b9   :  { %522 = dma.hbm_to_vmem [thread:$0]  %s8477_s25, 16, %s520_s21, [#allocation52]  }
 0x2ba   :  { %8085 = dma.done.wait [#allocation7], 512  }
 0x2bb   :  { %8086 = vsyncadd [#allocation7], 4294966784 }
 0x2bc   :  { %8087 = dma.done.wait [#allocation10], 64  }
 0x2bd   :  { %8088 = vsyncadd [#allocation10], 4294967232 }
 0x2be   :  { %8089 = dma.done.wait [#allocation13], 80  }
 0x2bf   :  { %8090 = vsyncadd [#allocation13], 4294967216 }
 0x2c0   :  { %8091 = dma.done.wait [#allocation16], 80  }
 0x2c1   :  { %8092 = vsyncadd [#allocation16], 4294967216 }
 0x2c2   :  { %8093 = dma.done.wait [#allocation19], 528  }
 0x2c3   :  { %8094 = vsyncadd [#allocation19], 4294966768 }
 0x2c4   :  { %8095 = dma.done.wait [#allocation22], 1024  }
 0x2c5   :  { %8096 = vsyncadd [#allocation22], 4294966272 }
 0x2c6   :  { %8097 = dma.done.wait [#allocation25], 1024  }
 0x2c7   :  { %8098 = vsyncadd [#allocation25], 4294966272 }
 0x2c8   :  { %8099 = dma.done.wait [#allocation28], 2112  }
 0x2c9   :  { %8100 = vsyncadd [#allocation28], 4294965184 }
 0x2ca   :  { %8101 = dma.done.wait [#allocation31], 8208  }
 0x2cb   :  { %8102 = vsyncadd [#allocation31], 4294959088 }
 0x2cc   :  { %8103 = dma.done.wait [#allocation34], 1024  }
 0x2cd   :  { %8104 = vsyncadd [#allocation34], 4294966272 }
 0x2ce   :  { %8105 = dma.done.wait [#allocation37], 1024  }
 0x2cf   :  { %8106 = vsyncadd [#allocation37], 4294966272 }
 0x2d0   :  { %8107 = dma.done.wait [#allocation40], 2112  }
 0x2d1   :  { %8108 = vsyncadd [#allocation40], 4294965184 }
 0x2d2   :  { %8109 = dma.done.wait [#allocation43], 528  }
 0x2d3   :  { %8110 = vsyncadd [#allocation43], 4294966768 }
 0x2d4   :  { %8111 = dma.done.wait [#allocation46], 32  }
 0x2d5   :  { %8112 = vsyncadd [#allocation46], 4294967264 }
 0x2d6   :  { %8113 = dma.done.wait [#allocation49], 1024  }
 0x2d7   :  { %8114 = vsyncadd [#allocation49], 4294966272 }
 0x2d8   :  { %8115 = dma.done.wait [#allocation52], 528  }
 0x2d9   :  { %8116 = vsyncadd [#allocation52], 4294966768  ;;  %s9864_s25 = sld [smem:[#allocation76_spill]]  ;;  %v8211_v1 = vmov 0   ;;  %vm679_vm0 = vcmask 1043456   ;;  %vm666_vm1 = vcmask 31744  }
 0x2da   :  { %7255 = vset.pattern.permute.xlu0 %v8211_v1  ;;  %7256 = vset.pattern.permute.xlu1 %v8211_v1  ;;  %v658_v2 = vld [vmem:[#allocation12] sm:$0xf]  ;;  %v768_v3 = vld [vmem:[#allocation15] sm:$0xf]  ;;  %s9865_s22 = sld [smem:[#allocation80_spill]]  ;;  %v900_v6 = vld [vmem:[#allocation18] sm:$0xff] }
 0x2db   :  { %5808 = vmatprep.subr.msk.mxu0 %vm679_vm0, %v658_v2  ;;  %5816 = vmatprep.subr.msk.mxu1 %vm679_vm0, %v768_v3  ;;  %v901_v7 = vld [vmem:[#allocation18 + $0x8] sm:$0xff]  ;;  %v902_v10 = vld [vmem:[#allocation18 + $0x10] sm:$0xff]  ;;  %v903_v11 = vld [vmem:[#allocation18 + $0x18] sm:$0xff]  ;;  %vm904_vm2 = vcmask 261120   ;;  %s9866_s30 = sld [smem:[#allocation87_spill]]  ;;  %s9867_s24 = sld [smem:[#allocation88_spill]] }
 0x2dc   :  { %5809 = vmatpush3.msk.msra.mxu0 %vm679_vm0, %v658_v2  ;;  %v6439_v8 = vpack.c.bf16 %v901_v7, %v900_v6  ;;  %5817 = vmatpush3.msk.msra.mxu1 %vm679_vm0, %v768_v3  ;;  %v6443_v12 = vpack.c.bf16 %v903_v11, %v902_v10  ;;  %v896_v15 = vld [vmem:[#allocation6] sm:$0xff]  ;;  %v897_v17 = vld [vmem:[#allocation6 + $0x8] sm:$0xff]  ;;  %v898_v18 = vld [vmem:[#allocation6 + $0x10] sm:$0xff]  ;;  %s9868_s0 = sld [smem:[#allocation82_spill]]  ;;  %s9869_s27 = sld [smem:[#allocation81_spill]]  ;;  %vm8214_vm4 = vmmov 0  }
 0x2dd   :  { %v899_v19 = vld [vmem:[#allocation6 + $0x18] sm:$0xff]  ;;  %v5135_v21 = vld [vmem:[#allocation14] ss:$0 sm:$0xff]  ;;  %v5141_v22 = vld [vmem:[#allocation17] ss:$0 sm:$0xff]  ;;  %s9872_s5 = sld [smem:[#allocation91_spill]] }
 0x2de   :  { %6440 = vmatprep.subr.bf16.mxu0 %v6439_v8  ;;  %v8703_v49 = vld [vmem:[#allocation20] ss:$0 sm:$0xff]  ;;  %v1100_v1 = vld [vmem:[#allocation21] sm:$0xff]  ;;  %v1101_v2 = vld [vmem:[#allocation21 + $0x8] sm:$0xff]  ;;  %s9873_s29 = sld [smem:[#allocation92_spill]]  ;;  %s9874_s26 = sld [smem:[#allocation95_spill]] }
 0x2df   :  { %v654_v4 = vld [vmem:[%s9864_s25] sm:$0xff]  ;;  %v655_v5 = vld [vmem:[%s9864_s25 + $0x8] sm:$0xff]  ;;  %v656_v9 = vld [vmem:[%s9864_s25 + $0x10] sm:$0xff]  ;;  %s9875_s4 = sld [smem:[#allocation96_spill]]  ;;  %s9876_s13 = sld [smem:[#allocation99_spill]]  ;;  %vm4561_vm5 = vcmask 1040384  }
 0x2e0   :  { %5810 = vmatprep.mubr.msk.f32.mxu0 %vm666_vm1, %v654_v4  ;;  %5818 = vmatprep.mubr.msk.f32.mxu1 %vm666_vm1, %v654_v4  ;;  %v650_v13 = vld [vmem:[%s9865_s22] sm:$0xff]  ;;  %v657_v14 = vld [vmem:[%s9864_s25 + $0x18] sm:$0xff]  ;;  %v651_v16 = vld [vmem:[%s9865_s22 + $0x8] sm:$0xff]  ;;  %v6447_v4 = vpack.c.bf16 %v1101_v2, %v1100_v1  ;;  %s9877_s9 = sld [smem:[#allocation100_spill]]  ;;  %s9878_s12 = sld [smem:[#allocation102_spill]]  ;;  %vm4759_vm6 = vcmask 254976  }
 0x2e1   :  { %5811 = vmatmul.mubr.msk.f32.vlgmr.msra.gmra.mrb[0].mxu0 %vm666_vm1, %v655_v5  ;;  %5819 = vmatmul.mubr.msk.f32.vlgmr.msra.gmra.mrb[0].mxu1 %vm666_vm1, %v655_v5  ;;  %v652_v61 = vld [vmem:[%s9865_s22 + $0x10] sm:$0xff]  ;;  %v653_v62 = vld [vmem:[%s9865_s22 + $0x18] sm:$0xff]  ;;  %v1102_v7 = vld [vmem:[#allocation21 + $0x10] sm:$0xff]  ;;  %s9879_s28 = sld [smem:[#allocation78_spill]]  ;;  %s9884_s2 = sld [smem:[#allocation83_spill]] }
 0x2e2   :  { %5813 = vmatprep.mubr.msk.f32.mxu0 %vm666_vm1, %v656_v9  ;;  %6442 = vmatpush3.bf16.msra.mxu0 %v6439_v8  ;;  %v1201_v3 = vld [vmem:[#allocation23] sm:$0xff]  ;;  %v1202_v5 = vld [vmem:[#allocation23 + $0x8] sm:$0xff]  ;;  %v1103_v8 = vld [vmem:[#allocation21 + $0x18] sm:$0xff]  ;;  %s5288_s16 = sld [smem:[#allocation4 + $0x1]]  ;;  %s4551_s17 = sld [smem:[#allocation4]] }
 0x2e3   :  { %5821 = vmatprep.mubr.msk.f32.mxu1 %vm666_vm1, %v656_v9  ;;  %6444 = vmatprep.subr.bf16.mxu0 %v6443_v12  ;;  %v6455_v6 = vpack.c.bf16 %v1202_v5, %v1201_v3  ;;  %v1203_v9 = vld [vmem:[#allocation23 + $0x10] sm:$0xff]  ;;  %v6451_v10 = vpack.c.bf16 %v1103_v8, %v1102_v7  ;;  %v1204_v11 = vld [vmem:[#allocation23 + $0x18] sm:$0xff]  ;;  %vm8853_vm3 = vmpackc.low %vm904_vm2, %vm904_vm2  ;;  %s9885_s8 = sld [smem:[#allocation107_spill]]  ;;  %s9886_s14 = sld [smem:[#allocation110_spill]] }
 0x2e4   :  { %870 = vperm.xlu0 %7255, %v650_v13   ;;  %6448 = vmatprep.subr.bf16.mxu1 %v6447_v4  ;;  %s9887_s21 = sld [smem:[#allocation109_spill]]  ;;  %s8215_s3 = smov 64  }
 0x2e5   :  { %5814 = vmatmul.mubr.msk.f32.gmra.mrb[2].mxu0 %vm666_vm1, %v657_v14  ;;  %5822 = vmatmul.mubr.msk.f32.gmra.mrb[2].mxu1 %vm666_vm1, %v657_v14  ;;  %s9888_s15 = sld [smem:[#allocation111_spill]]  ;;  %s8216_s18 = smov 96  }
 0x2e6   :  { %5832 = vmatprep.mubr.msk.f32.mxu0 %vm904_vm2, %v896_v15  ;;  %6446 = vmatpush3.bf16.msra.mxu0 %v6443_v12  ;;  %v6459_v12 = vpack.c.bf16 %v1204_v11, %v1203_v9  ;;  %s8217_s6 = smov [#allocation54]   ;;  %s8218_s25 = smov [#allocation55]  }
 0x2e7   :  { %6456 = vmatprep.subr.bf16.mxu0 %v6455_v6  ;;  %6450 = vmatpush3.bf16.msra.mxu1 %v6447_v4  ;;  %s5038_s20 = sshll.u32 %s8217_s6, 4  ;;  %s5048_s22 = sshll.u32 %s8218_s25, 4  ;;  %s5039_s20 = int_to_ptr.vmem [resolvable:$true] %s5038_s20  ;;  %s5049_s22 = int_to_ptr.vmem [resolvable:$true] %s5048_s22 }
 0x2e8   :  { %875 = vperm.xlu0 %7255, %v651_v16   ;;  %6452 = vmatprep.subr.bf16.mxu1 %v6451_v10  ;;  %s5079_s7 = scalar_lea.vmem [#allocation2], %s5288_s16  ;;  %s4552_s11 = scalar_lea.vmem [#allocation2], %s4551_s17 }
 0x2e9   :  { %5833 = vmatmul.mubr.msk.f32.vlgmr.msra.gmra.mrb[4].mxu0 %vm904_vm2, %v897_v17  ;;  %p8044_p2 = scmp.lt.s32.totalorder %s5039_s20, %s5039_s20 }
 0x2ea   :  { %5835 = vmatprep.mubr.msk.f32.mxu0 %vm904_vm2, %v898_v18  ;;  %6458 = vmatpush3.bf16.msra.mxu0 %v6455_v6 }
 0x2eb   :  { %6460 = vmatprep.subr.bf16.mxu0 %v6459_v12  ;;  %6454 = vmatpush3.bf16.msra.mxu1 %v6451_v10 }
 0x2ed   :  { %5836 = vmatmul.mubr.msk.f32.gmra.mrb[6].mxu0 %vm904_vm2, %v899_v19 }
 0x2ee   :  { %6462 = vmatpush3.bf16.msra.mxu0 %v6459_v12 }
 0x363   :  { %v871_v20 = vpop.permute.xlu0 %870 }
 0x367   :  { %v876_v32 = vpop.permute.xlu0 %875 }
 0x3b4   :  { %v5812_v23 = vpop.f32.mrb[0].mxu0  ;;  %v5820_v24 = vpop.f32.mrb[0].mxu1 }
 0x3b5   :  { %v755_v25 = vadd.f32 %v5812_v23, %v5135_v21  ;;  %v851_v26 = vadd.f32 %v5820_v24, %v5141_v22  ;;  %v749_v27 = vpop.f32.mrb[1].mxu0  ;;  %v845_v28 = vpop.f32.mrb[1].mxu1 }
 0x3b6   :  { %v750_v29 = vadd.f32 %v5135_v21, %v749_v27  ;;  %v846_v30 = vadd.f32 %v5141_v22, %v845_v28 }
 0x3b7   :  { %v865_v31 = vsub.f32 %v755_v25, %v851_v26 }
 0x3b8   :  { %v864_v33 = vsub.f32 %v750_v29, %v846_v30  ;;  %v5815_v34 = vpop.f32.mrb[2].mxu0  ;;  %v5823_v35 = vpop.f32.mrb[2].mxu1 }
 0x3b9   :  { %v889_v36 = vmul.f32 %v876_v32, %v865_v31  ;;  %v8691_v37 = vadd.f32 %v5815_v34, %v5135_v21  ;;  %v8693_v38 = vadd.f32 %v5823_v35, %v5141_v22  ;;  %v759_v39 = vpop.f32.mrb[3].mxu0  ;;  %v855_v40 = vpop.f32.mrb[3].mxu1 }
 0x3ba   :  { %v8695_v41 = vadd.f32 %v5135_v21, %v759_v39  ;;  %v8697_v42 = vadd.f32 %v5141_v22, %v855_v40  ;;  %v888_v43 = vmul.f32 %v871_v20, %v864_v33 }
 0x3bb   :  { %v893_v44 = vadd.f32 %v889_v36, %v851_v26  ;;  %v867_v45 = vsub.f32 %v8691_v37, %v8693_v38 }
 0x3bc   :  { %v892_v46 = vadd.f32 %v888_v43, %v846_v30  ;;  %v866_v47 = vsub.f32 %v8695_v41, %v8697_v42  ;;  %v5834_v48 = vpop.f32.mrb[4].mxu0  ;;  %v8735_v41 = vld [vmem:[%s9866_s30] ss:$0 sm:$0xff] }
 0x3bd   :  { %v1003_v50 = vadd.f32 %v5834_v48, %v893_v44  ;;  %v983_v51 = vpop.f32.mrb[5].mxu0 }
 0x3be   :  { %v1002_v52 = vadd.f32 %v983_v51, %v892_v46  ;;  %v5153_v46 = vld [vmem:[%s9867_s24] ss:$0 sm:$0xff] }
 0x3bf   :  { %v8706_v53 = vadd.f32 %v8703_v49, %v1003_v50 }
 0x3c0   :  { %v8709_v54 = vadd.f32 %v8703_v49, %v1002_v52  ;;  %v5837_v63 = vpop.f32.mrb[6].mxu0 }
 0x3c1   :  { %v1020_v55 = vsel %vm904_vm2, %v8706_v53, 0.0  ;;  %v1035_v59 = vmul.f32 %v8706_v53, %v8706_v53  ;;  %v993_v0 = vpop.f32.mrb[7].mxu0 }
 0x3c2   :  { %1021 = vadd.xlane.f32.xlu1 %v1020_v55  ;;  %v1034_v56 = vmul.f32 %v8709_v54, %v8709_v54  ;;  %v1017_v58 = vsel %vm904_vm2, %v8709_v54, 0.0 }
 0x3c3   :  { %v1041_v60 = vsel %vm904_vm2, %v1035_v59, 0.0 }
 0x3c4   :  { %v1038_v57 = vsel %vm904_vm2, %v1034_v56, 0.0 }
 0x3c5   :  { %1039 = vadd.xlane.f32.xlu0 %v1038_v57  ;;  %v1290_v57 = vld [vmem:[#allocation24] sm:$0xff] }
 0x3c6   :  { %1018 = vadd.xlane.f32.xlu1 %v1017_v58  ;;  %v1291_v58 = vld [vmem:[#allocation24 + $0x8] sm:$0xff] }
 0x3c7   :  { %v6463_v59 = vpack.c.bf16 %v1291_v58, %v1290_v57 }
 0x3c9   :  { %6464 = vmatprep.subr.bf16.mxu1 %v6463_v59 }
 0x3ca   :  { %1042 = vadd.xlane.f32.xlu1 %v1041_v60  ;;  %v1292_v60 = vld [vmem:[#allocation24 + $0x10] sm:$0xff] }
 0x3db   :  { %880 = vperm.xlu1 %7256, %v652_v61   ;;  %v1293_v61 = vld [vmem:[#allocation24 + $0x18] sm:$0xff] }
 0x3df   :  { %885 = vperm.xlu1 %7256, %v653_v62   ;;  %v6467_v62 = vpack.c.bf16 %v1293_v61, %v1292_v60 }
 0x44f   :  { %v1022_v13 = vpop.xlane.xlu1 %1021 }
 0x450   :  { %v1031_v16 = vmul.f32 0.03125, %v1022_v13  ;;  %v634_v13 = vld [vmem:[%s9868_s0] sm:$0xff] }
 0x452   :  { %v1040_v14 = vpop.xlane.xlu0 %1039  ;;  %v1055_v21 = vmul.f32 %v1031_v16, %v1031_v16  ;;  %v1063_v37 = vsub.f32 %v8706_v53, %v1031_v16 }
 0x453   :  { %v1019_v15 = vpop.xlane.xlu1 %1018  ;;  %v1050_v18 = vmul.f32 0.03125, %v1040_v14  ;;  %v635_v14 = vld [vmem:[%s9868_s0 + $0x8] sm:$0xff] }
 0x454   :  { %v1030_v17 = vmul.f32 0.03125, %v1019_v15  ;;  %v8758_v15 = vpack.c.bf16 %v635_v14, %v634_v13 }
 0x456   :  { %v1054_v19 = vmul.f32 %v1030_v17, %v1030_v17  ;;  %v1062_v39 = vsub.f32 %v8709_v54, %v1030_v17 }
 0x457   :  { %v1043_v20 = vpop.xlane.xlu1 %1042 }
 0x458   :  { %v1058_v22 = vsub.f32 %v1050_v18, %v1054_v19  ;;  %v1051_v23 = vmul.f32 0.03125, %v1043_v20 }
 0x45a   :  { %v1066_v24 = vadd.f32 1e-05, %v1058_v22  ;;  %v1059_v25 = vsub.f32 %v1051_v23, %v1055_v21 }
 0x45b   :  { %v881_v26 = vpop.permute.xlu1 %880 }
 0x45c   :  { %7257 = vrsqrt.f32 %v1066_v24  ;;  %v1067_v27 = vadd.f32 1e-05, %v1059_v25  ;;  %v890_v28 = vmul.f32 %v881_v26, %v866_v47  ;;  %v636_v26 = vld [vmem:[%s9868_s0 + $0x10] sm:$0xff] }
 0x45e   :  { %7259 = vrsqrt.f32 %v1067_v27  ;;  %v894_v29 = vadd.f32 %v890_v28, %v8697_v42  ;;  %v637_v27 = vld [vmem:[%s9868_s0 + $0x18] sm:$0xff] }
 0x45f   :  { %v886_v30 = vpop.permute.xlu1 %885  ;;  %v8772_v28 = vpack.c.bf16 %v637_v27, %v636_v26  ;;  %v646_v27 = vld [vmem:[%s9868_s0 + $0x60] sm:$0xff] }
 0x460   :  { %v1004_v31 = vadd.f32 %v993_v0, %v894_v29  ;;  %v891_v32 = vmul.f32 %v886_v30, %v867_v45  ;;  %v638_v29 = vld [vmem:[%s9868_s0 + $0x20] sm:$0xff]  ;;  %v639_v30 = vld [vmem:[%s9868_s0 + $0x28] sm:$0xff] }
 0x462   :  { %v8728_v33 = vadd.f32 %v8703_v49, %v1004_v31  ;;  %v895_v34 = vadd.f32 %v891_v32, %v8693_v38  ;;  %v8780_v31 = vpack.c.bf16 %v639_v30, %v638_v29  ;;  %v640_v32 = vld [vmem:[%s9868_s0 + $0x30] sm:$0xff]  ;;  %v647_v29 = vld [vmem:[%s9868_s0 + $0x68] sm:$0xff] }
 0x463   :  { %v8901_v30 = vpack.c.bf16 %v647_v29, %v646_v27 }
 0x464   :  { %v1005_v35 = vadd.f32 %v5837_v63, %v895_v34  ;;  %v1023_v36 = vsel %vm904_vm2, %v8728_v33, 0.0  ;;  %v1036_v45 = vmul.f32 %v8728_v33, %v8728_v33  ;;  %v641_v34 = vld [vmem:[%s9868_s0 + $0x38] sm:$0xff] }
 0x465   :  { %1024 = vadd.xlane.f32.xlu1 %v1023_v36  ;;  %v642_v36 = vld [vmem:[%s9868_s0 + $0x40] sm:$0xff] }
 0x466   :  { %v7258_v40 = vpop.eup %7257  ;;  %v8738_v42 = vadd.f32 %v8703_v49, %v1005_v35  ;;  %v1044_v49 = vsel %vm904_vm2, %v1036_v45, 0.0  ;;  %v8787_v35 = vpack.c.bf16 %v641_v34, %v640_v32  ;;  %v8814_v45 = vld [vmem:[%s9869_s27 + $0x38] sm:$0xff]  ;;  %v648_v32 = vld [vmem:[%s9868_s0 + $0x70] sm:$0xff] }
 0x467   :  { %v1074_v43 = vmul.f32 %v7258_v40, %v1062_v39  ;;  %v643_v39 = vld [vmem:[%s9868_s0 + $0x48] sm:$0xff]  ;;  %v649_v34 = vld [vmem:[%s9868_s0 + $0x78] sm:$0xff] }
 0x468   :  { %v7260_v44 = vpop.eup %7259  ;;  %v1026_v38 = vsel %vm904_vm2, %v8738_v42, 0.0  ;;  %v1037_v52 = vmul.f32 %v8738_v42, %v8738_v42  ;;  %v8793_v40 = vpack.c.bf16 %v643_v39, %v642_v36  ;;  %v8911_v36 = vpack.c.bf16 %v649_v34, %v648_v32 }
 0x469   :  { %v1085_v47 = vmul.f32 %v8735_v41, %v1074_v43  ;;  %v1075_v48 = vmul.f32 %v7260_v44, %v1063_v37  ;;  %1027 = vadd.xlane.f32.xlu0 %v1026_v38  ;;  %v8802_v37 = vld [vmem:[%s9869_s27 + $0x18] sm:$0xff]  ;;  %v8805_v43 = vld [vmem:[%s9869_s27 + $0x28] sm:$0xff]  ;;  %v8808_v44 = vld [vmem:[%s9869_s27] sm:$0xff] }
 0x46a   :  { %v1047_v56 = vsel %vm904_vm2, %v1037_v52, 0.0  ;;  %v8811_v38 = vld [vmem:[%s9869_s27 + $0x10] sm:$0xff] }
 0x46b   :  { %v1086_v50 = vmul.f32 %v8735_v41, %v1075_v48  ;;  %v1096_v51 = vadd.f32 %v5153_v46, %v1085_v47  ;;  %v8820_v47 = vld [vmem:[%s9869_s27 + $0x30] sm:$0xff]  ;;  %v8823_v48 = vld [vmem:[%s9869_s27 + $0x40] sm:$0xff] }
 0x46c   :  { %v8831_v52 = vld [vmem:[%s9869_s27 + $0x50] sm:$0xff] }
 0x46d   :  { %1045 = vadd.xlane.f32.xlu0 %v1044_v49  ;;  %v1097_v55 = vadd.f32 %v5153_v46, %v1086_v50  ;;  %5846 = vmatprep.mubr.msk.f32.mxu1 %vm904_vm2, %v1096_v51  ;;  %v8828_v49 = vld [vmem:[%s9869_s27 + $0x48] sm:$0xff] }
 0x46e   :  { %5860 = vmatprep.mubr.msk.f32.mxu0 %vm904_vm2, %v1096_v51 }
 0x46f   :  { %5847 = vmatmul.mubr.msk.f32.vlgmr.msra.gmra.mrb[4].mxu1 %vm904_vm2, %v1097_v55  ;;  %5861 = vmatmul.mubr.msk.f32.vlgmr.msra.gmra.mrb[8].mxu0 %vm904_vm2, %v1097_v55 }
 0x470   :  { %6466 = vmatpush3.bf16.msra.mxu1 %v6463_v59 }
 0x471   :  { %1048 = vadd.xlane.f32.xlu0 %v1047_v56  ;;  %6468 = vmatprep.subr.bf16.mxu1 %v6467_v62 }
 0x474   :  { %6470 = vmatpush3.bf16.msra.mxu1 %v6467_v62 }
 0x475   :  { %6520 = vmatprep.subr.bf16.mxu1 %v8758_v15 }
 0x4f2   :  { %v1025_v63 = vpop.xlane.xlu1 %1024 }
 0x4f3   :  { %v1032_v1 = vmul.f32 0.03125, %v1025_v63 }
 0x4f5   :  { %v1056_v3 = vmul.f32 %v1032_v1, %v1032_v1  ;;  %v1064_v16 = vsub.f32 %v8728_v33, %v1032_v1 }
 0x4f6   :  { %v1028_v0 = vpop.xlane.xlu0 %1027 }
 0x4f7   :  { %v1033_v4 = vmul.f32 0.03125, %v1028_v0 }
 0x4f9   :  { %v1057_v8 = vmul.f32 %v1033_v4, %v1033_v4  ;;  %v1065_v19 = vsub.f32 %v8738_v42, %v1033_v4 }
 0x4fa   :  { %v1046_v2 = vpop.xlane.xlu0 %1045 }
 0x4fb   :  { %v1052_v5 = vmul.f32 0.03125, %v1046_v2  ;;  %v8846_v2 = vld [vmem:[%s9869_s27 + $0x60] sm:$0xff] }
 0x4fd   :  { %v1060_v6 = vsub.f32 %v1052_v5, %v1056_v3  ;;  %v8849_v3 = vld [vmem:[%s9869_s27 + $0x68] sm:$0xff] }
 0x4fe   :  { %v1049_v7 = vpop.xlane.xlu0 %1048 }
 0x4ff   :  { %v1068_v9 = vadd.f32 1e-05, %v1060_v6  ;;  %v1053_v10 = vmul.f32 0.03125, %v1049_v7 }
 0x501   :  { %7261 = vrsqrt.f32 %v1068_v9  ;;  %v1061_v11 = vsub.f32 %v1053_v10, %v1057_v8  ;;  %v8862_v9 = vld [vmem:[%s9869_s27 + $0x70] sm:$0xff]  ;;  %v8865_v10 = vld [vmem:[%s9869_s27 + $0x78] sm:$0xff] }
 0x503   :  { %v1069_v12 = vadd.f32 1e-05, %v1061_v11 }
 0x505   :  { %7263 = vrsqrt.f32 %v1069_v12 }
 0x50b   :  { %v7262_v17 = vpop.eup %7261 }
 0x50c   :  { %v1076_v18 = vmul.f32 %v7262_v17, %v1064_v16 }
 0x50e   :  { %v1087_v20 = vmul.f32 %v8735_v41, %v1076_v18 }
 0x50f   :  { %v7264_v21 = vpop.eup %7263 }
 0x510   :  { %v1098_v22 = vadd.f32 %v5153_v46, %v1087_v20  ;;  %v1077_v23 = vmul.f32 %v7264_v21, %v1065_v19 }
 0x512   :  { %5849 = vmatprep.mubr.msk.f32.mxu1 %vm904_vm2, %v1098_v22  ;;  %5863 = vmatprep.mubr.msk.f32.mxu0 %vm904_vm2, %v1098_v22  ;;  %v1088_v24 = vmul.f32 %v8735_v41, %v1077_v23  ;;  %v8799_v41 = vld [vmem:[%s9869_s27 + $0x8] sm:$0xff] }
 0x514   :  { %v1099_v25 = vadd.f32 %v5153_v46, %v1088_v24  ;;  %v8817_v46 = vld [vmem:[%s9869_s27 + $0x20] sm:$0xff]  ;;  %v644_v24 = vld [vmem:[%s9868_s0 + $0x50] sm:$0xff] }
 0x516   :  { %5850 = vmatmul.mubr.msk.f32.gmra.mrb[6].mxu1 %vm904_vm2, %v1099_v25  ;;  %5864 = vmatmul.mubr.msk.f32.gmra.mrb[10].mxu0 %vm904_vm2, %v1099_v25 }
 0x517   :  { %5874 = vmatprep.mubr.msk.f32.mxu1 %vm904_vm2, %v1096_v51 }
 0x51a   :  { %5875 = vmatmul.mubr.msk.f32.vlgmr.msra.gmra.mrb[8].mxu1 %vm904_vm2, %v1097_v55  ;;  %v8834_v55 = vld [vmem:[%s9869_s27 + $0x58] sm:$0xff] }
 0x51b   :  { %5877 = vmatprep.mubr.msk.f32.mxu1 %vm904_vm2, %v1098_v22  ;;  %6522 = vmatpush3.bf16.msra.mxu1 %v8758_v15 }
 0x51c   :  { %6524 = vmatprep.subr.bf16.mxu1 %v8772_v28 }
 0x51e   :  { %5878 = vmatmul.mubr.msk.f32.gmra.mrb[10].mxu1 %vm904_vm2, %v1099_v25  ;;  %v645_v25 = vld [vmem:[%s9868_s0 + $0x58] sm:$0xff] }
 0x51f   :  { %6526 = vmatpush3.bf16.msra.mxu1 %v8772_v28  ;;  %v8895_v26 = vpack.c.bf16 %v645_v25, %v644_v24 }
 0x520   :  { %6528 = vmatprep.subr.bf16.mxu1 %v8780_v31 }
 0x523   :  { %6530 = vmatpush3.bf16.msra.mxu1 %v8780_v31 }
 0x524   :  { %6532 = vmatprep.subr.bf16.mxu1 %v8787_v35 }
 0x527   :  { %6534 = vmatpush3.bf16.msra.mxu1 %v8787_v35 }
 0x528   :  { %6536 = vmatprep.subr.bf16.mxu1 %v8793_v40 }
 0x52b   :  { %6538 = vmatpush3.bf16.msra.mxu1 %v8793_v40 }
 0x52c   :  { %6540 = vmatprep.subr.bf16.mxu1 %v8895_v26 }
 0x52f   :  { %6542 = vmatpush3.bf16.msra.mxu1 %v8895_v26 }
 0x530   :  { %6544 = vmatprep.subr.bf16.mxu1 %v8901_v30 }
 0x533   :  { %6546 = vmatpush3.bf16.msra.mxu1 %v8901_v30 }
 0x534   :  { %6548 = vmatprep.subr.bf16.mxu1 %v8911_v36 }
 0x537   :  { %6550 = vmatpush3.bf16.msra.mxu1 %v8911_v36 }
 0x542   :  { %v8825_v50 = vpop.f32.mrb[4].mxu1  ;;  %v5862_v51 = vpop.f32.mrb[8].mxu0 }
 0x543   :  { %v1182_v56 = vpop.f32.mrb[5].mxu1  ;;  %v1271_v57 = vpop.f32.mrb[9].mxu0  ;;  %v1380_v58 = vmul.f32 %v5862_v51, %v8799_v41  ;;  %v1382_v59 = vmul.f32 %v5862_v51, %v8802_v37  ;;  %v1384_v60 = vmul.f32 %v5862_v51, %v8805_v43  ;;  %v1386_v61 = vmul.f32 %v5862_v51, %v8814_v45 }
 0x544   :  { %5912 = vmatprep.mubr.msk.f32.mxu0 %vm904_vm2, %v1182_v56  ;;  %v1379_v62 = vmul.f32 %v1271_v57, %v8808_v44  ;;  %v1381_v63 = vmul.f32 %v1271_v57, %v8811_v38  ;;  %v1383_v0 = vmul.f32 %v1271_v57, %v8817_v46  ;;  %v1385_v1 = vmul.f32 %v1271_v57, %v8820_v47 }
 0x545   :  { %v1387_v5 = vmul.f32 %v1271_v57, %v8823_v48  ;;  %v1388_v6 = vmul.f32 %v5862_v51, %v8828_v49  ;;  %v1389_v7 = vmul.f32 %v1271_v57, %v8831_v52  ;;  %v1390_v8 = vmul.f32 %v5862_v51, %v8834_v55 }
 0x546   :  { %v6471_v11 = vpack.c.bf16 %v1380_v58, %v1379_v62  ;;  %v6477_v12 = vpack.c.bf16 %v1382_v59, %v1381_v63  ;;  %v6483_v13 = vpack.c.bf16 %v1384_v60, %v1383_v0  ;;  %v6489_v14 = vpack.c.bf16 %v1386_v61, %v1385_v1 }
 0x547   :  { %v6495_v16 = vpack.c.bf16 %v1388_v6, %v1387_v5  ;;  %v6501_v17 = vpack.c.bf16 %v1390_v8, %v1389_v7  ;;  %v1391_v18 = vmul.f32 %v1271_v57, %v8846_v2  ;;  %v1392_v19 = vmul.f32 %v5862_v51, %v8849_v3 }
 0x548   :  { %6473 = vmatprep.subr.msk.bf16.mxu0 %vm8853_vm3, %v6471_v11  ;;  %v1393_v20 = vmul.f32 %v1271_v57, %v8862_v9  ;;  %v1394_v21 = vmul.f32 %v5862_v51, %v8865_v10 }
 0x549   :  { %6476 = vmatpush3.bf16.xpose.msk.msra.mxu0 %vm8853_vm3, %v6471_v11  ;;  %v6507_v22 = vpack.c.bf16 %v1392_v19, %v1391_v18 }
 0x54a   :  { %6479 = vmatprep.subr.msk.bf16.mxu0 %vm8853_vm3, %v6477_v12  ;;  %v6513_v23 = vpack.c.bf16 %v1394_v21, %v1393_v20 }
 0x551   :  { %6482 = vmatpush3.bf16.xpose.msk.msra.mxu0 %vm8853_vm3, %v6477_v12 }
 0x552   :  { %6485 = vmatprep.subr.msk.bf16.mxu0 %vm8853_vm3, %v6483_v13 }
 0x559   :  { %6488 = vmatpush3.bf16.xpose.msk.msra.mxu0 %vm8853_vm3, %v6483_v13 }
 0x55a   :  { %6491 = vmatprep.subr.msk.bf16.mxu0 %vm8853_vm3, %v6489_v14 }
 0x561   :  { %6494 = vmatpush3.bf16.xpose.msk.msra.mxu0 %vm8853_vm3, %v6489_v14 }
 0x562   :  { %6497 = vmatprep.subr.msk.bf16.mxu0 %vm8853_vm3, %v6495_v16 }
 0x569   :  { %6500 = vmatpush3.bf16.xpose.msk.msra.mxu0 %vm8853_vm3, %v6495_v16 }
 0x56a   :  { %6503 = vmatprep.subr.msk.bf16.mxu0 %vm8853_vm3, %v6501_v17 }
 0x571   :  { %6506 = vmatpush3.bf16.xpose.msk.msra.mxu0 %vm8853_vm3, %v6501_v17 }
 0x572   :  { %6509 = vmatprep.subr.msk.bf16.mxu0 %vm8853_vm3, %v6507_v22 }
 0x579   :  { %6512 = vmatpush3.bf16.xpose.msk.msra.mxu0 %vm8853_vm3, %v6507_v22 }
 0x57a   :  { %6515 = vmatprep.subr.msk.bf16.mxu0 %vm8853_vm3, %v6513_v23 }
 0x581   :  { %6518 = vmatpush3.bf16.xpose.msk.msra.mxu0 %vm8853_vm3, %v6513_v23 }
 0x588   :  { %5913 = vmatmul.mubr.msk.f32.vlgmr.msra.gmra.mrb[12].mxu0 %vm904_vm2, %v8825_v50 }
 0x5e9   :  { %v8923_v39 = vpop.f32.mrb[6].mxu1  ;;  %v5865_v51 = vpop.f32.mrb[10].mxu0 }
 0x5ea   :  { %v1192_v56 = vpop.f32.mrb[7].mxu1  ;;  %v1281_v57 = vpop.f32.mrb[11].mxu0  ;;  %v1707_v58 = vmul.f32 %v5865_v51, %v8799_v41  ;;  %v1709_v59 = vmul.f32 %v5865_v51, %v8802_v37  ;;  %v1711_v60 = vmul.f32 %v5865_v51, %v8805_v43  ;;  %v1713_v61 = vmul.f32 %v5865_v51, %v8814_v45 }
 0x5eb   :  { %6017 = vmatprep.mubr.msk.f32.mxu0 %vm904_vm2, %v1192_v56  ;;  %v1706_v62 = vmul.f32 %v1281_v57, %v8808_v44  ;;  %v1708_v63 = vmul.f32 %v1281_v57, %v8811_v38  ;;  %v1710_v50 = vmul.f32 %v1281_v57, %v8817_v46  ;;  %v1712_v0 = vmul.f32 %v1281_v57, %v8820_v47 }
 0x5ec   :  { %v1714_v1 = vmul.f32 %v1281_v57, %v8823_v48  ;;  %v1715_v5 = vmul.f32 %v5865_v51, %v8828_v49  ;;  %v1716_v6 = vmul.f32 %v1281_v57, %v8831_v52  ;;  %v1717_v7 = vmul.f32 %v5865_v51, %v8834_v55 }
 0x5ed   :  { %v5876_v8 = vpop.f32.mrb[8].mxu1  ;;  %v6583_v11 = vpack.c.bf16 %v1707_v58, %v1706_v62  ;;  %v6589_v12 = vpack.c.bf16 %v1709_v59, %v1708_v63  ;;  %v8938_v13 = vpack.c.bf16 %v1711_v60, %v1710_v50  ;;  %v8940_v14 = vpack.c.bf16 %v1713_v61, %v1712_v0 }
 0x5ee   :  { %v1360_v16 = vpop.f32.mrb[9].mxu1  ;;  %v1396_v17 = vmul.f32 %v5876_v8, %v8799_v41  ;;  %v8943_v18 = vpack.c.bf16 %v1715_v5, %v1714_v1  ;;  %v8945_v19 = vpack.c.bf16 %v1717_v7, %v1716_v6  ;;  %v1718_v20 = vmul.f32 %v1281_v57, %v8846_v2 }
 0x5ef   :  { %6585 = vmatprep.subr.msk.bf16.mxu0 %vm8853_vm3, %v6583_v11  ;;  %v1395_v21 = vmul.f32 %v1360_v16, %v8808_v44  ;;  %v1719_v22 = vmul.f32 %v5865_v51, %v8849_v3  ;;  %v1720_v23 = vmul.f32 %v1281_v57, %v8862_v9  ;;  %v1721_v24 = vmul.f32 %v5865_v51, %v8865_v10 }
 0x5f0   :  { %6588 = vmatpush3.bf16.xpose.msk.msra.mxu0 %vm8853_vm3, %v6583_v11  ;;  %v1397_v25 = vmul.f32 %v1360_v16, %v8811_v38  ;;  %v1398_v27 = vmul.f32 %v5876_v8, %v8802_v37  ;;  %v1399_v29 = vmul.f32 %v1360_v16, %v8817_v46  ;;  %v1400_v32 = vmul.f32 %v5876_v8, %v8805_v43 }
 0x5f1   :  { %v5879_v34 = vpop.f32.mrb[10].mxu1  ;;  %6591 = vmatprep.subr.msk.bf16.mxu0 %vm8853_vm3, %v6589_v12  ;;  %v8962_v56 = vpack.c.bf16 %v1396_v17, %v1395_v21  ;;  %v6619_v57 = vpack.c.bf16 %v1719_v22, %v1718_v20  ;;  %v6625_v58 = vpack.c.bf16 %v1721_v24, %v1720_v23  ;;  %v1401_v51 = vmul.f32 %v1360_v16, %v8820_v47 }
 0x5f2   :  { %v1370_v59 = vpop.f32.mrb[11].mxu1  ;;  %v8965_v60 = vpack.c.bf16 %v1398_v27, %v1397_v25  ;;  %v8967_v61 = vpack.c.bf16 %v1400_v32, %v1399_v29  ;;  %v1402_v62 = vmul.f32 %v5876_v8, %v8814_v45  ;;  %v1403_v63 = vmul.f32 %v1360_v16, %v8823_v48 }
 0x5f3   :  { %6552 = vmatprep.subr.bf16.mxu1 %v8962_v56  ;;  %v1404_v50 = vmul.f32 %v5876_v8, %v8828_v49  ;;  %v1405_v0 = vmul.f32 %v1360_v16, %v8831_v52  ;;  %v1406_v1 = vmul.f32 %v5876_v8, %v8834_v55  ;;  %v1407_v5 = vmul.f32 %v1360_v16, %v8846_v2 }
 0x5f4   :  { %v8976_v6 = vpack.c.bf16 %v1402_v62, %v1401_v51  ;;  %v1408_v7 = vmul.f32 %v5876_v8, %v8849_v3  ;;  %v1409_v11 = vmul.f32 %v1360_v16, %v8862_v9  ;;  %v1410_v17 = vmul.f32 %v5876_v8, %v8865_v10 }
 0x5f5   :  { %v8981_v20 = vpack.c.bf16 %v1404_v50, %v1403_v63  ;;  %v8983_v21 = vpack.c.bf16 %v1406_v1, %v1405_v0  ;;  %v1722_v22 = vmul.f32 %v1370_v59, %v8808_v44  ;;  %v1723_v23 = vmul.f32 %v5879_v34, %v8799_v41 }
 0x5f6   :  { %v8987_v24 = vpack.c.bf16 %v1408_v7, %v1407_v5  ;;  %v8989_v25 = vpack.c.bf16 %v1410_v17, %v1409_v11  ;;  %v1724_v27 = vmul.f32 %v1370_v59, %v8811_v38  ;;  %v1725_v29 = vmul.f32 %v5879_v34, %v8802_v37  ;;  %v2036_v7 = vld [vmem:[#allocation26 + $0x18] sm:$0xff] }
 0x5f7   :  { %v8993_v32 = vpack.c.bf16 %v1723_v23, %v1722_v22  ;;  %v1726_v8 = vmul.f32 %v1370_v59, %v8817_v46  ;;  %v1727_v16 = vmul.f32 %v5879_v34, %v8805_v43  ;;  %v1728_v51 = vmul.f32 %v1370_v59, %v8820_v47 }
 0x5f8   :  { %6594 = vmatpush3.bf16.xpose.msk.msra.mxu0 %vm8853_vm3, %v6589_v12  ;;  %v9000_v41 = vpack.c.bf16 %v1725_v29, %v1724_v27  ;;  %v1729_v44 = vmul.f32 %v5879_v34, %v8814_v45  ;;  %v1730_v62 = vmul.f32 %v1370_v59, %v8823_v48  ;;  %v1731_v38 = vmul.f32 %v5879_v34, %v8828_v49 }
 0x5f9   :  { %6597 = vmatprep.subr.msk.bf16.mxu0 %vm8853_vm3, %v8938_v13  ;;  %v9008_v37 = vpack.c.bf16 %v1727_v16, %v1726_v8  ;;  %v1732_v43 = vmul.f32 %v1370_v59, %v8831_v52  ;;  %v1733_v46 = vmul.f32 %v5879_v34, %v8834_v55  ;;  %v1734_v47 = vmul.f32 %v1370_v59, %v8846_v2 }
 0x5fa   :  { %v9013_v12 = vpack.c.bf16 %v1729_v44, %v1728_v51  ;;  %v9015_v63 = vpack.c.bf16 %v1731_v38, %v1730_v62  ;;  %v1735_v45 = vmul.f32 %v5879_v34, %v8849_v3  ;;  %v1736_v48 = vmul.f32 %v1370_v59, %v8862_v9 }
 0x5fb   :  { %v9019_v49 = vpack.c.bf16 %v1733_v46, %v1732_v43  ;;  %v1737_v50 = vmul.f32 %v5879_v34, %v8865_v10 }
 0x5fc   :  { %v9022_v0 = vpack.c.bf16 %v1735_v45, %v1734_v47 }
 0x5fd   :  { %v9024_v1 = vpack.c.bf16 %v1737_v50, %v1736_v48 }
 0x600   :  { %6600 = vmatpush3.bf16.xpose.msk.msra.mxu0 %vm8853_vm3, %v8938_v13 }
 0x601   :  { %6603 = vmatprep.subr.msk.bf16.mxu0 %vm8853_vm3, %v8940_v14 }
 0x608   :  { %6606 = vmatpush3.bf16.xpose.msk.msra.mxu0 %vm8853_vm3, %v8940_v14 }
 0x609   :  { %6609 = vmatprep.subr.msk.bf16.mxu0 %vm8853_vm3, %v8943_v18 }
 0x610   :  { %6612 = vmatpush3.bf16.xpose.msk.msra.mxu0 %vm8853_vm3, %v8943_v18 }
 0x611   :  { %6615 = vmatprep.subr.msk.bf16.mxu0 %vm8853_vm3, %v8945_v19 }
 0x618   :  { %6618 = vmatpush3.bf16.xpose.msk.msra.mxu0 %vm8853_vm3, %v8945_v19 }
 0x619   :  { %6621 = vmatprep.subr.msk.bf16.mxu0 %vm8853_vm3, %v6619_v57 }
 0x620   :  { %6624 = vmatpush3.bf16.xpose.msk.msra.mxu0 %vm8853_vm3, %v6619_v57 }
 0x621   :  { %6627 = vmatprep.subr.msk.bf16.mxu0 %vm8853_vm3, %v6625_v58 }
 0x628   :  { %6630 = vmatpush3.bf16.xpose.msk.msra.mxu0 %vm8853_vm3, %v6625_v58 }
 0x62f   :  { %6018 = vmatmul.mubr.msk.f32.vlgmr.msra.gmra.mrb[14].mxu0 %vm904_vm2, %v8923_v39 }
 0x65b   :  { %v5914_v52 = vpop.f32.mrb[12].mxu0 }
 0x65c   :  { %v1531_v55 = vpop.f32.mrb[13].mxu0  ;;  %v1541_v3 = vmul.f32 0.5, %v5914_v52 }
 0x65d   :  { %v1540_v2 = vmul.f32 0.5, %v1531_v55  ;;  %v2221_v55 = vld [vmem:[#allocation27 + $0x8] sm:$0xff] }
 0x65f   :  { %1542 = vmax.xlane.f32.xlu0 %v1540_v2 }
 0x663   :  { %1544 = vmax.xlane.f32.xlu0 %v1541_v3 }
 0x6ec   :  { %v1543_v9 = vpop.xlane.xlu0 %1542 }
 0x6ed   :  { %v1546_v10 = vsub.f32 %v1540_v2, %v1543_v9  ;;  %v2225_v2 = vld [vmem:[#allocation27 + $0x28] sm:$0xff] }
 0x6ee   :  { %v6703_v9 = vpack.c.bf16 %v2225_v2, %v2221_v55 }
 0x6ef   :  { %v1548_v13 = vmul.f32 1.442695, %v1546_v10  ;;  %v2227_v10 = vld [vmem:[#allocation27 + $0x38] sm:$0xff] }
 0x6f0   :  { %v1545_v14 = vpop.xlane.xlu0 %1544 }
 0x6f1   :  { %7265 = vpow2.f32 %v1548_v13  ;;  %v1547_v18 = vsub.f32 %v1541_v3, %v1545_v14  ;;  %v2223_v3 = vld [vmem:[#allocation27 + $0x18] sm:$0xff]  ;;  %v2220_v13 = vld [vmem:[#allocation27] sm:$0xff] }
 0x6f2   :  { %v2224_v14 = vld [vmem:[#allocation27 + $0x20] sm:$0xff] }
 0x6f3   :  { %v1550_v19 = vmul.f32 1.442695, %v1547_v18  ;;  %v8212_v18 = vmov 0.0  }
 0x6f5   :  { %7267 = vpow2.f32 %v1550_v19  ;;  %v6711_v19 = vpack.c.bf16 %v2227_v10, %v2223_v3 }
 0x6fb   :  { %v7266_v34 = vpop.eup %7265 }
 0x6fc   :  { %5947 = vmatprep.mubr.f32.mxu1 %v7266_v34 }
 0x6ff   :  { %v7268_v57 = vpop.eup %7267 }
 0x700   :  { %5948 = vmatmul.mubr.f32.vlgmr.msra.gmra.mrb[12].mxu1 %v7268_v57 }
 0x701   :  { %6554 = vmatpush3.bf16.msra.mxu1 %v8962_v56  ;;  %v2033_v56 = vld [vmem:[#allocation26] sm:$0xff] }
 0x702   :  { %6556 = vmatprep.subr.bf16.mxu1 %v8965_v60  ;;  %v6019_v39 = vpop.f32.mrb[14].mxu0 }
 0x703   :  { %v1858_v58 = vpop.f32.mrb[15].mxu0  ;;  %v1868_v5 = vmul.f32 0.5, %v6019_v39  ;;  %v2226_v39 = vld [vmem:[#allocation27 + $0x30] sm:$0xff] }
 0x704   :  { %v1867_v59 = vmul.f32 0.5, %v1858_v58  ;;  %v2229_v58 = vld [vmem:[#allocation27 + $0x48] sm:$0xff] }
 0x705   :  { %6558 = vmatpush3.bf16.msra.mxu1 %v8965_v60  ;;  %v2034_v60 = vld [vmem:[#allocation26 + $0x8] sm:$0xff] }
 0x706   :  { %6560 = vmatprep.subr.bf16.mxu1 %v8967_v61  ;;  %1869 = vmax.xlane.f32.xlu0 %v1867_v59 }
 0x709   :  { %6562 = vmatpush3.bf16.msra.mxu1 %v8967_v61  ;;  %v2035_v61 = vld [vmem:[#allocation26 + $0x10] sm:$0xff] }
 0x70a   :  { %6564 = vmatprep.subr.bf16.mxu1 %v8976_v6  ;;  %1871 = vmax.xlane.f32.xlu0 %v1868_v5  ;;  %v6699_v11 = vpack.c.bf16 %v2036_v7, %v2035_v61  ;;  %v2228_v7 = vld [vmem:[#allocation27 + $0x40] sm:$0xff] }
 0x70d   :  { %6566 = vmatpush3.bf16.msra.mxu1 %v8976_v6  ;;  %v6695_v6 = vpack.c.bf16 %v2034_v60, %v2033_v56  ;;  %v2231_v56 = vld [vmem:[#allocation27 + $0x58] sm:$0xff] }
 0x70e   :  { %6568 = vmatprep.subr.bf16.mxu1 %v8981_v20  ;;  %v2235_v60 = vld [vmem:[#allocation27 + $0x78] sm:$0xff] }
 0x70f   :  { %6696 = vmatprep.subr.bf16.mxu0 %v6695_v6 }
 0x710   :  { %6698 = vmatpush3.bf16.msra.mxu0 %v6695_v6  ;;  %v6715_v6 = vpack.c.bf16 %v2235_v60, %v2231_v56  ;;  %v2513_v56 = vld [vmem:[#allocation30 + $0x188] sm:$0xff] }
 0x711   :  { %6570 = vmatpush3.bf16.msra.mxu1 %v8981_v20  ;;  %6700 = vmatprep.subr.bf16.mxu0 %v6699_v11 }
 0x712   :  { %6572 = vmatprep.subr.bf16.mxu1 %v8983_v21 }
 0x714   :  { %6702 = vmatpush3.bf16.msra.mxu0 %v6699_v11  ;;  %v2232_v11 = vld [vmem:[#allocation27 + $0x60] sm:$0xff] }
 0x715   :  { %6574 = vmatpush3.bf16.msra.mxu1 %v8983_v21  ;;  %6712 = vmatprep.subr.bf16.mxu0 %v6711_v19 }
 0x716   :  { %6576 = vmatprep.subr.bf16.mxu1 %v8987_v24 }
 0x719   :  { %6578 = vmatpush3.bf16.msra.mxu1 %v8987_v24 }
 0x71a   :  { %6580 = vmatprep.subr.bf16.mxu1 %v8989_v25 }
 0x71d   :  { %6582 = vmatpush3.bf16.msra.mxu1 %v8989_v25 }
 0x71e   :  { %6632 = vmatprep.subr.bf16.mxu1 %v8758_v15 }
 0x793   :  { %v1870_v17 = vpop.xlane.xlu0 %1869 }
 0x794   :  { %v1873_v20 = vsub.f32 %v1867_v59, %v1870_v17  ;;  %v2230_v17 = vld [vmem:[#allocation27 + $0x50] sm:$0xff] }
 0x796   :  { %v1875_v23 = vmul.f32 1.442695, %v1873_v20  ;;  %v6709_v20 = vpack.c.bf16 %v2232_v11, %v2228_v7  ;;  %v2496_v7 = vld [vmem:[#allocation30 + $0x100] sm:$0xff] }
 0x797   :  { %v1872_v16 = vpop.xlane.xlu0 %1871 }
 0x798   :  { %v1874_v51 = vsub.f32 %v1868_v5, %v1872_v16  ;;  %v2233_v5 = vld [vmem:[#allocation27 + $0x68] sm:$0xff] }
 0x799   :  { %v6707_v61 = vpack.c.bf16 %v2233_v5, %v2229_v58  ;;  %v2481_v58 = vld [vmem:[#allocation30 + $0x88] sm:$0xff] }
 0x79a   :  { %v1877_v44 = vmul.f32 1.442695, %v1874_v51 }
 0x7d3   :  { %v5949_v21 = vpop.f32.mrb[12].mxu1 }
 0x7d4   :  { %7269 = vrcp.f32 %v5949_v21  ;;  %v1618_v22 = vpop.f32.mrb[13].mxu1  ;;  %v2234_v21 = vld [vmem:[#allocation27 + $0x70] sm:$0xff] }
 0x7d5   :  { %7271 = vrcp.f32 %v1618_v22  ;;  %v6717_v22 = vpack.c.bf16 %v2234_v21, %v2230_v17  ;;  %v2497_v17 = vld [vmem:[#allocation30 + $0x108] sm:$0xff]  ;;  %v2482_v21 = vld [vmem:[#allocation30 + $0x90] sm:$0xff] }
 0x7d6   :  { %7273 = vpow2.f32 %v1875_v23 }
 0x7d7   :  { %7275 = vpow2.f32 %v1877_v44 }
 0x7de   :  { %v7270_v24 = vpop.eup %7269 }
 0x7df   :  { %v7272_v25 = vpop.eup %7271  ;;  %v1630_v29 = vmul.f32 %v7270_v24, %v7268_v57  ;;  %v2222_v57 = vld [vmem:[#allocation27 + $0x10] sm:$0xff] }
 0x7e0   :  { %v1629_v27 = vmul.f32 %v7272_v25, %v7266_v34  ;;  %v7274_v8 = vpop.eup %7273  ;;  %v6705_v34 = vpack.c.bf16 %v2224_v14, %v2220_v13  ;;  %v6713_v59 = vpack.c.bf16 %v2226_v39, %v2222_v57  ;;  %v2480_v39 = vld [vmem:[#allocation30 + $0x80] sm:$0xff] }
 0x7e1   :  { %v7276_v62 = vpop.eup %7275  ;;  %v6719_v5 = vpack.c.bf16 %v2481_v58, %v2480_v39  ;;  %v2489_v39 = vld [vmem:[#allocation30 + $0xc8] sm:$0xff]  ;;  %v2520_v58 = vld [vmem:[#allocation30 + $0x1c0] sm:$0xff] }
 0x7e2   :  { %5982 = vmatprep.mubr.f32.mxu1 %v1629_v27 }
 0x7e3   :  { %5983 = vmatmul.mubr.f32.vlgmr.msra.gmra.mrb[14].mxu1 %v1630_v29 }
 0x7e4   :  { %6634 = vmatpush3.bf16.msra.mxu1 %v8758_v15  ;;  %6052 = vmatprep.mubr.f32.mxu1 %v7274_v8 }
 0x7e5   :  { %6636 = vmatprep.subr.bf16.mxu1 %v8772_v28 }
 0x7e8   :  { %6638 = vmatpush3.bf16.msra.mxu1 %v8772_v28 }
 0x7e9   :  { %6640 = vmatprep.subr.bf16.mxu1 %v8780_v31 }
 0x7ec   :  { %6642 = vmatpush3.bf16.msra.mxu1 %v8780_v31 }
 0x7ed   :  { %6644 = vmatprep.subr.bf16.mxu1 %v8787_v35 }
 0x7f0   :  { %6646 = vmatpush3.bf16.msra.mxu1 %v8787_v35 }
 0x7f1   :  { %6648 = vmatprep.subr.bf16.mxu1 %v8793_v40 }
 0x7f4   :  { %6650 = vmatpush3.bf16.msra.mxu1 %v8793_v40 }
 0x7f5   :  { %6652 = vmatprep.subr.bf16.mxu1 %v8895_v26 }
 0x7f8   :  { %6654 = vmatpush3.bf16.msra.mxu1 %v8895_v26 }
 0x7f9   :  { %6656 = vmatprep.subr.bf16.mxu1 %v8901_v30 }
 0x7fc   :  { %6658 = vmatpush3.bf16.msra.mxu1 %v8901_v30 }
 0x7fd   :  { %6660 = vmatprep.subr.bf16.mxu1 %v8911_v36 }
 0x800   :  { %6662 = vmatpush3.bf16.msra.mxu1 %v8911_v36 }
 0x801   :  { %6664 = vmatprep.subr.bf16.mxu1 %v8993_v32 }
 0x803   :  { %6053 = vmatmul.mubr.f32.vlgmr.msra.gmra.mrb[16].mxu1 %v7276_v62 }
 0x804   :  { %6666 = vmatpush3.bf16.msra.mxu1 %v8993_v32 }
 0x805   :  { %6668 = vmatprep.subr.bf16.mxu1 %v9000_v41 }
 0x808   :  { %6670 = vmatpush3.bf16.msra.mxu1 %v9000_v41 }
 0x809   :  { %6672 = vmatprep.subr.bf16.mxu1 %v9008_v37 }
 0x80c   :  { %6674 = vmatpush3.bf16.msra.mxu1 %v9008_v37 }
 0x80d   :  { %6676 = vmatprep.subr.bf16.mxu1 %v9013_v12 }
 0x810   :  { %6678 = vmatpush3.bf16.msra.mxu1 %v9013_v12 }
 0x811   :  { %6680 = vmatprep.subr.bf16.mxu1 %v9015_v63 }
 0x814   :  { %6682 = vmatpush3.bf16.msra.mxu1 %v9015_v63 }
 0x815   :  { %6684 = vmatprep.subr.bf16.mxu1 %v9019_v49 }
 0x818   :  { %6686 = vmatpush3.bf16.msra.mxu1 %v9019_v49 }
 0x819   :  { %6688 = vmatprep.subr.bf16.mxu1 %v9022_v0 }
 0x81c   :  { %6690 = vmatpush3.bf16.msra.mxu1 %v9022_v0 }
 0x81d   :  { %6692 = vmatprep.subr.bf16.mxu1 %v9024_v1 }
 0x820   :  { %6694 = vmatpush3.bf16.msra.mxu1 %v9024_v1 }
 0x821   :  { %6704 = vmatprep.subr.bf16.mxu1 %v6703_v9 }
 0x8b6   :  { %v5984_v32 = vpop.f32.mrb[14].mxu1 }
 0x8b7   :  { %v1697_v41 = vpop.f32.mrb[15].mxu1 }
 0x8b8   :  { %6098 = vmatprep.mubr.msk.f32.mxu0 %vm904_vm2, %v1697_v41 }
 0x8b9   :  { %6099 = vmatmul.mubr.msk.f32.vlgmr.msra.gmra.mrb[16].mxu0 %vm904_vm2, %v5984_v32 }
 0x8ba   :  { %6714 = vmatpush1.bf16.msra.mxu0 %v6713_v59  ;;  %v2512_v59 = vld [vmem:[#allocation30 + $0x180] sm:$0xff] }
 0x8bb   :  { %6716 = vmatprep.subr.bf16.mxu0 %v6715_v6  ;;  %v6751_v60 = vpack.c.bf16 %v2513_v56, %v2512_v59  ;;  %v2465_v6 = vld [vmem:[#allocation30 + $0x8] sm:$0xff] }
 0x8bc   :  { %v2521_v56 = vld [vmem:[#allocation30 + $0x1c8] sm:$0xff] }
 0x8be   :  { %6718 = vmatpush1.bf16.msra.mxu0 %v6717_v22  ;;  %v2483_v22 = vld [vmem:[#allocation30 + $0x98] sm:$0xff] }
 0x8bf   :  { %6752 = vmatprep.subr.bf16.mxu0 %v6751_v60  ;;  %v2472_v60 = vld [vmem:[#allocation30 + $0x40] sm:$0xff] }
 0x8d6   :  { %v6054_v38 = vpop.f32.mrb[16].mxu1 }
 0x8d7   :  { %7277 = vrcp.f32 %v6054_v38  ;;  %v1945_v37 = vpop.f32.mrb[17].mxu1 }
 0x8d8   :  { %7279 = vrcp.f32 %v1945_v37 }
 0x8e1   :  { %v7278_v43 = vpop.eup %7277 }
 0x8e2   :  { %v7280_v46 = vpop.eup %7279  ;;  %v1957_v12 = vmul.f32 %v7278_v43, %v7276_v62 }
 0x8e3   :  { %v1956_v47 = vmul.f32 %v7280_v46, %v7274_v8 }
 0x8e5   :  { %6087 = vmatprep.mubr.f32.mxu1 %v1956_v47 }
 0x8e6   :  { %6088 = vmatmul.mubr.f32.vlgmr.msra.gmra.mrb[18].mxu1 %v1957_v12 }
 0x8e7   :  { %2334 = vmatprep.mubr.f32.mxu1 %v8212_v18  ;;  %6706 = vmatpush1.bf16.msra.mxu1 %v6705_v34 }
 0x8e8   :  { %6708 = vmatprep.subr.bf16.mxu1 %v6707_v61  ;;  %v2464_v61 = vld [vmem:[#allocation30] sm:$0xff] }
 0x8e9   :  { %v6721_v11 = vpack.c.bf16 %v2465_v6, %v2464_v61  ;;  %v2473_v61 = vld [vmem:[#allocation30 + $0x48] sm:$0xff]  ;;  %v6767_v6 = vpack.c.bf16 %v2521_v56, %v2520_v58 }
 0x8eb   :  { %6710 = vmatpush1.bf16.msra.mxu1 %v6709_v20  ;;  %v6753_v20 = vpack.c.bf16 %v2497_v17, %v2496_v7  ;;  %v2504_v7 = vld [vmem:[#allocation30 + $0x140] sm:$0xff]  ;;  %v2490_v17 = vld [vmem:[#allocation30 + $0xd0] sm:$0xff] }
 0x8ec   :  { %6720 = vmatprep.subr.bf16.mxu1 %v6719_v5 }
 0x98c   :  { %v6100_v63 = vpop.f32.mrb[16].mxu0 }
 0x98d   :  { %v2115_v45 = vpop.f32.mrb[17].mxu0  ;;  %v9107_v48 = vadd.f32 %v6100_v63, %v8706_v53  ;;  %v9128_v63 = vld [vmem:[%s9872_s5] ss:$0 sm:$0xff] }
 0x98e   :  { %v9110_v49 = vadd.f32 %v2115_v45, %v8709_v54 }
 0x98f   :  { %v2155_v52 = vmul.f32 %v9107_v48, %v9107_v48  ;;  %v2141_v53 = vsel %vm904_vm2, %v9107_v48, 0.0 }
 0x990   :  { %v2138_v50 = vsel %vm904_vm2, %v9110_v49, 0.0  ;;  %v2154_v0 = vmul.f32 %v9110_v49, %v9110_v49 }
 0x991   :  { %2139 = vadd.xlane.f32.xlu0 %v2138_v50  ;;  %v2161_v54 = vsel %vm904_vm2, %v2155_v52, 0.0  ;;  %v9131_v50 = vld [vmem:[%s9873_s29] ss:$0 sm:$0xff] }
 0x992   :  { %v2158_v1 = vsel %vm904_vm2, %v2154_v0, 0.0 }
 0x993   :  { %2159 = vadd.xlane.f32.xlu1 %v2158_v1 }
 0x995   :  { %2142 = vadd.xlane.f32.xlu0 %v2141_v53 }
 0x997   :  { %2162 = vadd.xlane.f32.xlu1 %v2161_v54 }
 0x9b9   :  { %v6089_v23 = vpop.f32.mrb[18].mxu1 }
 0x9ba   :  { %v2024_v24 = vpop.f32.mrb[19].mxu1 }
 0x9bb   :  { %6101 = vmatprep.mubr.msk.f32.mxu0 %vm904_vm2, %v2024_v24  ;;  %v6723_v24 = vpack.c.bf16 %v2483_v22, %v2482_v21  ;;  %v2522_v21 = vld [vmem:[#allocation30 + $0x1d0] sm:$0xff]  ;;  %v2523_v22 = vld [vmem:[#allocation30 + $0x1d8] sm:$0xff] }
 0x9bc   :  { %6102 = vmatmul.mubr.msk.f32.gmra.mrb[18].mxu0 %vm904_vm2, %v6089_v23  ;;  %v2514_v23 = vld [vmem:[#allocation30 + $0x190] sm:$0xff] }
 0x9bd   :  { %2423 = vmatprep.mubr.f32.mxu0 %v8212_v18 }
 0xa1e   :  { %v2140_v25 = vpop.xlane.xlu0 %2139 }
 0xa1f   :  { %v2150_v27 = vmul.f32 0.03125, %v2140_v25  ;;  %v2515_v25 = vld [vmem:[#allocation30 + $0x198] sm:$0xff] }
 0xa20   :  { %v2160_v29 = vpop.xlane.xlu1 %2159 }
 0xa21   :  { %v2174_v8 = vmul.f32 %v2150_v27, %v2150_v27  ;;  %v2170_v16 = vmul.f32 0.03125, %v2160_v29  ;;  %v2182_v47 = vsub.f32 %v9110_v49, %v2150_v27  ;;  %v2466_v27 = vld [vmem:[#allocation30 + $0x10] sm:$0xff]  ;;  %v2467_v29 = vld [vmem:[#allocation30 + $0x18] sm:$0xff] }
 0xa22   :  { %v2143_v51 = vpop.xlane.xlu0 %2142 }
 0xa23   :  { %v2178_v44 = vsub.f32 %v2170_v16, %v2174_v8  ;;  %v2151_v62 = vmul.f32 0.03125, %v2143_v51  ;;  %v6755_v8 = vpack.c.bf16 %v2515_v25, %v2514_v23  ;;  %v6725_v16 = vpack.c.bf16 %v2467_v29, %v2466_v27  ;;  %v2498_v51 = vld [vmem:[#allocation30 + $0x110] sm:$0xff]  ;;  %v2475_v29 = vld [vmem:[#allocation30 + $0x58] sm:$0xff] }
 0xa24   :  { %v2163_v32 = vpop.xlane.xlu1 %2162  ;;  %v6737_v23 = vpack.c.bf16 %v2473_v61, %v2472_v60  ;;  %v2474_v27 = vld [vmem:[#allocation30 + $0x50] sm:$0xff] }
 0xa25   :  { %v2186_v41 = vadd.f32 1e-05, %v2178_v44  ;;  %v2175_v38 = vmul.f32 %v2151_v62, %v2151_v62  ;;  %v2171_v37 = vmul.f32 0.03125, %v2163_v32  ;;  %v2183_v0 = vsub.f32 %v9107_v48, %v2151_v62  ;;  %v2499_v44 = vld [vmem:[#allocation30 + $0x118] sm:$0xff]  ;;  %v2484_v62 = vld [vmem:[#allocation30 + $0xa0] sm:$0xff] }
 0xa26   :  { %v6757_v32 = vpack.c.bf16 %v2499_v44, %v2498_v51  ;;  %v2507_v51 = vld [vmem:[#allocation30 + $0x158] sm:$0xff]  ;;  %v2492_v44 = vld [vmem:[#allocation30 + $0xe0] sm:$0xff] }
 0xa27   :  { %7281 = vrsqrt.f32 %v2186_v41  ;;  %v2179_v43 = vsub.f32 %v2171_v37, %v2175_v38  ;;  %v2485_v41 = vld [vmem:[#allocation30 + $0xa8] sm:$0xff]  ;;  %v2516_v38 = vld [vmem:[#allocation30 + $0x1a0] sm:$0xff] }
 0xa28   :  { %v2517_v37 = vld [vmem:[#allocation30 + $0x1a8] sm:$0xff] }
 0xa29   :  { %v2187_v46 = vadd.f32 1e-05, %v2179_v43  ;;  %v6727_v43 = vpack.c.bf16 %v2485_v41, %v2484_v62  ;;  %v2493_v62 = vld [vmem:[#allocation30 + $0xe8] sm:$0xff]  ;;  %v6741_v41 = vpack.c.bf16 %v2475_v29, %v2474_v27 }
 0xa2b   :  { %7283 = vrsqrt.f32 %v2187_v46  ;;  %v6759_v46 = vpack.c.bf16 %v2517_v37, %v2516_v38  ;;  %v2525_v38 = vld [vmem:[#allocation30 + $0x1e8] sm:$0xff] }
 0xa31   :  { %v7282_v12 = vpop.eup %7281 }
 0xa32   :  { %v2194_v45 = vmul.f32 %v7282_v12, %v2182_v47  ;;  %v2468_v47 = vld [vmem:[#allocation30 + $0x20] sm:$0xff]  ;;  %v2469_v12 = vld [vmem:[#allocation30 + $0x28] sm:$0xff] }
 0xa34   :  { %v2205_v1 = vmul.f32 %v9128_v63, %v2194_v45  ;;  %v2500_v45 = vld [vmem:[#allocation30 + $0x120] sm:$0xff] }
 0xa35   :  { %v7284_v52 = vpop.eup %7283 }
 0xa36   :  { %v2216_v53 = vadd.f32 %v9131_v50, %v2205_v1  ;;  %v2195_v54 = vmul.f32 %v7284_v52, %v2183_v0  ;;  %v6729_v0 = vpack.c.bf16 %v2469_v12, %v2468_v47  ;;  %v2501_v1 = vld [vmem:[#allocation30 + $0x128] sm:$0xff]  ;;  %v2486_v52 = vld [vmem:[#allocation30 + $0xb0] sm:$0xff] }
 0xa37   :  { %v2477_v47 = vld [vmem:[#allocation30 + $0x68] sm:$0xff] }
 0xa38   :  { %5208 = vmatmul.mubr.msk.f32.vlgmr.msra.gmra.mrb[20].mxu1 %vm904_vm2, %v2216_v53  ;;  %5212 = vmatmul.mubr.msk.f32.vlgmr.msra.gmra.mrb[20].mxu0 %vm904_vm2, %v2216_v53  ;;  %v2206_v55 = vmul.f32 %v9128_v63, %v2195_v54  ;;  %v2487_v53 = vld [vmem:[#allocation30 + $0xb8] sm:$0xff]  ;;  %v6761_v54 = vpack.c.bf16 %v2501_v1, %v2500_v45  ;;  %v2508_v45 = vld [vmem:[#allocation30 + $0x160] sm:$0xff]  ;;  %v2494_v1 = vld [vmem:[#allocation30 + $0xf0] sm:$0xff] }
 0xa39   :  { %2340 = vmatprep.mubr.f32.mxu1 %v8212_v18  ;;  %2429 = vmatprep.mubr.f32.mxu0 %v8212_v18 }
 0xa3a   :  { %v2217_v2 = vadd.f32 %v9131_v50, %v2206_v55  ;;  %6722 = vmatpush3.bf16.msra.mxu1 %v6721_v11  ;;  %6754 = vmatpush3.bf16.msra.mxu0 %v6753_v20  ;;  %v6731_v55 = vpack.c.bf16 %v2487_v53, %v2486_v52  ;;  %v2505_v11 = vld [vmem:[#allocation30 + $0x148] sm:$0xff]  ;;  %v2491_v20 = vld [vmem:[#allocation30 + $0xd8] sm:$0xff]  ;;  %v2526_v53 = vld [vmem:[#allocation30 + $0x1f0] sm:$0xff] }
 0xa3b   :  { %6724 = vmatprep.subr.bf16.mxu1 %v6723_v24  ;;  %6756 = vmatprep.subr.bf16.mxu0 %v6755_v8  ;;  %v6769_v24 = vpack.c.bf16 %v2505_v11, %v2504_v7  ;;  %v6739_v25 = vpack.c.bf16 %v2491_v20, %v2490_v17  ;;  %v6771_v8 = vpack.c.bf16 %v2523_v22, %v2522_v21  ;;  %v2495_v52 = vld [vmem:[#allocation30 + $0xf8] sm:$0xff] }
 0xa3c   :  { %5209 = vmatmul.mubr.msk.f32.gmra.mrb[22].mxu1 %vm904_vm2, %v2217_v2  ;;  %5213 = vmatmul.mubr.msk.f32.gmra.mrb[22].mxu0 %vm904_vm2, %v2217_v2  ;;  %v2518_v2 = vld [vmem:[#allocation30 + $0x1b0] sm:$0xff] }
 0xa3d   :  { %2346 = vmatprep.mubr.f32.mxu1 %v8212_v18  ;;  %2435 = vmatprep.mubr.f32.mxu0 %v8212_v18 }
 0xa3e   :  { %6726 = vmatpush3.bf16.msra.mxu1 %v6725_v16  ;;  %6758 = vmatpush3.bf16.msra.mxu0 %v6757_v32  ;;  %v2506_v16 = vld [vmem:[#allocation30 + $0x150] sm:$0xff]  ;;  %v2524_v32 = vld [vmem:[#allocation30 + $0x1e0] sm:$0xff] }
 0xa3f   :  { %6728 = vmatprep.subr.bf16.mxu1 %v6727_v43  ;;  %6760 = vmatprep.subr.bf16.mxu0 %v6759_v46  ;;  %v6773_v37 = vpack.c.bf16 %v2507_v51, %v2506_v16  ;;  %v6743_v43 = vpack.c.bf16 %v2493_v62, %v2492_v44  ;;  %v2476_v46 = vld [vmem:[#allocation30 + $0x60] sm:$0xff]  ;;  %v6775_v12 = vpack.c.bf16 %v2525_v38, %v2524_v32  ;;  %v2238_v16 = vlaneseq  ;;  %v2236_v38 = vld [vmem:[#allocation29] sm:$0xf] }
 0xa41   :  { %v9162_v62 = vshrl.u32 %v2238_v16, 7 }
 0xa42   :  { %6730 = vmatpush3.bf16.msra.mxu1 %v6729_v0  ;;  %6762 = vmatpush3.bf16.msra.mxu0 %v6761_v54  ;;  %v2509_v0 = vld [vmem:[#allocation30 + $0x168] sm:$0xff]  ;;  %v6745_v54 = vpack.c.bf16 %v2477_v47, %v2476_v46 }
 0xa43   :  { %6732 = vmatprep.subr.bf16.mxu1 %v6731_v55  ;;  %v2527_v55 = vld [vmem:[#allocation30 + $0x1f8] sm:$0xff]  ;;  %v9810_v32 = vsub.s32 1, %v9162_v62  ;;  %v9808_v46 = vsub.s32 0, %v9162_v62  ;;  %v9807_v47 = vsub.s32 2, %v9162_v62 }
 0xa8f   :  { %v6103_v3 = vpop.f32.mrb[18].mxu0 }
 0xa90   :  { %v2125_v9 = vpop.f32.mrb[19].mxu0  ;;  %v9147_v10 = vadd.f32 %v6103_v3, %v8738_v42  ;;  %v2519_v3 = vld [vmem:[#allocation30 + $0x1b8] sm:$0xff] }
 0xa91   :  { %v9150_v13 = vadd.f32 %v2125_v9, %v8728_v33  ;;  %v2470_v9 = vld [vmem:[#allocation30 + $0x30] sm:$0xff] }
 0xa92   :  { %v2157_v57 = vmul.f32 %v9147_v10, %v9147_v10  ;;  %v2147_v42 = vsel %vm904_vm2, %v9147_v10, 0.0 }
 0xa93   :  { %v2144_v14 = vsel %vm904_vm2, %v9150_v13, 0.0  ;;  %v2156_v19 = vmul.f32 %v9150_v13, %v9150_v13 }
 0xa94   :  { %2145 = vadd.xlane.f32.xlu0 %v2144_v14  ;;  %v2167_v33 = vsel %vm904_vm2, %v2157_v57, 0.0  ;;  %v6763_v14 = vpack.c.bf16 %v2519_v3, %v2518_v2  ;;  %v2503_v57 = vld [vmem:[#allocation30 + $0x138] sm:$0xff]  ;;  %v6777_v2 = vpack.c.bf16 %v2509_v0, %v2508_v45  ;;  %v6747_v3 = vpack.c.bf16 %v2495_v52, %v2494_v1 }
 0xa95   :  { %v2164_v34 = vsel %vm904_vm2, %v2156_v19, 0.0  ;;  %v2471_v19 = vld [vmem:[#allocation30 + $0x38] sm:$0xff]  ;;  %v2245_v45 = vrot.slane %v2236_v38, %v9810_v32 }
 0xa96   :  { %2165 = vadd.xlane.f32.xlu1 %v2164_v34  ;;  %v2502_v34 = vld [vmem:[#allocation30 + $0x130] sm:$0xff]  ;;  %6764 = vmatprep.subr.bf16.mxu0 %v6763_v14  ;;  %v2479_v14 = vld [vmem:[#allocation30 + $0x78] sm:$0xff] }
 0xa97   :  { %v6765_v59 = vpack.c.bf16 %v2503_v57, %v2502_v34  ;;  %v2510_v34 = vld [vmem:[#allocation30 + $0x170] sm:$0xff]  ;;  %v2511_v57 = vld [vmem:[#allocation30 + $0x178] sm:$0xff] }
 0xa98   :  { %2148 = vadd.xlane.f32.xlu0 %v2147_v42  ;;  %v6733_v42 = vpack.c.bf16 %v2471_v19, %v2470_v9  ;;  %v2478_v9 = vld [vmem:[#allocation30 + $0x70] sm:$0xff]  ;;  %v6779_v19 = vpack.c.bf16 %v2527_v55, %v2526_v53  ;;  %v2249_v55 = vrot.slane %v2236_v38, %v9807_v47 }
 0xa99   :  { %6766 = vmatpush3.bf16.msra.mxu0 %v6765_v59 }
 0xa9a   :  { %2168 = vadd.xlane.f32.xlu1 %v2167_v33  ;;  %v2488_v33 = vld [vmem:[#allocation30 + $0xc0] sm:$0xff]  ;;  %6734 = vmatpush3.bf16.msra.mxu1 %v6733_v42  ;;  %v6749_v42 = vpack.c.bf16 %v2479_v14, %v2478_v9 }
 0xa9b   :  { %v6735_v5 = vpack.c.bf16 %v2489_v39, %v2488_v33  ;;  %6768 = vmatprep.subr.bf16.mxu0 %v6767_v6  ;;  %v6781_v33 = vpack.c.bf16 %v2511_v57, %v2510_v34 }
 0xa9d   :  { %6736 = vmatprep.subr.bf16.mxu1 %v6735_v5  ;;  %6770 = vmatpush3.bf16.msra.mxu0 %v6769_v24 }
 0xa9e   :  { %6738 = vmatpush3.bf16.msra.mxu1 %v6737_v23  ;;  %6772 = vmatprep.subr.bf16.mxu0 %v6771_v8 }
 0xa9f   :  { %6740 = vmatprep.subr.bf16.mxu1 %v6739_v25 }
 0xaa1   :  { %6774 = vmatpush3.bf16.msra.mxu0 %v6773_v37 }
 0xaa2   :  { %6742 = vmatpush3.bf16.msra.mxu1 %v6741_v41  ;;  %6776 = vmatprep.subr.bf16.mxu0 %v6775_v12  ;;  %v9809_v41 = vsub.s32 3, %v9162_v62 }
 0xaa3   :  { %6744 = vmatprep.subr.bf16.mxu1 %v6743_v43 }
 0xaa4   :  { %v2253_v0 = vrot.slane %v2236_v38, %v9809_v41 }
 0xaa5   :  { %6778 = vmatpush3.bf16.msra.mxu0 %v6777_v2 }
 0xaa6   :  { %6746 = vmatpush3.bf16.msra.mxu1 %v6745_v54  ;;  %6780 = vmatprep.subr.bf16.mxu0 %v6779_v19  ;;  %v2241_v54 = vrot.slane %v2236_v38, %v9808_v46 }
 0xaa7   :  { %6748 = vmatprep.subr.bf16.mxu1 %v6747_v3 }
 0xaa9   :  { %6782 = vmatpush3.bf16.msra.mxu0 %v6781_v33 }
 0xaaa   :  { %6750 = vmatpush3.bf16.msra.mxu1 %v6749_v42 }
 0xb0b   :  { %v2336_v39 = vpop.f32.mrb[20].mxu1  ;;  %v2425_v58 = vpop.f32.mrb[20].mxu0 }
 0xb0c   :  { %v2338_v59 = vpop.f32.mrb[21].mxu1  ;;  %v2427_v5 = vpop.f32.mrb[21].mxu0  ;;  %v2337_v34 = vadd.f32 %v2336_v39, %v2241_v54  ;;  %v2426_v57 = vadd.f32 %v2425_v58, %v2249_v55 }
 0xb0d   :  { %v2339_v9 = vadd.f32 %v2338_v59, %v2245_v45  ;;  %v2428_v14 = vadd.f32 %v2427_v5, %v2253_v0 }
 0xb0e   :  { %v2448_v59 = vmax.f32 %v2337_v34, 0.0  ;;  %v9188_v34 = vld [vmem:[#allocation32] ss:$0 sm:$0xff] }
 0xb0f   :  { %v2342_v56 = vpop.f32.mrb[22].mxu1  ;;  %v2431_v60 = vpop.f32.mrb[22].mxu0  ;;  %v2449_v33 = vmax.f32 %v2339_v9, 0.0 }
 0xb10   :  { %v2344_v61 = vpop.f32.mrb[23].mxu1  ;;  %v2433_v6 = vpop.f32.mrb[23].mxu0  ;;  %v2343_v5 = vadd.f32 %v2342_v56, %v2241_v54 }
 0xb21   :  { %v2146_v7 = vpop.xlane.xlu0 %2145 }
 0xb22   :  { %v2152_v11 = vmul.f32 0.03125, %v2146_v7  ;;  %v2451_v7 = vmax.f32 %v2428_v14, 0.0 }
 0xb23   :  { %v2166_v17 = vpop.xlane.xlu1 %2165 }
 0xb24   :  { %v2176_v20 = vmul.f32 %v2152_v11, %v2152_v11  ;;  %v2172_v21 = vmul.f32 0.03125, %v2166_v17  ;;  %v2184_v37 = vsub.f32 %v9150_v13, %v2152_v11  ;;  %v2345_v11 = vadd.f32 %v2344_v61, %v2245_v45 }
 0xb25   :  { %v2149_v22 = vpop.xlane.xlu0 %2148  ;;  %v2434_v17 = vadd.f32 %v2433_v6, %v2253_v0 }
 0xb26   :  { %v2180_v23 = vsub.f32 %v2172_v21, %v2176_v20  ;;  %v2153_v24 = vmul.f32 0.03125, %v2149_v22  ;;  %v2432_v20 = vadd.f32 %v2431_v60, %v2249_v55  ;;  %v2453_v21 = vmax.f32 %v2345_v11, 0.0 }
 0xb27   :  { %v2169_v25 = vpop.xlane.xlu1 %2168  ;;  %v2455_v22 = vmax.f32 %v2434_v17, 0.0 }
 0xb28   :  { %v2188_v27 = vadd.f32 1e-05, %v2180_v23  ;;  %v2177_v29 = vmul.f32 %v2153_v24, %v2153_v24  ;;  %v2173_v8 = vmul.f32 0.03125, %v2169_v25  ;;  %v2185_v1 = vsub.f32 %v9147_v10, %v2153_v24 }
 0xb29   :  { %v2454_v39 = vmax.f32 %v2432_v20, 0.0 }
 0xb2a   :  { %7285 = vrsqrt.f32 %v2188_v27  ;;  %v2181_v51 = vsub.f32 %v2173_v8, %v2177_v29 }
 0xb2c   :  { %v2189_v44 = vadd.f32 1e-05, %v2181_v51 }
 0xb2e   :  { %7287 = vrsqrt.f32 %v2189_v44 }
 0xb34   :  { %v7286_v43 = vpop.eup %7285 }
 0xb35   :  { %v2196_v12 = vmul.f32 %v7286_v43, %v2184_v37 }
 0xb37   :  { %v2207_v52 = vmul.f32 %v9128_v63, %v2196_v12 }
 0xb38   :  { %v7288_v53 = vpop.eup %7287 }
 0xb39   :  { %v2218_v2 = vadd.f32 %v9131_v50, %v2207_v52  ;;  %v2197_v3 = vmul.f32 %v7288_v53, %v2185_v1 }
 0xb3b   :  { %5210 = vmatmul.mubr.msk.f32.gmra.mrb[24].mxu1 %vm904_vm2, %v2218_v2  ;;  %5214 = vmatmul.mubr.msk.f32.gmra.mrb[24].mxu0 %vm904_vm2, %v2218_v2  ;;  %v2208_v19 = vmul.f32 %v9128_v63, %v2197_v3  ;;  %v2450_v63 = vmax.f32 %v2426_v57, 0.0 }
 0xb3c   :  { %2352 = vmatprep.mubr.f32.mxu1 %v8212_v18  ;;  %2441 = vmatprep.mubr.f32.mxu0 %v8212_v18 }
 0xb3d   :  { %v2219_v42 = vadd.f32 %v9131_v50, %v2208_v19  ;;  %v2452_v50 = vmax.f32 %v2343_v5, 0.0 }
 0xb3f   :  { %5211 = vmatmul.mubr.msk.f32.gmra.mrb[26].mxu1 %vm904_vm2, %v2219_v42  ;;  %5215 = vmatmul.mubr.msk.f32.gmra.mrb[26].mxu0 %vm904_vm2, %v2219_v42 }
 0xb40   :  { %2599 = vmatprep.mubr.f32.mxu1 %v2449_v33  ;;  %2684 = vmatprep.mubr.f32.mxu0 %v2451_v7 }
 0xb43   :  { %2600 = vmatmul.mubr.f32.vlgmr.msra.gmra.mrb[28].mxu1 %v2448_v59  ;;  %2685 = vmatmul.mubr.f32.vlgmr.msra.gmra.mrb[28].mxu0 %v2450_v63 }
 0xb44   :  { %2604 = vmatprep.mubr.f32.mxu1 %v2453_v21  ;;  %2689 = vmatprep.mubr.f32.mxu0 %v2455_v22 }
 0xb47   :  { %2605 = vmatmul.mubr.f32.gmra.mrb[30].mxu1 %v2452_v50  ;;  %2690 = vmatmul.mubr.f32.gmra.mrb[30].mxu0 %v2454_v39 }
 0xc0e   :  { %v2348_v58 = vpop.f32.mrb[24].mxu1  ;;  %v2437_v61 = vpop.f32.mrb[24].mxu0 }
 0xc0f   :  { %v2349_v6 = vadd.f32 %v2348_v58, %v2241_v54  ;;  %v2438_v23 = vadd.f32 %v2437_v61, %v2249_v55  ;;  %v2350_v24 = vpop.f32.mrb[25].mxu1  ;;  %v2439_v25 = vpop.f32.mrb[25].mxu0 }
 0xc10   :  { %v2351_v27 = vadd.f32 %v2350_v24, %v2245_v45  ;;  %v2440_v29 = vadd.f32 %v2439_v25, %v2253_v0  ;;  %v2893_v24 = vld [vmem:[#allocation35 + $0x8] sm:$0xff]  ;;  %v2791_v25 = vld [vmem:[#allocation33] sm:$0xff] }
 0xc11   :  { %v2456_v51 = vmax.f32 %v2349_v6, 0.0  ;;  %v2458_v44 = vmax.f32 %v2438_v23, 0.0  ;;  %v2892_v23 = vld [vmem:[#allocation35] sm:$0xff] }
 0xc12   :  { %v2457_v56 = vmax.f32 %v2351_v27, 0.0  ;;  %v2459_v60 = vmax.f32 %v2440_v29, 0.0  ;;  %v2354_v8 = vpop.f32.mrb[26].mxu1  ;;  %v2443_v16 = vpop.f32.mrb[26].mxu0  ;;  %v6791_v27 = vpack.c.bf16 %v2893_v24, %v2892_v23  ;;  %v2792_v29 = vld [vmem:[#allocation33 + $0x8] sm:$0xff] }
 0xc13   :  { %v2355_v38 = vadd.f32 %v2354_v8, %v2241_v54  ;;  %v2444_v37 = vadd.f32 %v2443_v16, %v2249_v55  ;;  %v2356_v43 = vpop.f32.mrb[27].mxu1  ;;  %v2445_v12 = vpop.f32.mrb[27].mxu0  ;;  %v2793_v16 = vld [vmem:[#allocation33 + $0x10] sm:$0xff] }
 0xc14   :  { %v2357_v1 = vadd.f32 %v2356_v43, %v2245_v45  ;;  %v2446_v52 = vadd.f32 %v2445_v12, %v2253_v0  ;;  %2609 = vmatprep.mubr.f32.mxu1 %v2457_v56  ;;  %2694 = vmatprep.mubr.f32.mxu0 %v2459_v60  ;;  %v2895_v56 = vld [vmem:[#allocation35 + $0x18] sm:$0xff]  ;;  %v6783_v60 = vpack.c.bf16 %v2792_v29, %v2791_v25 }
 0xc15   :  { %2610 = vmatmul.mubr.f32.gmra.mrb[32].mxu1 %v2456_v51  ;;  %2695 = vmatmul.mubr.f32.gmra.mrb[32].mxu0 %v2458_v44  ;;  %v2460_v14 = vmax.f32 %v2355_v38, 0.0  ;;  %v2462_v19 = vmax.f32 %v2444_v37, 0.0  ;;  %v2794_v51 = vld [vmem:[#allocation33 + $0x18] sm:$0xff] }
 0xc16   :  { %v2461_v53 = vmax.f32 %v2357_v1, 0.0  ;;  %v2463_v2 = vmax.f32 %v2446_v52, 0.0  ;;  %v5491_v3 = vpop.f32.mrb[28].mxu1  ;;  %v5535_v9 = vpop.f32.mrb[28].mxu0  ;;  %6792 = vmatprep.subr.bf16.mxu0 %v6791_v27  ;;  %v6787_v44 = vpack.c.bf16 %v2794_v51, %v2793_v16  ;;  %6784 = vmatprep.subr.bf16.mxu1 %v6783_v60 }
 0xc17   :  { %v5492_v57 = vpop.f32.mrb[29].mxu1  ;;  %v5536_v42 = vpop.f32.mrb[29].mxu0  ;;  %6794 = vmatpush3.bf16.msra.mxu0 %v6791_v27  ;;  %6786 = vmatpush3.bf16.msra.mxu1 %v6783_v60 }
 0xc18   :  { %v5493_v54 = vadd.f32 %v5492_v57, %v5491_v3  ;;  %v5537_v55 = vadd.f32 %v5536_v42, %v5535_v9  ;;  %2614 = vmatprep.mubr.f32.mxu1 %v2461_v53  ;;  %2699 = vmatprep.mubr.f32.mxu0 %v2463_v2 }
 0xc19   :  { %2615 = vmatmul.mubr.f32.gmra.mrb[34].mxu1 %v2460_v14  ;;  %2700 = vmatmul.mubr.f32.gmra.mrb[34].mxu0 %v2462_v19 }
 0xc1a   :  { %v2602_v45 = vadd.f32 %v5493_v54, %v9188_v34  ;;  %v5494_v0 = vpop.f32.mrb[30].mxu1  ;;  %v5538_v33 = vpop.f32.mrb[30].mxu0  ;;  %6788 = vmatprep.subr.bf16.mxu1 %v6787_v44 }
 0xc1b   :  { %v5495_v7 = vpop.f32.mrb[31].mxu1  ;;  %v5539_v11 = vpop.f32.mrb[31].mxu0  ;;  %6790 = vmatpush3.bf16.msra.mxu1 %v6787_v44 }
 0xc1c   :  { %v2687_v17 = vadd.f32 %v5537_v55, %v2602_v45  ;;  %v5496_v59 = vadd.f32 %v5495_v7, %v5494_v0  ;;  %v5540_v63 = vadd.f32 %v5539_v11, %v5538_v33  ;;  %v9210_v45 = vld [vmem:[%s9874_s26] ss:$0 sm:$0xff] }
 0xc1d   :  { %v9213_v33 = vld [vmem:[%s9875_s4] ss:$0 sm:$0xff] }
 0xc1e   :  { %v9192_v5 = vadd.f32 %v2687_v17, %v9110_v49  ;;  %v2607_v20 = vadd.f32 %v5496_v59, %v9188_v34 }
 0xc20   :  { %v2692_v21 = vadd.f32 %v5540_v63, %v2607_v20  ;;  %v2709_v22 = vsel %vm904_vm2, %v9192_v5, 0.0  ;;  %v2725_v50 = vmul.f32 %v9192_v5, %v9192_v5 }
 0xc21   :  { %2710 = vadd.xlane.f32.xlu0 %v2709_v22 }
 0xc22   :  { %v9200_v39 = vadd.f32 %v2692_v21, %v9107_v48  ;;  %v2729_v61 = vsel %vm904_vm2, %v2725_v50, 0.0  ;;  %v2894_v48 = vld [vmem:[#allocation35 + $0x10] sm:$0xff] }
 0xc23   :  { %v6795_v8 = vpack.c.bf16 %v2895_v56, %v2894_v48 }
 0xc24   :  { %v2712_v58 = vsel %vm904_vm2, %v9200_v39, 0.0  ;;  %v2726_v49 = vmul.f32 %v9200_v39, %v9200_v39 }
 0xc25   :  { %2713 = vadd.xlane.f32.xlu1 %v2712_v58  ;;  %2730 = vadd.xlane.f32.xlu0 %v2729_v61 }
 0xc26   :  { %v2732_v6 = vsel %vm904_vm2, %v2726_v49, 0.0  ;;  %6796 = vmatprep.subr.bf16.mxu0 %v6795_v8 }
 0xc27   :  { %6798 = vmatpush3.bf16.msra.mxu0 %v6795_v8 }
 0xc29   :  { %2733 = vadd.xlane.f32.xlu1 %v2732_v6 }
 0xcae   :  { %v2711_v38 = vpop.xlane.xlu0 %2710 }
 0xcaf   :  { %v2721_v37 = vmul.f32 0.03125, %v2711_v38 }
 0xcb1   :  { %v2745_v1 = vmul.f32 %v2721_v37, %v2721_v37  ;;  %v2753_v54 = vsub.f32 %v9192_v5, %v2721_v37 }
 0xcb2   :  { %v2714_v43 = vpop.xlane.xlu1 %2713  ;;  %v2731_v12 = vpop.xlane.xlu0 %2730 }
 0xcb3   :  { %v2722_v52 = vmul.f32 0.03125, %v2714_v43  ;;  %v2741_v53 = vmul.f32 0.03125, %v2731_v12 }
 0xcb5   :  { %v2749_v2 = vsub.f32 %v2741_v53, %v2745_v1  ;;  %v2746_v9 = vmul.f32 %v2722_v52, %v2722_v52  ;;  %v2754_v7 = vsub.f32 %v9200_v39, %v2722_v52  ;;  %v2981_v1 = vld [vmem:[#allocation36] sm:$0xff]  ;;  %v2982_v52 = vld [vmem:[#allocation36 + $0x8] sm:$0xff] }
 0xcb6   :  { %v2734_v3 = vpop.xlane.xlu1 %2733  ;;  %v6799_v53 = vpack.c.bf16 %v2982_v52, %v2981_v1  ;;  %v9287_v1 = vld [vmem:[%s9869_s27 + $0x10] sm:$0xff] }
 0xcb7   :  { %v2757_v14 = vadd.f32 1e-05, %v2749_v2  ;;  %v2742_v19 = vmul.f32 0.03125, %v2734_v3  ;;  %v2984_v2 = vld [vmem:[#allocation36 + $0x18] sm:$0xff] }
 0xcb8   :  { %6800 = vmatprep.subr.bf16.mxu1 %v6799_v53 }
 0xcb9   :  { %7289 = vrsqrt.f32 %v2757_v14  ;;  %v2750_v57 = vsub.f32 %v2742_v19, %v2746_v9 }
 0xcbb   :  { %v2758_v42 = vadd.f32 1e-05, %v2750_v57 }
 0xcbd   :  { %7291 = vrsqrt.f32 %v2758_v42 }
 0xcc3   :  { %v7290_v55 = vpop.eup %7289 }
 0xcc4   :  { %v2765_v0 = vmul.f32 %v7290_v55, %v2753_v54 }
 0xcc6   :  { %v2776_v11 = vmul.f32 %v9210_v45, %v2765_v0 }
 0xcc7   :  { %v7292_v17 = vpop.eup %7291 }
 0xcc8   :  { %v2766_v59 = vmul.f32 %v7292_v17, %v2754_v7  ;;  %v9218_v63 = vadd.f32 %v9213_v33, %v2776_v11 }
 0xcca   :  { %v2777_v20 = vmul.f32 %v9210_v45, %v2766_v59  ;;  %6112 = vmatprep.mubr.msk.f32.mxu1 %vm904_vm2, %v9218_v63  ;;  %6126 = vmatprep.mubr.msk.f32.mxu0 %vm904_vm2, %v9218_v63 }
 0xccc   :  { %v9226_v21 = vadd.f32 %v9213_v33, %v2777_v20 }
 0xcce   :  { %6113 = vmatmul.mubr.msk.f32.vlgmr.msra.gmra.mrb[36].mxu1 %vm904_vm2, %v9226_v21  ;;  %6127 = vmatmul.mubr.msk.f32.vlgmr.msra.gmra.mrb[36].mxu0 %vm904_vm2, %v9226_v21 }
 0xccf   :  { %6802 = vmatpush3.bf16.msra.mxu1 %v6799_v53  ;;  %v9291_v53 = vld [vmem:[%s9869_s27 + $0x20] sm:$0xff] }
 0xce8   :  { %v5497_v22 = vpop.f32.mrb[32].mxu1  ;;  %v5541_v50 = vpop.f32.mrb[32].mxu0 }
 0xce9   :  { %v5498_v58 = vpop.f32.mrb[33].mxu1  ;;  %v5542_v61 = vpop.f32.mrb[33].mxu0 }
 0xcea   :  { %v5499_v49 = vadd.f32 %v5498_v58, %v5497_v22  ;;  %v5543_v6 = vadd.f32 %v5542_v61, %v5541_v50 }
 0xcec   :  { %v2612_v23 = vadd.f32 %v5499_v49, %v9188_v34  ;;  %v5500_v24 = vpop.f32.mrb[34].mxu1  ;;  %v5544_v25 = vpop.f32.mrb[34].mxu0 }
 0xced   :  { %v5501_v27 = vpop.f32.mrb[35].mxu1  ;;  %v5545_v29 = vpop.f32.mrb[35].mxu0 }
 0xcee   :  { %v2697_v48 = vadd.f32 %v5543_v6, %v2612_v23  ;;  %v5502_v56 = vadd.f32 %v5501_v27, %v5500_v24  ;;  %v5546_v60 = vadd.f32 %v5545_v29, %v5544_v25 }
 0xcf0   :  { %v9234_v8 = vadd.f32 %v2697_v48, %v9150_v13  ;;  %v2617_v16 = vadd.f32 %v5502_v56, %v9188_v34 }
 0xcf2   :  { %v2702_v51 = vadd.f32 %v5546_v60, %v2617_v16  ;;  %v2715_v44 = vsel %vm904_vm2, %v9234_v8, 0.0  ;;  %v2727_v38 = vmul.f32 %v9234_v8, %v9234_v8 }
 0xcf3   :  { %2716 = vadd.xlane.f32.xlu0 %v2715_v44 }
 0xcf4   :  { %v9242_v37 = vadd.f32 %v2702_v51, %v9147_v10  ;;  %v2735_v43 = vsel %vm904_vm2, %v2727_v38, 0.0  ;;  %v2983_v10 = vld [vmem:[#allocation36 + $0x10] sm:$0xff] }
 0xcf5   :  { %v6803_v3 = vpack.c.bf16 %v2984_v2, %v2983_v10  ;;  %v9266_v51 = vld [vmem:[%s9869_s27 + $0x8] sm:$0xff]  ;;  %v9295_v2 = vld [vmem:[%s9869_s27 + $0x30] sm:$0xff] }
 0xcf6   :  { %v2718_v12 = vsel %vm904_vm2, %v9242_v37, 0.0  ;;  %v2728_v13 = vmul.f32 %v9242_v37, %v9242_v37  ;;  %v9274_v38 = vld [vmem:[%s9869_s27 + $0x28] sm:$0xff] }
 0xcf7   :  { %2736 = vadd.xlane.f32.xlu0 %v2735_v43  ;;  %2719 = vadd.xlane.f32.xlu1 %v2718_v12  ;;  %v9278_v12 = vld [vmem:[%s9869_s27 + $0x38] sm:$0xff] }
 0xcf8   :  { %v2738_v34 = vsel %vm904_vm2, %v2728_v13, 0.0  ;;  %6804 = vmatprep.subr.bf16.mxu1 %v6803_v3  ;;  %v9283_v13 = vld [vmem:[%s9869_s27] sm:$0xff] }
 0xcf9   :  { %6806 = vmatpush3.bf16.msra.mxu1 %v6803_v3 }
 0xcfa   :  { %6856 = vmatprep.subr.bf16.mxu1 %v8758_v15 }
 0xcfb   :  { %2739 = vadd.xlane.f32.xlu1 %v2738_v34 }
 0xd80   :  { %v2717_v9 = vpop.xlane.xlu0 %2716 }
 0xd81   :  { %v2723_v14 = vmul.f32 0.03125, %v2717_v9  ;;  %v9301_v9 = vld [vmem:[%s9869_s27 + $0x40] sm:$0xff] }
 0xd83   :  { %v2747_v42 = vmul.f32 %v2723_v14, %v2723_v14  ;;  %v2755_v50 = vsub.f32 %v9234_v8, %v2723_v14 }
 0xd84   :  { %v2737_v19 = vpop.xlane.xlu0 %2736  ;;  %v2720_v57 = vpop.xlane.xlu1 %2719 }
 0xd85   :  { %v2743_v54 = vmul.f32 0.03125, %v2737_v19  ;;  %v2724_v55 = vmul.f32 0.03125, %v2720_v57  ;;  %v9305_v19 = vld [vmem:[%s9869_s27 + $0x48] sm:$0xff] }
 0xd87   :  { %v2751_v0 = vsub.f32 %v2743_v54, %v2747_v42  ;;  %v2748_v17 = vmul.f32 %v2724_v55, %v2724_v55  ;;  %v2756_v49 = vsub.f32 %v9242_v37, %v2724_v55  ;;  %v9309_v42 = vld [vmem:[%s9869_s27 + $0x50] sm:$0xff]  ;;  %v9313_v55 = vld [vmem:[%s9869_s27 + $0x58] sm:$0xff] }
 0xd88   :  { %v2740_v7 = vpop.xlane.xlu1 %2739 }
 0xd89   :  { %v2759_v11 = vadd.f32 1e-05, %v2751_v0  ;;  %v2744_v59 = vmul.f32 0.03125, %v2740_v7 }
 0xd8b   :  { %7293 = vrsqrt.f32 %v2759_v11  ;;  %v2752_v20 = vsub.f32 %v2744_v59, %v2748_v17 }
 0xd8d   :  { %v2760_v22 = vadd.f32 1e-05, %v2752_v20 }
 0xd8f   :  { %7295 = vrsqrt.f32 %v2760_v22  ;;  %v9318_v22 = vld [vmem:[%s9869_s27 + $0x60] sm:$0xff] }
 0xd95   :  { %v7294_v58 = vpop.eup %7293 }
 0xd96   :  { %v2767_v61 = vmul.f32 %v7294_v58, %v2755_v50  ;;  %v9322_v58 = vld [vmem:[%s9869_s27 + $0x68] sm:$0xff] }
 0xd98   :  { %v2778_v6 = vmul.f32 %v9210_v45, %v2767_v61 }
 0xd99   :  { %v7296_v23 = vpop.eup %7295 }
 0xd9a   :  { %v2789_v24 = vadd.f32 %v9213_v33, %v2778_v6  ;;  %v2768_v25 = vmul.f32 %v7296_v23, %v2756_v49  ;;  %v9329_v49 = vld [vmem:[%s9869_s27 + $0x70] sm:$0xff]  ;;  %v9333_v23 = vld [vmem:[%s9869_s27 + $0x78] sm:$0xff] }
 0xd9c   :  { %6115 = vmatprep.mubr.msk.f32.mxu1 %vm904_vm2, %v2789_v24  ;;  %6129 = vmatprep.mubr.msk.f32.mxu0 %vm904_vm2, %v2789_v24  ;;  %v2779_v27 = vmul.f32 %v9210_v45, %v2768_v25 }
 0xd9e   :  { %v2790_v29 = vadd.f32 %v9213_v33, %v2779_v27  ;;  %v9270_v33 = vld [vmem:[%s9869_s27 + $0x18] sm:$0xff] }
 0xda0   :  { %6116 = vmatmul.mubr.msk.f32.gmra.mrb[38].mxu1 %vm904_vm2, %v2790_v29  ;;  %6130 = vmatmul.mubr.msk.f32.gmra.mrb[38].mxu0 %vm904_vm2, %v2790_v29 }
 0xda1   :  { %v9261_v48 = vpop.f32.mrb[36].mxu1  ;;  %v6128_v56 = vpop.f32.mrb[36].mxu0  ;;  %6140 = vmatprep.mubr.msk.f32.mxu1 %vm904_vm2, %v9218_v63 }
 0xda2   :  { %v2873_v60 = vpop.f32.mrb[37].mxu1  ;;  %v2962_v16 = vpop.f32.mrb[37].mxu0  ;;  %v3071_v45 = vmul.f32 %v9266_v51, %v6128_v56  ;;  %v3073_v44 = vmul.f32 %v9270_v33, %v6128_v56  ;;  %v3075_v43 = vmul.f32 %v9274_v38, %v6128_v56  ;;  %v3077_v63 = vmul.f32 %v9278_v12, %v6128_v56 }
 0xda3   :  { %6178 = vmatprep.mubr.msk.f32.mxu0 %vm904_vm2, %v2873_v60  ;;  %v3070_v34 = vmul.f32 %v9283_v13, %v2962_v16  ;;  %v3072_v52 = vmul.f32 %v9287_v1, %v2962_v16  ;;  %v3074_v10 = vmul.f32 %v9291_v53, %v2962_v16  ;;  %v3076_v3 = vmul.f32 %v9295_v2, %v2962_v16 }
 0xda4   :  { %6141 = vmatmul.mubr.msk.f32.vlgmr.msra.gmra.mrb[40].mxu1 %vm904_vm2, %v9226_v21  ;;  %v3078_v14 = vmul.f32 %v9301_v9, %v2962_v16  ;;  %v3079_v57 = vmul.f32 %v9305_v19, %v6128_v56  ;;  %v3080_v54 = vmul.f32 %v9309_v42, %v2962_v16  ;;  %v3081_v0 = vmul.f32 %v9313_v55, %v6128_v56 }
 0xda5   :  { %6143 = vmatprep.mubr.msk.f32.mxu1 %vm904_vm2, %v2789_v24  ;;  %v6807_v21 = vpack.c.bf16 %v3071_v45, %v3070_v34  ;;  %v6813_v7 = vpack.c.bf16 %v3073_v44, %v3072_v52  ;;  %v6819_v11 = vpack.c.bf16 %v3075_v43, %v3074_v10  ;;  %v6825_v17 = vpack.c.bf16 %v3077_v63, %v3076_v3 }
 0xda6   :  { %v6831_v59 = vpack.c.bf16 %v3079_v57, %v3078_v14  ;;  %v6837_v20 = vpack.c.bf16 %v3081_v0, %v3080_v54  ;;  %v3082_v50 = vmul.f32 %v9318_v22, %v2962_v16  ;;  %v3083_v61 = vmul.f32 %v9322_v58, %v6128_v56  ;;  %6858 = vmatpush3.bf16.msra.mxu1 %v8758_v15 }
 0xda7   :  { %6809 = vmatprep.subr.msk.bf16.mxu0 %vm8853_vm3, %v6807_v21  ;;  %v3084_v6 = vmul.f32 %v9329_v49, %v2962_v16  ;;  %v3085_v24 = vmul.f32 %v9333_v23, %v6128_v56  ;;  %6860 = vmatprep.subr.bf16.mxu1 %v8772_v28 }
 0xda8   :  { %6144 = vmatmul.mubr.msk.f32.gmra.mrb[42].mxu1 %vm904_vm2, %v2790_v29  ;;  %6812 = vmatpush3.bf16.xpose.msk.msra.mxu0 %vm8853_vm3, %v6807_v21  ;;  %v6843_v25 = vpack.c.bf16 %v3083_v61, %v3082_v50 }
 0xda9   :  { %6815 = vmatprep.subr.msk.bf16.mxu0 %vm8853_vm3, %v6813_v7  ;;  %v6849_v27 = vpack.c.bf16 %v3085_v24, %v3084_v6 }
 0xdaa   :  { %6862 = vmatpush3.bf16.msra.mxu1 %v8772_v28 }
 0xdab   :  { %6864 = vmatprep.subr.bf16.mxu1 %v8780_v31 }
 0xdae   :  { %6866 = vmatpush3.bf16.msra.mxu1 %v8780_v31 }
 0xdaf   :  { %6868 = vmatprep.subr.bf16.mxu1 %v8787_v35 }
 0xdb0   :  { %6818 = vmatpush3.bf16.xpose.msk.msra.mxu0 %vm8853_vm3, %v6813_v7 }
 0xdb1   :  { %6821 = vmatprep.subr.msk.bf16.mxu0 %vm8853_vm3, %v6819_v11 }
 0xdb2   :  { %6870 = vmatpush3.bf16.msra.mxu1 %v8787_v35 }
 0xdb3   :  { %6872 = vmatprep.subr.bf16.mxu1 %v8793_v40 }
 0xdb6   :  { %6874 = vmatpush3.bf16.msra.mxu1 %v8793_v40 }
 0xdb7   :  { %6876 = vmatprep.subr.bf16.mxu1 %v8895_v26 }
 0xdb8   :  { %6824 = vmatpush3.bf16.xpose.msk.msra.mxu0 %vm8853_vm3, %v6819_v11 }
 0xdb9   :  { %6827 = vmatprep.subr.msk.bf16.mxu0 %vm8853_vm3, %v6825_v17 }
 0xdba   :  { %6878 = vmatpush3.bf16.msra.mxu1 %v8895_v26 }
 0xdbb   :  { %6880 = vmatprep.subr.bf16.mxu1 %v8901_v30 }
 0xdbe   :  { %6882 = vmatpush3.bf16.msra.mxu1 %v8901_v30 }
 0xdbf   :  { %6884 = vmatprep.subr.bf16.mxu1 %v8911_v36 }
 0xdc0   :  { %6830 = vmatpush3.bf16.xpose.msk.msra.mxu0 %vm8853_vm3, %v6825_v17 }
 0xdc1   :  { %6833 = vmatprep.subr.msk.bf16.mxu0 %vm8853_vm3, %v6831_v59 }
 0xdc2   :  { %6886 = vmatpush3.bf16.msra.mxu1 %v8911_v36 }
 0xdc8   :  { %6836 = vmatpush3.bf16.xpose.msk.msra.mxu0 %vm8853_vm3, %v6831_v59 }
 0xdc9   :  { %6839 = vmatprep.subr.msk.bf16.mxu0 %vm8853_vm3, %v6837_v20 }
 0xdd0   :  { %6842 = vmatpush3.bf16.xpose.msk.msra.mxu0 %vm8853_vm3, %v6837_v20 }
 0xdd1   :  { %6845 = vmatprep.subr.msk.bf16.mxu0 %vm8853_vm3, %v6843_v25 }
 0xdd8   :  { %6848 = vmatpush3.bf16.xpose.msk.msra.mxu0 %vm8853_vm3, %v6843_v25 }
 0xdd9   :  { %6851 = vmatprep.subr.msk.bf16.mxu0 %vm8853_vm3, %v6849_v27 }
 0xde0   :  { %6854 = vmatpush3.bf16.xpose.msk.msra.mxu0 %vm8853_vm3, %v6849_v27 }
 0xde7   :  { %6179 = vmatmul.mubr.msk.f32.vlgmr.msra.gmra.mrb[40].mxu0 %vm904_vm2, %v9261_v48 }
 0xe73   :  { %v9383_v29 = vpop.f32.mrb[38].mxu1  ;;  %v6131_v56 = vpop.f32.mrb[38].mxu0 }
 0xe74   :  { %v2883_v60 = vpop.f32.mrb[39].mxu1  ;;  %v2972_v16 = vpop.f32.mrb[39].mxu0  ;;  %v3398_v45 = vmul.f32 %v9266_v51, %v6131_v56  ;;  %v3400_v44 = vmul.f32 %v9270_v33, %v6131_v56  ;;  %v3402_v43 = vmul.f32 %v9274_v38, %v6131_v56  ;;  %v3404_v63 = vmul.f32 %v9278_v12, %v6131_v56 }
 0xe75   :  { %6283 = vmatprep.mubr.msk.f32.mxu0 %vm904_vm2, %v2883_v60  ;;  %v3397_v34 = vmul.f32 %v9283_v13, %v2972_v16  ;;  %v3399_v52 = vmul.f32 %v9287_v1, %v2972_v16  ;;  %v3401_v48 = vmul.f32 %v9291_v53, %v2972_v16  ;;  %v3403_v10 = vmul.f32 %v9295_v2, %v2972_v16 }
 0xe76   :  { %v3405_v3 = vmul.f32 %v9301_v9, %v2972_v16  ;;  %v3406_v14 = vmul.f32 %v9305_v19, %v6131_v56  ;;  %v3407_v57 = vmul.f32 %v9309_v42, %v2972_v16  ;;  %v3408_v54 = vmul.f32 %v9313_v55, %v6131_v56 }
 0xe77   :  { %v6142_v0 = vpop.f32.mrb[40].mxu1  ;;  %v6919_v21 = vpack.c.bf16 %v3398_v45, %v3397_v34  ;;  %v6925_v7 = vpack.c.bf16 %v3400_v44, %v3399_v52  ;;  %v9398_v11 = vpack.c.bf16 %v3402_v43, %v3401_v48  ;;  %v9400_v17 = vpack.c.bf16 %v3404_v63, %v3403_v10 }
 0xe78   :  { %v3051_v59 = vpop.f32.mrb[41].mxu1  ;;  %v3087_v20 = vmul.f32 %v9266_v51, %v6142_v0  ;;  %v9403_v50 = vpack.c.bf16 %v3406_v14, %v3405_v3  ;;  %v9405_v61 = vpack.c.bf16 %v3408_v54, %v3407_v57  ;;  %v3409_v6 = vmul.f32 %v9318_v22, %v2972_v16 }
 0xe79   :  { %6921 = vmatprep.subr.msk.bf16.mxu0 %vm8853_vm3, %v6919_v21  ;;  %v3086_v24 = vmul.f32 %v9283_v13, %v3051_v59  ;;  %v3410_v25 = vmul.f32 %v9322_v58, %v6131_v56  ;;  %v3411_v27 = vmul.f32 %v9329_v49, %v2972_v16  ;;  %v3412_v60 = vmul.f32 %v9333_v23, %v6131_v56 }
 0xe7a   :  { %6924 = vmatpush3.bf16.xpose.msk.msra.mxu0 %vm8853_vm3, %v6919_v21  ;;  %v3088_v45 = vmul.f32 %v9287_v1, %v3051_v59  ;;  %v3089_v44 = vmul.f32 %v9270_v33, %v6142_v0  ;;  %v3090_v43 = vmul.f32 %v9291_v53, %v3051_v59  ;;  %v3091_v63 = vmul.f32 %v9274_v38, %v6142_v0 }
 0xe7b   :  { %v6145_v34 = vpop.f32.mrb[42].mxu1  ;;  %6927 = vmatprep.subr.msk.bf16.mxu0 %vm8853_vm3, %v6925_v7  ;;  %v9422_v52 = vpack.c.bf16 %v3087_v20, %v3086_v24  ;;  %v6955_v16 = vpack.c.bf16 %v3410_v25, %v3409_v6  ;;  %v6961_v48 = vpack.c.bf16 %v3412_v60, %v3411_v27  ;;  %v3092_v56 = vmul.f32 %v9295_v2, %v3051_v59 }
 0xe7c   :  { %v3061_v10 = vpop.f32.mrb[43].mxu1  ;;  %v9425_v3 = vpack.c.bf16 %v3089_v44, %v3088_v45  ;;  %v9427_v14 = vpack.c.bf16 %v3091_v63, %v3090_v43  ;;  %v3093_v57 = vmul.f32 %v9278_v12, %v6142_v0  ;;  %v3094_v54 = vmul.f32 %v9301_v9, %v3051_v59 }
 0xe7d   :  { %6888 = vmatprep.subr.bf16.mxu1 %v9422_v52  ;;  %v3095_v21 = vmul.f32 %v9305_v19, %v6142_v0  ;;  %v3096_v20 = vmul.f32 %v9309_v42, %v3051_v59  ;;  %v3097_v6 = vmul.f32 %v9313_v55, %v6142_v0  ;;  %v3098_v24 = vmul.f32 %v9318_v22, %v3051_v59 }
 0xe7e   :  { %v9436_v25 = vpack.c.bf16 %v3093_v57, %v3092_v56  ;;  %v3099_v27 = vmul.f32 %v9322_v58, %v6142_v0  ;;  %v3100_v60 = vmul.f32 %v9329_v49, %v3051_v59  ;;  %v3101_v45 = vmul.f32 %v9333_v23, %v6142_v0 }
 0xe7f   :  { %v9441_v44 = vpack.c.bf16 %v3095_v21, %v3094_v54  ;;  %v9443_v43 = vpack.c.bf16 %v3097_v6, %v3096_v20  ;;  %v3413_v63 = vmul.f32 %v9283_v13, %v3061_v10  ;;  %v3414_v47 = vmul.f32 %v9266_v51, %v6145_v34 }
 0xe80   :  { %v9447_v46 = vpack.c.bf16 %v3099_v27, %v3098_v24  ;;  %v9449_v41 = vpack.c.bf16 %v3101_v45, %v3100_v60  ;;  %v3415_v56 = vmul.f32 %v9287_v1, %v3061_v10  ;;  %v3416_v57 = vmul.f32 %v9270_v33, %v6145_v34  ;;  %v3727_v27 = vld [vmem:[#allocation38 + $0x18] sm:$0xff] }
 0xe81   :  { %v9453_v32 = vpack.c.bf16 %v3414_v47, %v3413_v63  ;;  %v3417_v0 = vmul.f32 %v9291_v53, %v3061_v10  ;;  %v3418_v59 = vmul.f32 %v9274_v38, %v6145_v34  ;;  %v3419_v54 = vmul.f32 %v9295_v2, %v3061_v10 }
 0xe82   :  { %6930 = vmatpush3.bf16.xpose.msk.msra.mxu0 %vm8853_vm3, %v6925_v7  ;;  %v9460_v51 = vpack.c.bf16 %v3416_v57, %v3415_v56  ;;  %v3420_v13 = vmul.f32 %v9278_v12, %v6145_v34  ;;  %v3421_v21 = vmul.f32 %v9301_v9, %v3061_v10  ;;  %v3422_v1 = vmul.f32 %v9305_v19, %v6145_v34 }
 0xe83   :  { %6933 = vmatprep.subr.msk.bf16.mxu0 %vm8853_vm3, %v9398_v11  ;;  %v9468_v47 = vpack.c.bf16 %v3418_v59, %v3417_v0  ;;  %v3423_v33 = vmul.f32 %v9309_v42, %v3061_v10  ;;  %v3424_v38 = vmul.f32 %v9313_v55, %v6145_v34  ;;  %v3425_v53 = vmul.f32 %v9318_v22, %v3061_v10 }
 0xe84   :  { %v9473_v2 = vpack.c.bf16 %v3420_v13, %v3419_v54  ;;  %v9475_v7 = vpack.c.bf16 %v3422_v1, %v3421_v21  ;;  %v3426_v12 = vmul.f32 %v9322_v58, %v6145_v34  ;;  %v3427_v9 = vmul.f32 %v9329_v49, %v3061_v10  ;;  %v3724_v10 = vld [vmem:[#allocation38] sm:$0xff] }
 0xe85   :  { %v9479_v19 = vpack.c.bf16 %v3424_v38, %v3423_v33  ;;  %v3428_v20 = vmul.f32 %v9333_v23, %v6145_v34 }
 0xe86   :  { %v9482_v6 = vpack.c.bf16 %v3426_v12, %v3425_v53  ;;  %v3912_v12 = vld [vmem:[#allocation39 + $0x8] sm:$0xff] }
 0xe87   :  { %v9484_v24 = vpack.c.bf16 %v3428_v20, %v3427_v9  ;;  %v3916_v9 = vld [vmem:[#allocation39 + $0x28] sm:$0xff] }
 0xe88   :  { %v7039_v20 = vpack.c.bf16 %v3916_v9, %v3912_v12 }
 0xe8a   :  { %6936 = vmatpush3.bf16.xpose.msk.msra.mxu0 %vm8853_vm3, %v9398_v11 }
 0xe8b   :  { %6939 = vmatprep.subr.msk.bf16.mxu0 %vm8853_vm3, %v9400_v17 }
 0xe92   :  { %6942 = vmatpush3.bf16.xpose.msk.msra.mxu0 %vm8853_vm3, %v9400_v17 }
 0xe93   :  { %6945 = vmatprep.subr.msk.bf16.mxu0 %vm8853_vm3, %v9403_v50 }
 0xe9a   :  { %6948 = vmatpush3.bf16.xpose.msk.msra.mxu0 %vm8853_vm3, %v9403_v50 }
 0xe9b   :  { %6951 = vmatprep.subr.msk.bf16.mxu0 %vm8853_vm3, %v9405_v61 }
 0xea2   :  { %6954 = vmatpush3.bf16.xpose.msk.msra.mxu0 %vm8853_vm3, %v9405_v61 }
 0xea3   :  { %6957 = vmatprep.subr.msk.bf16.mxu0 %vm8853_vm3, %v6955_v16 }
 0xeaa   :  { %6960 = vmatpush3.bf16.xpose.msk.msra.mxu0 %vm8853_vm3, %v6955_v16 }
 0xeab   :  { %6963 = vmatprep.subr.msk.bf16.mxu0 %vm8853_vm3, %v6961_v48 }
 0xeb2   :  { %6966 = vmatpush3.bf16.xpose.msk.msra.mxu0 %vm8853_vm3, %v6961_v48 }
 0xeb9   :  { %6284 = vmatmul.mubr.msk.f32.vlgmr.msra.gmra.mrb[42].mxu0 %vm904_vm2, %v9383_v29 }
 0xeba   :  { %v6180_v42 = vpop.f32.mrb[40].mxu0 }
 0xebb   :  { %v3232_v55 = vmul.f32 0.5, %v6180_v42  ;;  %v3222_v22 = vpop.f32.mrb[41].mxu0  ;;  %v3915_v42 = vld [vmem:[#allocation39 + $0x20] sm:$0xff] }
 0xebc   :  { %v3231_v58 = vmul.f32 0.5, %v3222_v22 }
 0xebd   :  { %3235 = vmax.xlane.f32.xlu1 %v3232_v55 }
 0xebe   :  { %3233 = vmax.xlane.f32.xlu0 %v3231_v58 }
 0xf4a   :  { %v3236_v49 = vpop.xlane.xlu1 %3235 }
 0xf4b   :  { %v3238_v23 = vsub.f32 %v3232_v55, %v3236_v49  ;;  %v3234_v11 = vpop.xlane.xlu0 %3233  ;;  %v3917_v49 = vld [vmem:[#allocation39 + $0x30] sm:$0xff] }
 0xf4c   :  { %v3237_v17 = vsub.f32 %v3231_v58, %v3234_v11  ;;  %v3913_v58 = vld [vmem:[#allocation39 + $0x10] sm:$0xff] }
 0xf4d   :  { %v3241_v50 = vmul.f32 1.442695, %v3238_v23  ;;  %v3920_v23 = vld [vmem:[#allocation39 + $0x48] sm:$0xff]  ;;  %v7049_v11 = vpack.c.bf16 %v3917_v49, %v3913_v58 }
 0xf4e   :  { %v3239_v61 = vmul.f32 1.442695, %v3237_v17  ;;  %v3924_v17 = vld [vmem:[#allocation39 + $0x68] sm:$0xff] }
 0xf4f   :  { %v4155_v58 = vld [vmem:[%s9878_s12] sm:$0xff]  ;;  %v4156_v49 = vld [vmem:[%s9878_s12 + $0x8] sm:$0xff] }
 0xf50   :  { %7297 = vpow2.f32 %v3239_v61  ;;  %v3926_v61 = vld [vmem:[#allocation39 + $0x78] sm:$0xff] }
 0xf51   :  { %7299 = vpow2.f32 %v3241_v50  ;;  %v3922_v50 = vld [vmem:[#allocation39 + $0x58] sm:$0xff] }
 0xf5a   :  { %v7298_v34 = vpop.eup %7297 }
 0xf5b   :  { %v7300_v4 = vpop.eup %7299  ;;  %6213 = vmatprep.mubr.f32.mxu1 %v7298_v34 }
 0xf5c   :  { %6214 = vmatmul.mubr.f32.vlgmr.msra.gmra.mrb[44].mxu1 %v7300_v4 }
 0xf5d   :  { %6890 = vmatpush3.bf16.msra.mxu1 %v9422_v52 }
 0xf5e   :  { %6892 = vmatprep.subr.bf16.mxu1 %v9425_v3 }
 0xf61   :  { %6894 = vmatpush3.bf16.msra.mxu1 %v9425_v3  ;;  %v3725_v3 = vld [vmem:[#allocation38 + $0x8] sm:$0xff] }
 0xf62   :  { %6896 = vmatprep.subr.bf16.mxu1 %v9427_v14 }
 0xf65   :  { %6898 = vmatpush3.bf16.msra.mxu1 %v9427_v14  ;;  %v3726_v14 = vld [vmem:[#allocation38 + $0x10] sm:$0xff] }
 0xf66   :  { %6900 = vmatprep.subr.bf16.mxu1 %v9436_v25  ;;  %v7035_v60 = vpack.c.bf16 %v3727_v27, %v3726_v14 }
 0xf69   :  { %6902 = vmatpush3.bf16.msra.mxu1 %v9436_v25  ;;  %v7031_v25 = vpack.c.bf16 %v3725_v3, %v3724_v10  ;;  %v3925_v10 = vld [vmem:[#allocation39 + $0x70] sm:$0xff] }
 0xf6a   :  { %6904 = vmatprep.subr.bf16.mxu1 %v9441_v44 }
 0xf6b   :  { %7032 = vmatprep.subr.bf16.mxu0 %v7031_v25 }
 0xf6c   :  { %7034 = vmatpush3.bf16.msra.mxu0 %v7031_v25 }
 0xf6d   :  { %6906 = vmatpush3.bf16.msra.mxu1 %v9441_v44  ;;  %7036 = vmatprep.subr.bf16.mxu0 %v7035_v60 }
 0xf6e   :  { %6908 = vmatprep.subr.bf16.mxu1 %v9443_v43 }
 0xf70   :  { %7038 = vmatpush3.bf16.msra.mxu0 %v7035_v60 }
 0xf71   :  { %6910 = vmatpush3.bf16.msra.mxu1 %v9443_v43 }
 0xf72   :  { %6912 = vmatprep.subr.bf16.mxu1 %v9447_v46 }
 0xf75   :  { %6914 = vmatpush3.bf16.msra.mxu1 %v9447_v46 }
 0xf76   :  { %6916 = vmatprep.subr.bf16.mxu1 %v9449_v41 }
 0xf79   :  { %6918 = vmatpush3.bf16.msra.mxu1 %v9449_v41 }
 0xf7a   :  { %6968 = vmatprep.subr.bf16.mxu1 %v8758_v15 }
 0xf8c   :  { %v6285_v29 = vpop.f32.mrb[42].mxu0 }
 0xf8d   :  { %v3559_v52 = vmul.f32 0.5, %v6285_v29  ;;  %v3549_v16 = vpop.f32.mrb[43].mxu0  ;;  %v3919_v29 = vld [vmem:[#allocation39 + $0x40] sm:$0xff] }
 0xf8e   :  { %v3558_v48 = vmul.f32 0.5, %v3549_v16  ;;  %v3921_v16 = vld [vmem:[#allocation39 + $0x50] sm:$0xff] }
 0xf8f   :  { %3562 = vmax.xlane.f32.xlu1 %v3559_v52  ;;  %v7053_v3 = vpack.c.bf16 %v3925_v10, %v3921_v16  ;;  %v4206_v16 = vld [vmem:[%s9878_s12 + $0x198] sm:$0xff] }
 0xf90   :  { %3560 = vmax.xlane.f32.xlu0 %v3558_v48 }
0x101c   :  { %v3563_v54 = vpop.xlane.xlu1 %3562 }
0x101d   :  { %v3561_v46 = vpop.xlane.xlu0 %3560  ;;  %v3565_v13 = vsub.f32 %v3559_v52, %v3563_v54  ;;  %v3923_v52 = vld [vmem:[#allocation39 + $0x60] sm:$0xff] }
0x101e   :  { %v3564_v41 = vsub.f32 %v3558_v48, %v3561_v46  ;;  %v7045_v48 = vpack.c.bf16 %v3923_v52, %v3919_v29  ;;  %v4205_v52 = vld [vmem:[%s9878_s12 + $0x190] sm:$0xff] }
0x101f   :  { %v3568_v21 = vmul.f32 1.442695, %v3565_v13  ;;  %v7091_v10 = vpack.c.bf16 %v4206_v16, %v4205_v52  ;;  %v4198_v52 = vld [vmem:[%s9878_s12 + $0x158] sm:$0xff]  ;;  %v4183_v16 = vld [vmem:[%s9878_s12 + $0xe0] sm:$0xff] }
0x1020   :  { %v3566_v43 = vmul.f32 1.442695, %v3564_v41 }
0x102f   :  { %v6215_v45 = vpop.f32.mrb[44].mxu1 }
0x1030   :  { %7301 = vrcp.f32 %v6215_v45  ;;  %v3309_v44 = vpop.f32.mrb[45].mxu1 }
0x1031   :  { %7303 = vrcp.f32 %v3309_v44 }
0x1032   :  { %7305 = vpow2.f32 %v3566_v43 }
0x1033   :  { %7307 = vpow2.f32 %v3568_v21 }
0x103a   :  { %v7302_v63 = vpop.eup %7301 }
0x103b   :  { %v7304_v56 = vpop.eup %7303  ;;  %v3321_v0 = vmul.f32 %v7302_v63, %v7300_v4  ;;  %v7051_v4 = vpack.c.bf16 %v3926_v61, %v3922_v50  ;;  %v4173_v50 = vld [vmem:[%s9878_s12 + $0x90] sm:$0xff]  ;;  %v4174_v61 = vld [vmem:[%s9878_s12 + $0x98] sm:$0xff] }
0x103c   :  { %v3320_v57 = vmul.f32 %v7304_v56, %v7298_v34  ;;  %v7306_v59 = vpop.eup %7305  ;;  %v7043_v34 = vpack.c.bf16 %v3924_v17, %v3920_v23  ;;  %v4187_v23 = vld [vmem:[%s9878_s12 + $0x100] sm:$0xff]  ;;  %v4188_v17 = vld [vmem:[%s9878_s12 + $0x108] sm:$0xff]  ;;  %v7059_v29 = vpack.c.bf16 %v4174_v61, %v4173_v50  ;;  %v4165_v61 = vld [vmem:[%s9878_s12 + $0x50] sm:$0xff] }
0x103e   :  { %6248 = vmatprep.mubr.f32.mxu1 %v3320_v57 }
0x103f   :  { %6249 = vmatmul.mubr.f32.vlgmr.msra.gmra.mrb[46].mxu1 %v3321_v0 }
0x1040   :  { %6970 = vmatpush3.bf16.msra.mxu1 %v8758_v15  ;;  %6318 = vmatprep.mubr.f32.mxu1 %v7306_v59  ;;  %v7308_v15 = vpop.eup %7307 }
0x1041   :  { %6972 = vmatprep.subr.bf16.mxu1 %v8772_v28 }
0x1044   :  { %6974 = vmatpush3.bf16.msra.mxu1 %v8772_v28 }
0x1045   :  { %6976 = vmatprep.subr.bf16.mxu1 %v8780_v31 }
0x1048   :  { %6978 = vmatpush3.bf16.msra.mxu1 %v8780_v31 }
0x1049   :  { %6980 = vmatprep.subr.bf16.mxu1 %v8787_v35 }
0x104c   :  { %6982 = vmatpush3.bf16.msra.mxu1 %v8787_v35 }
0x104d   :  { %6984 = vmatprep.subr.bf16.mxu1 %v8793_v40 }
0x1050   :  { %6986 = vmatpush3.bf16.msra.mxu1 %v8793_v40 }
0x1051   :  { %6988 = vmatprep.subr.bf16.mxu1 %v8895_v26 }
0x1054   :  { %6990 = vmatpush3.bf16.msra.mxu1 %v8895_v26 }
0x1055   :  { %6992 = vmatprep.subr.bf16.mxu1 %v8901_v30 }
0x1058   :  { %6994 = vmatpush3.bf16.msra.mxu1 %v8901_v30 }
0x1059   :  { %6996 = vmatprep.subr.bf16.mxu1 %v8911_v36 }
0x105c   :  { %6998 = vmatpush3.bf16.msra.mxu1 %v8911_v36 }
0x105d   :  { %7000 = vmatprep.subr.bf16.mxu1 %v9453_v32 }
0x105f   :  { %6319 = vmatmul.mubr.f32.vlgmr.msra.gmra.mrb[48].mxu1 %v7308_v15 }
0x1060   :  { %7002 = vmatpush3.bf16.msra.mxu1 %v9453_v32 }
0x1061   :  { %7004 = vmatprep.subr.bf16.mxu1 %v9460_v51 }
0x1064   :  { %7006 = vmatpush3.bf16.msra.mxu1 %v9460_v51 }
0x1065   :  { %7008 = vmatprep.subr.bf16.mxu1 %v9468_v47 }
0x1068   :  { %7010 = vmatpush3.bf16.msra.mxu1 %v9468_v47 }
0x1069   :  { %7012 = vmatprep.subr.bf16.mxu1 %v9473_v2 }
0x106c   :  { %7014 = vmatpush3.bf16.msra.mxu1 %v9473_v2 }
0x106d   :  { %7016 = vmatprep.subr.bf16.mxu1 %v9475_v7 }
0x1070   :  { %7018 = vmatpush3.bf16.msra.mxu1 %v9475_v7 }
0x1071   :  { %7020 = vmatprep.subr.bf16.mxu1 %v9479_v19 }
0x1074   :  { %7022 = vmatpush3.bf16.msra.mxu1 %v9479_v19  ;;  %v3914_v19 = vld [vmem:[#allocation39 + $0x18] sm:$0xff] }
0x1075   :  { %7024 = vmatprep.subr.bf16.mxu1 %v9482_v6 }
0x1078   :  { %7026 = vmatpush3.bf16.msra.mxu1 %v9482_v6  ;;  %v3918_v6 = vld [vmem:[#allocation39 + $0x38] sm:$0xff] }
0x1079   :  { %7028 = vmatprep.subr.bf16.mxu1 %v9484_v24  ;;  %v7047_v55 = vpack.c.bf16 %v3918_v6, %v3914_v19  ;;  %v4171_v19 = vld [vmem:[%s9878_s12 + $0x80] sm:$0xff] }
0x107a   :  { %v4203_v6 = vld [vmem:[%s9878_s12 + $0x180] sm:$0xff] }
0x107b   :  { %7048 = vmatprep.subr.bf16.mxu0 %v7047_v55 }
0x107c   :  { %7030 = vmatpush3.bf16.msra.mxu1 %v9484_v24  ;;  %v3911_v24 = vld [vmem:[#allocation39] sm:$0xff] }
0x107d   :  { %v7041_v22 = vpack.c.bf16 %v3915_v42, %v3911_v24  ;;  %7040 = vmatprep.subr.bf16.mxu1 %v7039_v20  ;;  %v4172_v20 = vld [vmem:[%s9878_s12 + $0x88] sm:$0xff] }
0x107e   :  { %v7055_v24 = vpack.c.bf16 %v4172_v20, %v4171_v19  ;;  %v4204_v42 = vld [vmem:[%s9878_s12 + $0x188] sm:$0xff]  ;;  %v4163_v20 = vld [vmem:[%s9878_s12 + $0x40] sm:$0xff] }
0x107f   :  { %v7087_v55 = vpack.c.bf16 %v4204_v42, %v4203_v6  ;;  %v4212_v19 = vld [vmem:[%s9878_s12 + $0x1c8] sm:$0xff]  ;;  %v4195_v42 = vld [vmem:[%s9878_s12 + $0x140] sm:$0xff] }
0x1080   :  { %v4164_v6 = vld [vmem:[%s9878_s12 + $0x48] sm:$0xff] }
0x1112   :  { %v6250_v28 = vpop.f32.mrb[46].mxu1 }
0x1113   :  { %v3388_v31 = vpop.f32.mrb[47].mxu1 }
0x1114   :  { %6364 = vmatprep.mubr.msk.f32.mxu0 %vm904_vm2, %v3388_v31 }
0x1115   :  { %6365 = vmatmul.mubr.msk.f32.vlgmr.msra.gmra.mrb[44].mxu0 %vm904_vm2, %v6250_v28  ;;  %v9588_v28 = vld [vmem:[%s9876_s13] ss:$0 sm:$0xff] }
0x1116   :  { %7050 = vmatpush1.bf16.msra.mxu0 %v7049_v11  ;;  %v7057_v11 = vpack.c.bf16 %v4156_v49, %v4155_v58  ;;  %v4182_v58 = vld [vmem:[%s9878_s12 + $0xd8] sm:$0xff]  ;;  %v4213_v49 = vld [vmem:[%s9878_s12 + $0x1d0] sm:$0xff] }
0x1117   :  { %7052 = vmatprep.subr.bf16.mxu0 %v7051_v4  ;;  %v7089_v4 = vpack.c.bf16 %v4188_v17, %v4187_v23  ;;  %v4214_v23 = vld [vmem:[%s9878_s12 + $0x1d8] sm:$0xff] }
0x111a   :  { %7054 = vmatpush1.bf16.msra.mxu0 %v7053_v3  ;;  %v4157_v3 = vld [vmem:[%s9878_s12 + $0x10] sm:$0xff] }
0x111b   :  { %7088 = vmatprep.subr.bf16.mxu0 %v7087_v55  ;;  %v4196_v55 = vld [vmem:[%s9878_s12 + $0x148] sm:$0xff] }
0x111c   :  { %v7105_v17 = vpack.c.bf16 %v4196_v55, %v4195_v42 }
0x1132   :  { %v6320_v35 = vpop.f32.mrb[48].mxu1 }
0x1133   :  { %7309 = vrcp.f32 %v6320_v35  ;;  %v3636_v40 = vpop.f32.mrb[49].mxu1  ;;  %v9591_v35 = vld [vmem:[%s9877_s9] ss:$0 sm:$0xff] }
0x1134   :  { %7311 = vrcp.f32 %v3636_v40 }
0x113d   :  { %v7310_v26 = vpop.eup %7309 }
0x113e   :  { %v7312_v30 = vpop.eup %7311  ;;  %v3648_v32 = vmul.f32 %v7310_v26, %v7308_v15 }
0x113f   :  { %v3647_v36 = vmul.f32 %v7312_v30, %v7306_v59 }
0x1141   :  { %6353 = vmatprep.mubr.f32.mxu1 %v3647_v36 }
0x1142   :  { %6354 = vmatmul.mubr.f32.vlgmr.msra.gmra.mrb[50].mxu1 %v3648_v32 }
0x1143   :  { %4025 = vmatprep.mubr.f32.mxu1 %v8212_v18  ;;  %7042 = vmatpush1.bf16.msra.mxu1 %v7041_v22  ;;  %v4405_v22 = vld [vmem:[%s9879_s28 + $0x8] sm:$0xff] }
0x1144   :  { %7044 = vmatprep.subr.bf16.mxu1 %v7043_v34  ;;  %v4404_v34 = vld [vmem:[%s9879_s28] sm:$0xff] }
0x1147   :  { %7046 = vmatpush1.bf16.msra.mxu1 %v7045_v48  ;;  %v4406_v48 = vld [vmem:[%s9879_s28 + $0x10] sm:$0xff] }
0x1148   :  { %7056 = vmatprep.subr.bf16.mxu1 %v7055_v24 }
0x11e8   :  { %v6366_v51 = vpop.f32.mrb[44].mxu0 }
0x11e9   :  { %v3806_v1 = vpop.f32.mrb[45].mxu0  ;;  %v9568_v47 = vadd.f32 %v6366_v51, %v9200_v39 }
0x11ea   :  { %v9571_v33 = vadd.f32 %v3806_v1, %v9192_v5 }
0x11eb   :  { %v3846_v7 = vmul.f32 %v9568_v47, %v9568_v47  ;;  %v3832_v39 = vsel %vm904_vm2, %v9568_v47, 0.0 }
0x11ec   :  { %v3829_v38 = vsel %vm904_vm2, %v9571_v33, 0.0  ;;  %v3845_v53 = vmul.f32 %v9571_v33, %v9571_v33 }
0x11ed   :  { %3830 = vadd.xlane.f32.xlu0 %v3829_v38  ;;  %v3852_v5 = vsel %vm904_vm2, %v3846_v7, 0.0 }
0x11ee   :  { %v3849_v2 = vsel %vm904_vm2, %v3845_v53, 0.0 }
0x11ef   :  { %3850 = vadd.xlane.f32.xlu1 %v3849_v2 }
0x11f1   :  { %3833 = vadd.xlane.f32.xlu0 %v3832_v39 }
0x11f3   :  { %3853 = vadd.xlane.f32.xlu1 %v3852_v5 }
0x1215   :  { %v6355_v14 = vpop.f32.mrb[50].mxu1 }
0x1216   :  { %v3715_v25 = vpop.f32.mrb[51].mxu1 }
0x1217   :  { %6367 = vmatprep.mubr.msk.f32.mxu0 %vm904_vm2, %v3715_v25  ;;  %v4189_v25 = vld [vmem:[%s9878_s12 + $0x110] sm:$0xff] }
0x1218   :  { %6368 = vmatmul.mubr.msk.f32.gmra.mrb[46].mxu0 %vm904_vm2, %v6355_v14  ;;  %v4158_v14 = vld [vmem:[%s9878_s12 + $0x18] sm:$0xff] }
0x1219   :  { %4114 = vmatprep.mubr.f32.mxu0 %v8212_v18 }
0x127a   :  { %v3831_v27 = vpop.xlane.xlu0 %3830 }
0x127b   :  { %v3841_v60 = vmul.f32 0.03125, %v3831_v27  ;;  %v7061_v27 = vpack.c.bf16 %v4158_v14, %v4157_v3  ;;  %v4216_v14 = vld [vmem:[%s9878_s12 + $0x1e8] sm:$0xff] }
0x127c   :  { %v3851_v46 = vpop.xlane.xlu1 %3850 }
0x127d   :  { %v3865_v41 = vmul.f32 %v3841_v60, %v3841_v60  ;;  %v3861_v45 = vmul.f32 0.03125, %v3851_v46  ;;  %v3873_v21 = vsub.f32 %v9571_v33, %v3841_v60  ;;  %v4190_v60 = vld [vmem:[%s9878_s12 + $0x118] sm:$0xff]  ;;  %v4175_v46 = vld [vmem:[%s9878_s12 + $0xa0] sm:$0xff] }
0x127e   :  { %v3834_v44 = vpop.xlane.xlu0 %3833 }
0x127f   :  { %v3869_v43 = vsub.f32 %v3861_v45, %v3865_v41  ;;  %v3842_v63 = vmul.f32 0.03125, %v3834_v44  ;;  %v4176_v41 = vld [vmem:[%s9878_s12 + $0xa8] sm:$0xff]  ;;  %v4407_v45 = vld [vmem:[%s9879_s28 + $0x18] sm:$0xff]  ;;  %v7093_v44 = vpack.c.bf16 %v4190_v60, %v4189_v25  ;;  %v4167_v60 = vld [vmem:[%s9878_s12 + $0x60] sm:$0xff] }
0x1280   :  { %v3854_v56 = vpop.xlane.xlu1 %3853 }
0x1281   :  { %v3877_v57 = vadd.f32 1e-05, %v3869_v43  ;;  %v3866_v0 = vmul.f32 %v3842_v63, %v3842_v63  ;;  %v3862_v59 = vmul.f32 0.03125, %v3854_v56  ;;  %v3874_v40 = vsub.f32 %v9568_v47, %v3842_v63  ;;  %v4207_v63 = vld [vmem:[%s9878_s12 + $0x1a0] sm:$0xff]  ;;  %v4208_v56 = vld [vmem:[%s9878_s12 + $0x1a8] sm:$0xff] }
0x1282   :  { %v7063_v43 = vpack.c.bf16 %v4176_v41, %v4175_v46  ;;  %v4168_v46 = vld [vmem:[%s9878_s12 + $0x68] sm:$0xff] }
0x1283   :  { %7313 = vrsqrt.f32 %v3877_v57  ;;  %v3870_v54 = vsub.f32 %v3862_v59, %v3866_v0  ;;  %v7095_v57 = vpack.c.bf16 %v4208_v56, %v4207_v63  ;;  %v4159_v0 = vld [vmem:[%s9878_s12 + $0x20] sm:$0xff]  ;;  %v4160_v59 = vld [vmem:[%s9878_s12 + $0x28] sm:$0xff]  ;;  %v4186_v63 = vld [vmem:[%s9878_s12 + $0xf8] sm:$0xff] }
0x1284   :  { %v4217_v56 = vld [vmem:[%s9878_s12 + $0x1f0] sm:$0xff] }
0x1285   :  { %v3878_v13 = vadd.f32 1e-05, %v3870_v54  ;;  %v4191_v54 = vld [vmem:[%s9878_s12 + $0x120] sm:$0xff] }
0x1287   :  { %7315 = vrsqrt.f32 %v3878_v13  ;;  %v7065_v13 = vpack.c.bf16 %v4160_v59, %v4159_v0  ;;  %v4218_v0 = vld [vmem:[%s9878_s12 + $0x1f8] sm:$0xff] }
0x128d   :  { %v7314_v15 = vpop.eup %7313 }
0x128e   :  { %v3885_v31 = vmul.f32 %v7314_v15, %v3873_v21  ;;  %v4192_v21 = vld [vmem:[%s9878_s12 + $0x128] sm:$0xff]  ;;  %v4177_v15 = vld [vmem:[%s9878_s12 + $0xb0] sm:$0xff] }
0x1290   :  { %v3896_v26 = vmul.f32 %v9588_v28, %v3885_v31  ;;  %v4178_v31 = vld [vmem:[%s9878_s12 + $0xb8] sm:$0xff] }
0x1291   :  { %v7316_v30 = vpop.eup %7315 }
0x1292   :  { %v3907_v36 = vadd.f32 %v9591_v35, %v3896_v26  ;;  %v3886_v32 = vmul.f32 %v7316_v30, %v3874_v40  ;;  %v7097_v40 = vpack.c.bf16 %v4192_v21, %v4191_v54  ;;  %v7067_v26 = vpack.c.bf16 %v4178_v31, %v4177_v15  ;;  %v4209_v30 = vld [vmem:[%s9878_s12 + $0x1b0] sm:$0xff]  ;;  %v4170_v21 = vld [vmem:[%s9878_s12 + $0x78] sm:$0xff] }
0x1293   :  { %v7115_v15 = vpack.c.bf16 %v4218_v0, %v4217_v56  ;;  %v4201_v31 = vld [vmem:[%s9878_s12 + $0x170] sm:$0xff] }
0x1294   :  { %5273 = vmatmul.mubr.msk.f32.vlgmr.msra.gmra.mrb[52].mxu1 %vm904_vm2, %v3907_v36  ;;  %5277 = vmatmul.mubr.msk.f32.vlgmr.msra.gmra.mrb[48].mxu0 %vm904_vm2, %v3907_v36  ;;  %v3897_v51 = vmul.f32 %v9588_v28, %v3886_v32  ;;  %v4210_v36 = vld [vmem:[%s9878_s12 + $0x1b8] sm:$0xff]  ;;  %v4161_v32 = vld [vmem:[%s9878_s12 + $0x30] sm:$0xff] }
0x1295   :  { %4031 = vmatprep.mubr.f32.mxu1 %v8212_v18  ;;  %4120 = vmatprep.mubr.f32.mxu0 %v8212_v18 }
0x1296   :  { %v3908_v1 = vadd.f32 %v9591_v35, %v3897_v51  ;;  %7058 = vmatpush3.bf16.msra.mxu1 %v7057_v11  ;;  %7090 = vmatpush3.bf16.msra.mxu0 %v7089_v4  ;;  %v7099_v51 = vpack.c.bf16 %v4210_v36, %v4209_v30  ;;  %v7073_v11 = vpack.c.bf16 %v4164_v6, %v4163_v20 }
0x1297   :  { %7060 = vmatprep.subr.bf16.mxu1 %v7059_v29  ;;  %7092 = vmatprep.subr.bf16.mxu0 %v7091_v10  ;;  %v7107_v4 = vpack.c.bf16 %v4214_v23, %v4213_v49  ;;  %v4197_v29 = vld [vmem:[%s9878_s12 + $0x150] sm:$0xff]  ;;  %v4215_v10 = vld [vmem:[%s9878_s12 + $0x1e0] sm:$0xff] }
0x1298   :  { %5274 = vmatmul.mubr.msk.f32.gmra.mrb[54].mxu1 %vm904_vm2, %v3908_v1  ;;  %5278 = vmatmul.mubr.msk.f32.gmra.mrb[50].mxu0 %vm904_vm2, %v3908_v1  ;;  %v4162_v1 = vld [vmem:[%s9878_s12 + $0x38] sm:$0xff]  ;;  %v7109_v25 = vpack.c.bf16 %v4198_v52, %v4197_v29  ;;  %v7111_v41 = vpack.c.bf16 %v4216_v14, %v4215_v10  ;;  %v9881_v29 = vsub.s32 3, %v9162_v62 }
0x1299   :  { %4037 = vmatprep.mubr.f32.mxu1 %v8212_v18  ;;  %4126 = vmatprep.mubr.f32.mxu0 %v8212_v18 }
0x129a   :  { %7062 = vmatpush3.bf16.msra.mxu1 %v7061_v27  ;;  %7094 = vmatpush3.bf16.msra.mxu0 %v7093_v44  ;;  %v4200_v44 = vld [vmem:[%s9878_s12 + $0x168] sm:$0xff] }
0x129b   :  { %7064 = vmatprep.subr.bf16.mxu1 %v7063_v43  ;;  %7096 = vmatprep.subr.bf16.mxu0 %v7095_v57  ;;  %v4185_v43 = vld [vmem:[%s9878_s12 + $0xf0] sm:$0xff]  ;;  %v7081_v57 = vpack.c.bf16 %v4168_v46, %v4167_v60 }
0x129c   :  { %v7083_v54 = vpack.c.bf16 %v4186_v63, %v4185_v43 }
0x129e   :  { %7066 = vmatpush3.bf16.msra.mxu1 %v7065_v13  ;;  %7098 = vmatpush3.bf16.msra.mxu0 %v7097_v40  ;;  %v4169_v13 = vld [vmem:[%s9878_s12 + $0x70] sm:$0xff]  ;;  %v4202_v40 = vld [vmem:[%s9878_s12 + $0x178] sm:$0xff] }
0x129f   :  { %7068 = vmatprep.subr.bf16.mxu1 %v7067_v26  ;;  %7100 = vmatprep.subr.bf16.mxu0 %v7099_v51  ;;  %v7085_v26 = vpack.c.bf16 %v4170_v21, %v4169_v13  ;;  %v7117_v30 = vpack.c.bf16 %v4202_v40, %v4201_v31 }
0x12eb   :  { %v6369_v38 = vpop.f32.mrb[46].mxu0 }
0x12ec   :  { %v3816_v53 = vpop.f32.mrb[47].mxu0  ;;  %v9607_v2 = vadd.f32 %v6369_v38, %v9242_v37  ;;  %v4193_v38 = vld [vmem:[%s9878_s12 + $0x130] sm:$0xff] }
0x12ed   :  { %v9610_v7 = vadd.f32 %v3816_v53, %v9234_v8  ;;  %v4194_v53 = vld [vmem:[%s9878_s12 + $0x138] sm:$0xff] }
0x12ee   :  { %v3848_v9 = vmul.f32 %v9607_v2, %v9607_v2  ;;  %v3838_v8 = vsel %vm904_vm2, %v9607_v2, 0.0 }
0x12ef   :  { %v3835_v39 = vsel %vm904_vm2, %v9610_v7, 0.0  ;;  %v3847_v5 = vmul.f32 %v9610_v7, %v9610_v7 }
0x12f0   :  { %3836 = vadd.xlane.f32.xlu0 %v3835_v39  ;;  %v3858_v37 = vsel %vm904_vm2, %v3848_v9, 0.0  ;;  %v7069_v39 = vpack.c.bf16 %v4162_v1, %v4161_v32  ;;  %v4211_v9 = vld [vmem:[%s9878_s12 + $0x1c0] sm:$0xff] }
0x12f1   :  { %v3855_v12 = vsel %vm904_vm2, %v3847_v5, 0.0  ;;  %v4179_v5 = vld [vmem:[%s9878_s12 + $0xc0] sm:$0xff]  ;;  %v7103_v24 = vpack.c.bf16 %v4212_v19, %v4211_v9 }
0x12f2   :  { %3856 = vadd.xlane.f32.xlu1 %v3855_v12  ;;  %v4180_v12 = vld [vmem:[%s9878_s12 + $0xc8] sm:$0xff]  ;;  %7070 = vmatpush3.bf16.msra.mxu1 %v7069_v39 }
0x12f4   :  { %3839 = vadd.xlane.f32.xlu0 %v3838_v8  ;;  %v7101_v8 = vpack.c.bf16 %v4194_v53, %v4193_v38 }
0x12f6   :  { %3859 = vadd.xlane.f32.xlu1 %v3858_v37  ;;  %v7071_v37 = vpack.c.bf16 %v4180_v12, %v4179_v5  ;;  %7102 = vmatpush3.bf16.msra.mxu0 %v7101_v8 }
0x12f7   :  { %7104 = vmatprep.subr.bf16.mxu0 %v7103_v24 }
0x12f8   :  { %7072 = vmatprep.subr.bf16.mxu1 %v7071_v37 }
0x12f9   :  { %7074 = vmatpush3.bf16.msra.mxu1 %v7073_v11  ;;  %v3927_v11 = vld [vmem:[#allocation41] sm:$0xf] }
0x12fa   :  { %7106 = vmatpush3.bf16.msra.mxu0 %v7105_v17  ;;  %v9697_v52 = vrot.slane %v3927_v11, %v9881_v29 }
0x12fb   :  { %7108 = vmatprep.subr.bf16.mxu0 %v7107_v4 }
0x12fe   :  { %7110 = vmatpush3.bf16.msra.mxu0 %v7109_v25  ;;  %v9883_v25 = vsub.s32 2, %v9162_v62 }
0x12ff   :  { %7112 = vmatprep.subr.bf16.mxu0 %v7111_v41 }
0x1307   :  { %4416 = vperm.xlu1 %7256, %v4405_v22   ;;  %v4181_v22 = vld [vmem:[%s9878_s12 + $0xd0] sm:$0xff] }
0x1308   :  { %v7075_v50 = vpack.c.bf16 %v4182_v58, %v4181_v22 }
0x130a   :  { %4411 = vperm.xlu0 %7255, %v4404_v34   ;;  %v4166_v34 = vld [vmem:[%s9878_s12 + $0x58] sm:$0xff]  ;;  %7076 = vmatprep.subr.bf16.mxu1 %v7075_v50 }
0x130b   :  { %4421 = vperm.xlu1 %7256, %v4406_v48   ;;  %v4184_v48 = vld [vmem:[%s9878_s12 + $0xe8] sm:$0xff]  ;;  %v7077_v3 = vpack.c.bf16 %v4166_v34, %v4165_v61  ;;  %v9880_v34 = vsub.s32 1, %v9162_v62 }
0x130c   :  { %v7079_v27 = vpack.c.bf16 %v4184_v48, %v4183_v16 }
0x130d   :  { %7078 = vmatpush3.bf16.msra.mxu1 %v7077_v3  ;;  %v9693_v4 = vrot.slane %v3927_v11, %v9880_v34  ;;  %v9882_v3 = vsub.s32 0, %v9162_v62 }
0x130e   :  { %4426 = vperm.xlu0 %7255, %v4407_v45   ;;  %v4199_v45 = vld [vmem:[%s9878_s12 + $0x160] sm:$0xff]  ;;  %7080 = vmatprep.subr.bf16.mxu1 %v7079_v27  ;;  %v3940_v27 = vrot.slane %v3927_v11, %v9883_v25 }
0x130f   :  { %v7113_v59 = vpack.c.bf16 %v4200_v44, %v4199_v45  ;;  %v3932_v14 = vrot.slane %v3927_v11, %v9882_v3 }
0x1311   :  { %7082 = vmatpush3.bf16.msra.mxu1 %v7081_v57  ;;  %7114 = vmatpush3.bf16.msra.mxu0 %v7113_v59 }
0x1312   :  { %7084 = vmatprep.subr.bf16.mxu1 %v7083_v54  ;;  %7116 = vmatprep.subr.bf16.mxu0 %v7115_v15 }
0x1315   :  { %7086 = vmatpush3.bf16.msra.mxu1 %v7085_v26  ;;  %7118 = vmatpush3.bf16.msra.mxu0 %v7117_v30  ;;  %v4400_v26 = vld [vmem:[#allocation44] sm:$0xff]  ;;  %v4401_v30 = vld [vmem:[#allocation44 + $0x8] sm:$0xff] }
0x1367   :  { %v4027_v36 = vpop.f32.mrb[52].mxu1  ;;  %v4116_v32 = vpop.f32.mrb[48].mxu0 }
0x1368   :  { %v4029_v51 = vpop.f32.mrb[53].mxu1  ;;  %v4118_v1 = vpop.f32.mrb[49].mxu0  ;;  %v4028_v43 = vadd.f32 %v4027_v36, %v3932_v14  ;;  %v4117_v62 = vadd.f32 %v4116_v32, %v3940_v27  ;;  %v7119_v36 = vpack.c.bf16 %v4401_v30, %v4400_v26  ;;  %v4402_v32 = vld [vmem:[#allocation44 + $0x10] sm:$0xff] }
0x1369   :  { %v4030_v41 = vadd.f32 %v4029_v51, %v9693_v4  ;;  %v4119_v45 = vadd.f32 %v4118_v1, %v9697_v52  ;;  %v4403_v51 = vld [vmem:[#allocation44 + $0x18] sm:$0xff] }
0x136a   :  { %v4141_v54 = vmax.f32 %v4117_v62, 0.0  ;;  %v7123_v1 = vpack.c.bf16 %v4403_v51, %v4402_v32  ;;  %7120 = vmatprep.subr.bf16.mxu1 %v7119_v36 }
0x136b   :  { %v4033_v38 = vpop.f32.mrb[54].mxu1  ;;  %v4122_v53 = vpop.f32.mrb[50].mxu0  ;;  %v4140_v56 = vmax.f32 %v4030_v41, 0.0  ;;  %v4142_v57 = vmax.f32 %v4119_v45, 0.0 }
0x136c   :  { %v4035_v39 = vpop.f32.mrb[55].mxu1  ;;  %v4124_v5 = vpop.f32.mrb[51].mxu0  ;;  %v4034_v13 = vadd.f32 %v4033_v38, %v3932_v14  ;;  %v4123_v21 = vadd.f32 %v4122_v53, %v3940_v27 }
0x136d   :  { %v4036_v0 = vadd.f32 %v4035_v39, %v9693_v4  ;;  %v4125_v59 = vadd.f32 %v4124_v5, %v9697_v52 }
0x136e   :  { %v4145_v40 = vmax.f32 %v4123_v21, 0.0  ;;  %v4571_v21 = vld [vmem:[#allocation50 + $0x18] sm:$0xff] }
0x136f   :  { %v4144_v15 = vmax.f32 %v4036_v0, 0.0  ;;  %v4146_v31 = vmax.f32 %v4125_v59, 0.0  ;;  %v8213_v0 = vmov 0.0|0.0   ;;  %v4568_v59 = vld [vmem:[#allocation50] sm:$0xff] }
0x1370   :  { %7127 = vmatprep.subr.bf16.mxu0 %v8213_v0 }
0x137d   :  { %v3837_v12 = vpop.xlane.xlu0 %3836 }
0x137e   :  { %v3843_v9 = vmul.f32 0.03125, %v3837_v12 }
0x137f   :  { %v3857_v8 = vpop.xlane.xlu1 %3856 }
0x1380   :  { %v3867_v37 = vmul.f32 %v3843_v9, %v3843_v9  ;;  %v3863_v19 = vmul.f32 0.03125, %v3857_v8  ;;  %v3875_v17 = vsub.f32 %v9610_v7, %v3843_v9 }
0x1381   :  { %v3840_v20 = vpop.xlane.xlu0 %3839 }
0x1382   :  { %v3871_v6 = vsub.f32 %v3863_v19, %v3867_v37  ;;  %v3844_v24 = vmul.f32 0.03125, %v3840_v20 }
0x1383   :  { %v3860_v42 = vpop.xlane.xlu1 %3859 }
0x1384   :  { %v3879_v55 = vadd.f32 1e-05, %v3871_v6  ;;  %v3868_v22 = vmul.f32 %v3844_v24, %v3844_v24  ;;  %v3864_v58 = vmul.f32 0.03125, %v3860_v42  ;;  %v3876_v16 = vsub.f32 %v9607_v2, %v3844_v24 }
0x1386   :  { %7317 = vrsqrt.f32 %v3879_v55  ;;  %v3872_v49 = vsub.f32 %v3864_v58, %v3868_v22 }
0x1388   :  { %v3880_v23 = vadd.f32 1e-05, %v3872_v49 }
0x138a   :  { %7319 = vrsqrt.f32 %v3880_v23 }
0x1390   :  { %v7318_v50 = vpop.eup %7317 }
0x1391   :  { %v3887_v61 = vmul.f32 %v7318_v50, %v3875_v17 }
0x1393   :  { %v3898_v48 = vmul.f32 %v9588_v28, %v3887_v61 }
0x1394   :  { %v7320_v10 = vpop.eup %7319 }
0x1395   :  { %v3909_v60 = vadd.f32 %v9591_v35, %v3898_v48  ;;  %v3888_v46 = vmul.f32 %v7320_v10, %v3876_v16  ;;  %v5281_v10 = vld [vmem:[#allocation42] ss:$0 sm:$0xff] }
0x1397   :  { %5275 = vmatmul.mubr.msk.f32.gmra.mrb[56].mxu1 %vm904_vm2, %v3909_v60  ;;  %5279 = vmatmul.mubr.msk.f32.gmra.mrb[52].mxu0 %vm904_vm2, %v3909_v60  ;;  %v3899_v44 = vmul.f32 %v9588_v28, %v3888_v46  ;;  %v4139_v28 = vmax.f32 %v4028_v43, 0.0 }
0x1398   :  { %4043 = vmatprep.mubr.f32.mxu1 %v8212_v18  ;;  %4132 = vmatprep.mubr.f32.mxu0 %v8212_v18 }
0x1399   :  { %v3910_v63 = vadd.f32 %v9591_v35, %v3899_v44  ;;  %v4143_v35 = vmax.f32 %v4034_v13, 0.0  ;;  %v4570_v13 = vld [vmem:[#allocation50 + $0x10] sm:$0xff] }
0x139b   :  { %5276 = vmatmul.mubr.msk.f32.gmra.mrb[58].mxu1 %vm904_vm2, %v3910_v63  ;;  %5280 = vmatmul.mubr.msk.f32.gmra.mrb[54].mxu0 %vm904_vm2, %v3910_v63 }
0x139c   :  { %4290 = vmatprep.mubr.f32.mxu1 %v4140_v56  ;;  %4375 = vmatprep.mubr.f32.mxu0 %v4142_v57 }
0x139f   :  { %4291 = vmatmul.mubr.f32.vlgmr.msra.gmra.mrb[60].mxu1 %v4139_v28  ;;  %4376 = vmatmul.mubr.f32.vlgmr.msra.gmra.mrb[56].mxu0 %v4141_v54  ;;  %v4569_v28 = vld [vmem:[#allocation50 + $0x8] sm:$0xff] }
0x13a0   :  { %4295 = vmatprep.mubr.f32.mxu1 %v4144_v15  ;;  %4380 = vmatprep.mubr.f32.mxu0 %v4146_v31  ;;  %v7128_v54 = vpack.c.bf16 %v4569_v28, %v4568_v59 }
0x13a1   :  { %7122 = vmatpush3.bf16.msra.mxu1 %v7119_v36 }
0x13a2   :  { %7124 = vmatprep.subr.bf16.mxu1 %v7123_v1  ;;  %7129 = vmatpush3.bf16.msra.mxu0 %v7128_v54 }
0x13a3   :  { %4296 = vmatmul.mubr.f32.gmra.mrb[62].mxu1 %v4143_v35  ;;  %4381 = vmatmul.mubr.f32.gmra.mrb[58].mxu0 %v4145_v40 }
0x13a4   :  { %7130 = vmatprep.subr.bf16.mxu0 %v8213_v0 }
0x13a5   :  { %7126 = vmatpush3.bf16.msra.mxu1 %v7123_v1 }
0x13a6   :  { %7133 = vmatprep.subr.bf16.mxu1 %v8213_v0 }
0x146a   :  { %v4039_v38 = vpop.f32.mrb[56].mxu1  ;;  %v4128_v53 = vpop.f32.mrb[52].mxu0 }
0x146b   :  { %v4040_v39 = vadd.f32 %v4039_v38, %v3932_v14  ;;  %v4129_v5 = vadd.f32 %v4128_v53, %v3940_v27  ;;  %v4041_v12 = vpop.f32.mrb[57].mxu1  ;;  %v4130_v9 = vpop.f32.mrb[53].mxu0 }
0x146c   :  { %v4042_v8 = vadd.f32 %v4041_v12, %v9693_v4  ;;  %v4131_v37 = vadd.f32 %v4130_v9, %v9697_v52 }
0x146d   :  { %v4147_v42 = vmax.f32 %v4040_v39, 0.0  ;;  %v4149_v55 = vmax.f32 %v4129_v5, 0.0 }
0x146e   :  { %v4148_v19 = vmax.f32 %v4042_v8, 0.0  ;;  %v4150_v20 = vmax.f32 %v4131_v37, 0.0  ;;  %v4045_v6 = vpop.f32.mrb[58].mxu1  ;;  %v4134_v24 = vpop.f32.mrb[54].mxu0  ;;  %v5282_v37 = vld [vmem:[#allocation45] ss:$0 sm:$0xff] }
0x146f   :  { %v4046_v22 = vadd.f32 %v4045_v6, %v3932_v14  ;;  %v4135_v58 = vadd.f32 %v4134_v24, %v3940_v27  ;;  %v4047_v49 = vpop.f32.mrb[59].mxu1  ;;  %v4136_v23 = vpop.f32.mrb[55].mxu0 }
0x1470   :  { %v4048_v11 = vadd.f32 %v4047_v49, %v9693_v4  ;;  %v4137_v17 = vadd.f32 %v4136_v23, %v9697_v52  ;;  %4300 = vmatprep.mubr.f32.mxu1 %v4148_v19  ;;  %4385 = vmatprep.mubr.f32.mxu0 %v4150_v20  ;;  %v4417_v19 = vpop.permute.xlu1 %4416  ;;  %v4412_v20 = vpop.permute.xlu0 %4411 }
0x1471   :  { %4301 = vmatmul.mubr.f32.gmra.mrb[64].mxu1 %v4147_v42  ;;  %4386 = vmatmul.mubr.f32.gmra.mrb[60].mxu0 %v4149_v55  ;;  %v4151_v16 = vmax.f32 %v4046_v22, 0.0  ;;  %v4153_v48 = vmax.f32 %v4135_v58, 0.0  ;;  %v4436_v24 = vmul.f32 %v5282_v37, %v4417_v19  ;;  %v4435_v42 = vmul.f32 %v5282_v37, %v4412_v20  ;;  %v5287_v22 = vld [vmem:[#allocation47] ss:$0 sm:$0xff]  ;;  %v5295_v20 = vld [vmem:[%s9887_s21] ss:$0 sm:$0xff] }
0x1472   :  { %v4152_v50 = vmax.f32 %v4048_v11, 0.0  ;;  %v4154_v61 = vmax.f32 %v4137_v17, 0.0  ;;  %v5719_v34 = vpop.f32.mrb[60].mxu1  ;;  %v5763_v29 = vpop.f32.mrb[56].mxu0 }
0x1473   :  { %v5720_v3 = vpop.f32.mrb[61].mxu1  ;;  %v5764_v14 = vpop.f32.mrb[57].mxu0 }
0x1474   :  { %v5721_v25 = vadd.f32 %v5720_v3, %v5719_v34  ;;  %v5765_v27 = vadd.f32 %v5764_v14, %v5763_v29  ;;  %4305 = vmatprep.mubr.f32.mxu1 %v4152_v50  ;;  %4390 = vmatprep.mubr.f32.mxu0 %v4154_v61  ;;  %v4564_v50 = vld [vmem:[#allocation48 + $0x8] sm:$0xff]  ;;  %v4565_v34 = vld [vmem:[#allocation48 + $0x10] sm:$0xff]  ;;  %v4566_v29 = vld [vmem:[#allocation48 + $0x18] sm:$0xff]  ;;  %v4427_v14 = vpop.permute.xlu0 %4426 }
0x1475   :  { %4306 = vmatmul.mubr.f32.gmra.mrb[66].mxu1 %v4151_v16  ;;  %4391 = vmatmul.mubr.f32.gmra.mrb[62].mxu0 %v4153_v48  ;;  %v7137_v16 = vpack.c.bf16 %v4566_v29, %v4565_v34  ;;  %v4733_v48 = vld [vmem:[#allocation11] sm:$0x3] }
0x1476   :  { %v4293_v4 = vadd.f32 %v5721_v25, %v5281_v10  ;;  %v5722_v52 = vpop.f32.mrb[62].mxu1  ;;  %v5766_v60 = vpop.f32.mrb[58].mxu0  ;;  %6392 = vmatprep.mubr.msk.f32.mxu0 %vm8214_vm4, %v8212_v18  ;;  %4735 = vrot.lane.b32.xlu0 %v4733_v48, %s8186_s19 }
0x1477   :  { %v5723_v46 = vpop.f32.mrb[63].mxu1  ;;  %v5767_v41 = vpop.f32.mrb[59].mxu0 }
0x1478   :  { %v4378_v45 = vadd.f32 %v5765_v27, %v4293_v4  ;;  %v5724_v44 = vadd.f32 %v5723_v46, %v5722_v52  ;;  %v5768_v43 = vadd.f32 %v5767_v41, %v5766_v60  ;;  %v4422_v25 = vpop.permute.xlu1 %4421  ;;  %v4438_v27 = vmul.f32 %v5282_v37, %v4427_v14 }
0x1479   :  { %v4437_v4 = vmul.f32 %v5282_v37, %v4422_v25 }
0x147a   :  { %v4396_v62 = vadd.f32 %v4378_v45, %v9571_v33  ;;  %v4298_v63 = vadd.f32 %v5724_v44, %v5281_v10  ;;  %v7131_v33 = vpack.c.bf16 %v4571_v21, %v4570_v13  ;;  %v4842_v13 = vld [vmem:[#allocation51 + $0x10] sm:$0xff]  ;;  %v4843_v21 = vld [vmem:[#allocation51 + $0x18] sm:$0xff] }
0x147c   :  { %v4383_v56 = vadd.f32 %v5768_v43, %v4298_v63  ;;  %6378 = vmatprep.mubr.msk.f32.mxu1 %vm904_vm2, %v4396_v62  ;;  %7132 = vmatpush3.bf16.msra.mxu0 %v7131_v33  ;;  %v4766_v62 = vld [vmem:[%s9884_s2] sm:$0x3]  ;;  %v4840_v63 = vld [vmem:[#allocation51] sm:$0xff] }
0x147d   :  { %7139 = vmatprep.subr.bf16.mxu0 %v8213_v0 }
0x147e   :  { %v4397_v57 = vadd.f32 %v4383_v56, %v9568_v47  ;;  %v4567_v47 = vld [vmem:[#allocation9] sm:$0x3]  ;;  %v4841_v56 = vld [vmem:[#allocation51 + $0x8] sm:$0xff] }
0x147f   :  { %6393 = vmatmul.mubr.msk.f32.vlgmr.msra.gmra.mrb[64].mxu0 %vm904_vm2, %v4567_v47  ;;  %v7146_v28 = vpack.c.bf16 %v4841_v56, %v4840_v63  ;;  %v7149_v47 = vpack.c.bf16 %v4843_v21, %v4842_v13 }
0x1480   :  { %6379 = vmatmul.mubr.msk.f32.vlgmr.msra.gmra.mrb[68].mxu1 %vm904_vm2, %v4397_v57  ;;  %6414 = vmatprep.mubr.msk.f32.mxu0 %vm8214_vm4, %v8212_v18 }
0x1544   :  { %v5725_v15 = vpop.f32.mrb[64].mxu1  ;;  %v5769_v31 = vpop.f32.mrb[60].mxu0 }
0x1545   :  { %v5726_v35 = vpop.f32.mrb[65].mxu1  ;;  %v5770_v40 = vpop.f32.mrb[61].mxu0 }
0x1546   :  { %v5727_v26 = vadd.f32 %v5726_v35, %v5725_v15  ;;  %v5771_v30 = vadd.f32 %v5770_v40, %v5769_v31  ;;  %v5292_v40 = vld [vmem:[%s9885_s8] ss:$0 sm:$0xff] }
0x1548   :  { %v4303_v36 = vadd.f32 %v5727_v26, %v5281_v10  ;;  %v5728_v32 = vpop.f32.mrb[66].mxu1  ;;  %v5772_v51 = vpop.f32.mrb[62].mxu0 }
0x1549   :  { %v5729_v1 = vpop.f32.mrb[67].mxu1  ;;  %v5773_v38 = vpop.f32.mrb[63].mxu0 }
0x154a   :  { %v4388_v53 = vadd.f32 %v5771_v30, %v4303_v36  ;;  %v5730_v39 = vadd.f32 %v5729_v1, %v5728_v32  ;;  %v5774_v5 = vadd.f32 %v5773_v38, %v5772_v51  ;;  %v4925_v32 = vld [vmem:[%s9886_s14] sm:$0xff]  ;;  %v4926_v51 = vld [vmem:[%s9886_s14 + $0x8] sm:$0xff]  ;;  %v4927_v38 = vld [vmem:[%s9886_s14 + $0x10] sm:$0xff] }
0x154b   :  { %v7152_v1 = vpack.c.bf16 %v4926_v51, %v4925_v32 }
0x154c   :  { %v4398_v12 = vadd.f32 %v4388_v53, %v9610_v7  ;;  %v4308_v9 = vadd.f32 %v5730_v39, %v5281_v10  ;;  %v4928_v53 = vld [vmem:[%s9886_s14 + $0x18] sm:$0xff] }
0x154d   :  { %v7155_v39 = vpack.c.bf16 %v4928_v53, %v4927_v38 }
0x154e   :  { %v4393_v8 = vadd.f32 %v5774_v5, %v4308_v9  ;;  %6381 = vmatprep.mubr.msk.f32.mxu1 %vm904_vm2, %v4398_v12 }
0x1550   :  { %v4399_v6 = vadd.f32 %v4393_v8, %v9607_v2  ;;  %v4563_v2 = vld [vmem:[#allocation48] sm:$0xff] }
0x1551   :  { %v7134_v61 = vpack.c.bf16 %v4564_v50, %v4563_v2  ;;  %v5299_v50 = vld [vmem:[#allocation53] ss:$0 sm:$0xff] }
0x1552   :  { %6382 = vmatmul.mubr.msk.f32.gmra.mrb[70].mxu1 %vm904_vm2, %v4399_v6  ;;  %v4641_v10 = vpop.f32.mrb[64].mxu0 }
0x1553   :  { %v6380_v55 = vpop.f32.mrb[68].mxu1  ;;  %6403 = vmatprep.mubr.msk.f32.mxu1 %vm8214_vm4, %v8212_v18  ;;  %7135 = vmatpush3.bf16.msra.mxu1 %v7134_v61  ;;  %v6394_v3 = vpop.f32.mrb[65].mxu0 }
0x1554   :  { %v4523_v58 = vadd.f32 %v6380_v55, %v4436_v24  ;;  %v4517_v7 = vpop.f32.mrb[69].mxu1  ;;  %7136 = vmatprep.subr.bf16.mxu1 %v8213_v0  ;;  %v4736_v55 = vpop.permute.xlu0 %4735 }
0x1555   :  { %v4518_v49 = vadd.f32 %v4517_v7, %v4435_v42 }
0x1556   :  { %v4544_v23 = vadd.f32 %v5287_v22, %v4523_v58 }
0x1557   :  { %v4543_v11 = vadd.f32 %v5287_v22, %v4518_v49  ;;  %7138 = vmatpush3.bf16.msra.mxu1 %v7137_v16 }
0x1558   :  { %4548 = vst.msk [vmem:[#allocation2 + $0x8] sm:$0xff] %vm904_vm2, %v4544_v23  ;;  %7145 = vmatprep.subr.bf16.mxu1 %v8213_v0 }
0x1559   :  { %4547 = vst.msk [vmem:[#allocation2] sm:$0xff] %vm904_vm2, %v4543_v11  ;;  %v7140_v17 = vpack.c.bf16 %v4544_v23, %v4543_v11 }
0x155b   :  { %7141 = vmatpush3.bf16.msra.mxu0 %v7140_v17  ;;  %v5297_v17 = vld [vmem:[%s9888_s15] ss:$0 sm:$0xff] }
0x155c   :  { %7142 = vmatprep.subr.bf16.mxu0 %v8213_v0 }
0x1625   :  { %v6383_v52 = vpop.f32.mrb[70].mxu1 }
0x1626   :  { %v4533_v60 = vadd.f32 %v6383_v52, %v4438_v27  ;;  %v4527_v46 = vpop.f32.mrb[71].mxu1 }
0x1627   :  { %v4528_v41 = vadd.f32 %v4527_v46, %v4437_v4 }
0x1628   :  { %v4546_v45 = vadd.f32 %v5287_v22, %v4533_v60 }
0x1629   :  { %v4545_v44 = vadd.f32 %v5287_v22, %v4528_v41 }
0x162a   :  { %4550 = vst.msk [vmem:[#allocation2 + $0x18] sm:$0xff] %vm904_vm2, %v4546_v45 }
0x162b   :  { %4549 = vst.msk [vmem:[#allocation2 + $0x10] sm:$0xff] %vm904_vm2, %v4545_v44  ;;  %v7143_v43 = vpack.c.bf16 %v4546_v45, %v4545_v44 }
0x162d   :  { %7144 = vmatpush3.bf16.msra.mxu0 %v7143_v43 }
0x162e   :  { %7151 = vmatprep.subr.bf16.mxu0 %v8213_v0 }
0x1630   :  { %6415 = vmatmul.mubr.msk.f32.vlgmr.msra.gmra.mrb[66].mxu0 %vm904_vm2, %v4766_v62 }
0x1631   :  { %6436 = vmatprep.mubr.msk.f32.mxu0 %vm8214_vm4, %v8212_v18  ;;  %7153 = vmatpush3.bf16.msra.mxu0 %v7152_v1 }
0x1632   :  { %v5289_v57 = vld [vmem:[%s5079_s7 + $0x10] sm:$0x1]  ;;  %v4553_v54 = vld [vmem:[%s4552_s11] sm:$0x1]  ;;  %7154 = vmatprep.subr.bf16.mxu0 %v8213_v0 }
0x1633   :  { %v4559_v59 = vrot.slane %v5289_v57, 7 }
0x1635   :  { %v4562_v33 = vsel %vm4561_vm5, %v4553_v54, %v4559_v59  ;;  %7156 = vmatpush3.bf16.msra.mxu0 %v7155_v39 }
0x1636   :  { %6404 = vmatmul.mubr.msk.f32.vlgmr.msra.gmra.mrb[72].mxu1 %vm904_vm2, %v4562_v33 }
0x1637   :  { %7147 = vmatpush3.bf16.msra.mxu1 %v7146_v28  ;;  %6425 = vmatprep.mubr.msk.f32.mxu1 %vm8214_vm4, %v8212_v18 }
0x1638   :  { %7148 = vmatprep.subr.bf16.mxu1 %v8213_v0 }
0x163b   :  { %7150 = vmatpush3.bf16.msra.mxu1 %v7149_v47 }
0x1703   :  { %v4836_v15 = vpop.f32.mrb[66].mxu0 }
0x1704   :  { %v6416_v31 = vpop.f32.mrb[67].mxu0  ;;  %6426 = vmatmul.mubr.msk.f32.vlgmr.msra.gmra.mrb[74].mxu1 %vm904_vm2, %v4836_v15 }
0x1709   :  { %v4714_v35 = vpop.f32.mrb[72].mxu1 }
0x170a   :  { %v4715_v26 = vadd.f32 %v4714_v35, %v4641_v10  ;;  %v6405_v30 = vpop.f32.mrb[73].mxu1 }
0x170c   :  { %v4725_v36 = vadd.f32 %v5292_v40, %v4715_v26 }
0x170e   :  { %7321 = vtanh.f32 %v4725_v36  ;;  %v5293_v5 = vmul.f32 -1.442695, %v4725_v36 }
0x1710   :  { %7323 = vpow2.f32 %v5293_v5 }
0x1718   :  { %v7322_v18 = vpop.eup %7321 }
0x1719   :  { %4740 = vrot.lane.b32.xlu1 %v7322_v18, %s8215_s3 }
0x171a   :  { %v7324_v12 = vpop.eup %7323 }
0x171b   :  { %v4729_v9 = vadd.f32 1.0, %v7324_v12 }
0x171d   :  { %7325 = vrcp.f32 %v4729_v9 }
0x1727   :  { %v7326_v8 = vpop.eup %7325 }
0x1728   :  { %v4738_v22 = vmul.f32 %v7326_v8, %v4736_v55 }
0x178b   :  { %v4741_v37 = vpop.permute.xlu1 %4740 }
0x178c   :  { %v4743_v19 = vmul.f32 %v7326_v8, %v4741_v37 }
0x178e   :  { %4745 = vrot.lane.b32.xlu1 %v4743_v19, %s8186_s19 }
0x17d7   :  { %v4920_v0 = vpop.f32.mrb[74].mxu1 }
0x17d8   :  { %v4921_v6 = vadd.f32 %v5295_v20, %v4920_v0  ;;  %v6427_v24 = vpop.f32.mrb[75].mxu1 }
0x17da   :  { %v4924_v42 = vmax.f32 %v4921_v6, 0.0 }
0x17dc   :  { %6437 = vmatmul.mubr.msk.f32.vlgmr.msra.gmra.mrb[68].mxu0 %vm904_vm2, %v4924_v42 }
0x1800   :  { %v4746_v58 = vpop.permute.xlu1 %4745 }
0x1801   :  { %v4748_v7 = vadd.f32 %v4746_v58, %v4738_v22 }
0x1803   :  { %7327 = vtanh.f32 %v4748_v7 }
0x180d   :  { %v7328_v49 = vpop.eup %7327 }
0x180e   :  { %4751 = vrot.lane.b32.xlu0 %v7328_v49, %s8215_s3 }
0x1880   :  { %v4752_v23 = vpop.permute.xlu0 %4751 }
0x1881   :  { %v4754_v11 = vmul.f32 %v7326_v8, %v4752_v23 }
0x1883   :  { %4756 = vrot.lane.b32.xlu0 %v4754_v11, %s8186_s19  ;;  %s8039_s19 = scalar_lea.vmem %s5039_s20, 32 }
0x1884   :  { %p8040_p1 = scmp.ne.s32.totalorder %s5039_s20, %s8039_s19  ;;  %p8045_p3 = scmp.lt.s32.totalorder %s8039_s19, %s8039_s19 }
0x1886   :  { %p8046_p4 = por %p8045_p3, %p8044_p2 }
0x1887   :  { %4762 = vrot.lane.b32.xlu0 %v4748_v7, %s8216_s18 }
0x1888   :  { %p8047_p5 = pnand %p8046_p4, %p8040_p1 }
0x18af   :  { %v5005_v2 = vpop.f32.mrb[68].mxu0 }
0x18b0   :  { %v5006_v61 = vadd.f32 %v5297_v17, %v5005_v2  ;;  %v6438_v34 = vpop.f32.mrb[69].mxu0 }
0x18b2   :  { %v5016_v29 = vmul.f32 %v5299_v50, %v5006_v61 }
0x18b4   :  { %v5017_v16 = vsel %vm4759_vm6, %v5016_v29, 0.0 }
0x18b5   :  { %5018 = vadd.xlane.f32.xlu1 %v5017_v16 }
0x18f5   :  { %v4757_v48 = vpop.permute.xlu0 %4756 }
0x18f6   :  { %4760 = vst.msk [vmem:[#allocation54] sm:$0x3] %vm4759_vm6, %v4757_v48 }
0x18f7   :  { %8050 = shalt.err (!%p8047_p5)
}
0x18f8   :  { %s8051_s30 = scalar_lea.hbm %s8487_s1, 32 }
0x18f9   :  { %p8052_p6 = scmp.ne.s32.totalorder %s8487_s1, %s8051_s30  ;;  %p8055_p7 = scmp.lt.u32.totalorder %s8051_s30, %s8487_s1 }
0x18fb   :  { %p8057_p8 = pnand %p8055_p7, %p8052_p6 }
0x18fd   :  { %8060 = shalt.err (!%p8057_p8)
}
0x18fe   :  { %5041 = dma.vmem_to_hbm [thread:$0]  %s5039_s20, 32, %s8487_s1, [#allocation8]   ;;  %v4763_v10 = vpop.permute.xlu0 %4762 }
0x18ff   :  { %4765 = vst.msk [vmem:[#allocation55] sm:$0x3] %vm4759_vm6, %v4763_v10  ;;  %s8061_s24 = scalar_lea.vmem %s5049_s22, 32  ;;  %p8066_p10 = scmp.lt.s32.totalorder %s5049_s22, %s5049_s22 }
0x1900   :  { %p8062_p9 = scmp.ne.s32.totalorder %s5049_s22, %s8061_s24  ;;  %p8067_p11 = scmp.lt.s32.totalorder %s8061_s24, %s8061_s24 }
0x1902   :  { %p8068_p12 = por %p8067_p11, %p8066_p10 }
0x1904   :  { %p8069_p13 = pnand %p8068_p12, %p8062_p9 }
0x1906   :  { %8072 = shalt.err (!%p8069_p13)
}
0x1907   :  { %s8073_s0 = scalar_lea.hbm %s8492_s10, 32 }
0x1908   :  { %p8074_p0 = scmp.ne.s32.totalorder %s8492_s10, %s8073_s0  ;;  %p8077_p1 = scmp.lt.u32.totalorder %s8073_s0, %s8492_s10 }
0x190a   :  { %p8079_p2 = pnand %p8077_p1, %p8074_p0 }
0x190c   :  { %8082 = shalt.err (!%p8079_p2)
}
0x190d   :  { %5051 = dma.vmem_to_hbm [thread:$0]  %s5049_s22, 32, %s8492_s10, [#allocation56]   ;;  %v5300_v3 = vld [vmem:[#allocation5] ss:$0 sm:$0xff]  ;;  %vm5028_vm7 = vcmask 1024  }
0x1942   :  { %v5019_v14 = vpop.xlane.xlu1 %5018 }
0x1943   :  { %v5027_v25 = vadd.f32 %v5300_v3, %v5019_v14 }
0x1945   :  { %5029 = vst.msk [vmem:[%s8482_s23] sm:$0x3] %vm5028_vm7, %v5027_v25 }
0x1946   :  { %8117 = dma.done.wait [#allocation8], 32  }
0x1947   :  { %8118 = vsyncadd [#allocation8], 4294967264 }
0x1948   :  { %8119 = dma.done.wait [#allocation56], 32  }
0x1949   :  { %8120 = vsyncadd [#allocation56], 4294967264 }
0x194a   :  { %5060 = vsyncpa [#allocation7], 1 }
0x194b   :  { %5061 = vsyncpa [#allocation10], 1 }
0x194c   :  { %5062 = vsyncpa [#allocation13], 1 }
0x194d   :  { %5063 = vsyncpa [#allocation16], 1 }
0x194e   :  { %5064 = vsyncpa [#allocation19], 1 }
0x194f   :  { %5065 = vsyncpa [#allocation22], 1 }
0x1950   :  { %5066 = vsyncpa [#allocation25], 1 }
0x1951   :  { %5067 = vsyncpa [#allocation28], 1 }
0x1952   :  { %5068 = vsyncpa [#allocation31], 1 }
0x1953   :  { %5069 = vsyncpa [#allocation34], 1 }
0x1954   :  { %5070 = vsyncpa [#allocation37], 1 }
0x1955   :  { %5071 = vsyncpa [#allocation40], 1 }
0x1956   :  { %5072 = vsyncpa [#allocation43], 1 }
0x1957   :  { %5073 = vsyncpa [#allocation46], 1 }
0x1958   :  { %5074 = vsyncpa [#allocation49], 1 }
0x1959   :  { %5075 = vsyncpa [#allocation52], 1 }
0x195a   :  { %5076 = vsyncpa [#allocation8], 1 }
0x195b   :  { %5077 = vsyncpa [#allocation56], 1 }

</bundles_post_ra>
